<compile_context>
chip_gen: v6e
topology: v6e:2x2x1
jax: 0.10.0
libtpu: 0.0.40
codegen_flags: <defaults>
</compile_context>

<pallas_src>
import functools

import jax
import jax.numpy as jnp
from jax.experimental import pallas as pl
from jax.experimental.pallas import tpu as pltpu


def _amlp_kernel(x_ref, w1_ref, b1_ref, w2_ref, b2_ref, w3_ref, b3_ref, o_ref):
    """Fused Linear->ReLU->Linear->ReLU->Linear on one (tm, ni) row tile."""
    dot = functools.partial(jnp.dot, preferred_element_type=jnp.float32)
    x = x_ref[...]                                               # (tm, ni) bf16
    h = jnp.maximum(dot(x, w1_ref[...]) + b1_ref[...], 0.0)      # (tm, nh) f32
    # TODO(synk): nn.Dropout is identity in eval(); train-mode masking would
    # need pltpu.prng_seed / pltpu.stateful_bernoulli and an extra seed input.
    h = jnp.maximum(dot(h.astype(jnp.bfloat16), w2_ref[...]) + b2_ref[...], 0.0)
    out = dot(h.astype(jnp.bfloat16), w3_ref[...]) + b3_ref[...]
    o_ref[...] = out.astype(o_ref.dtype)


def _tensorcores_per_chip():
    """TensorCores per Pallas device: 2 on megacore chips (v7x, v3/v4/v5p),
    1 on v5e/v6e.  Heuristic only; it just steers row-tile sizing."""
    try:
        kind = jax.devices()[0].device_kind.lower().replace(" ", "")
    except Exception:
        return 1
    if "v7" in kind or "7x" in kind:
        return 2
    if "v5e" in kind or "v5lite" in kind or "v6" in kind or "v2" in kind:
        return 1
    if "v3" in kind or "v4" in kind or "v5p" in kind:
        return 2
    return 1


def _choose_row_tiling(m, n_cores):
    """Pick (row_tile, grid_len) for the flattened row axis M.

    * Single-TC chips (v5e/v6e): one full-array block for M <= 512 (the grid
      is a serial loop there), otherwise the largest multiple-of-16 divisor
      of M up to 512 so the 256-wide MXU M extent stays full.
    * Megacore chips (v7x): tiles up to 1024 rows with >= 2 grid steps so the
      "parallel" row axis can shard across both TensorCores.
    Divisor-based tiles (or one full block) avoid any pad/slice HBM copies.
    """
    if m <= 0:
        return 1, 1
    cap = 1024 if n_cores >= 2 else 512
    min_grid = 2 if n_cores >= 2 else 1
    if m <= cap and (n_cores == 1 or m < 32):
        return m, 1
    best = 0
    tile = 16                         # multiple of 16: bf16 sublane packing
    limit = min(cap, m)
    while tile <= limit:
        if m % tile == 0 and m // tile >= min_grid:
            best = tile
        tile += 16
    if best:
        return best, m // best
    if m <= 4096:
        return m, 1                   # one full block beats pad+slice copies
    return cap, pl.cdiv(m, cap)       # rare fallback: wrapper pads the tail


def _vmem_limit_bytes(tm, ni, nh, out_itemsize, weight_buffers):
    """Scoped-VMEM limit sized from the actual footprint plus headroom."""
    weights = 2 * (ni * nh + nh * nh + nh * ni + 2 * nh + ni)   # bf16 params
    x_io = 2 * (2 * tm * ni)                                    # bf16 x, 2 bufs
    out_io = 2 * (out_itemsize * tm * ni)                       # out, 2 bufs
    hidden = 2 * (4 * tm * nh)                                  # two f32 h tiles
    need = weight_buffers * weights + x_io + out_io + hidden
    return int(min(max(2 * need + (4 << 20), 8 << 20), 48 << 20))


def _build_pallas_call(*, m_total, tm, grid_m, ni, nh, out_dtype,
                       single_buffer_weights):
    resident = lambda i: (0, 0)   # grid-invariant: DMA'd once, stays in VMEM
    wkw = {"pipeline_mode": pl.Buffered(1)} if single_buffer_weights else {}
    in_specs = [
        pl.BlockSpec((tm, ni), lambda i: (i, 0)),        # x row tile (bf16)
        pl.BlockSpec((ni, nh), resident, **wkw),         # W1
        pl.BlockSpec((1, nh), resident, **wkw),          # b1
        pl.BlockSpec((nh, nh), resident, **wkw),         # W2
        pl.BlockSpec((1, nh), resident, **wkw),          # b2
        pl.BlockSpec((nh, ni), resident, **wkw),         # W3
        pl.BlockSpec((1, ni), resident, **wkw),          # b3
    ]
    out_itemsize = jnp.dtype(out_dtype).itemsize
    flops = 2 * m_total * (ni * nh + nh * nh + nh * ni)
    bytes_accessed = (2 * m_total * ni                        # x in (bf16)
                      + out_itemsize * m_total * ni           # out
                      + 2 * (ni * nh + nh * nh + nh * ni + 2 * nh + ni))
    # TODO(synk): on v7x, confirm in an xprof trace that the "parallel" row
    # axis actually shards across both TensorCores; if not, switch to
    # pltpu.CORE_PARALLEL or an explicit per-core leading grid axis.
    return pl.pallas_call(
        _amlp_kernel,
        out_shape=jax.ShapeDtypeStruct((m_total, ni), out_dtype),
        grid_spec=pltpu.PrefetchScalarGridSpec(
            num_scalar_prefetch=0,
            grid=(grid_m,),
            in_specs=in_specs,
            out_specs=pl.BlockSpec((tm, ni), lambda i: (i, 0)),
        ),
        compiler_params=pltpu.CompilerParams(
            dimension_semantics=("parallel",),
            vmem_limit_bytes=_vmem_limit_bytes(
                tm, ni, nh, out_itemsize,
                weight_buffers=1 if single_buffer_weights else 2)),
        cost_estimate=pl.CostEstimate(
            flops=flops, transcendentals=0, bytes_accessed=bytes_accessed),
    )


def amplitude_mlp(x, w1, b1, w2, b2, w3, b3):
    """Eval-mode forward of AmplitudeMLP.  x: (..., num_inputs)."""
    orig_shape = x.shape
    out_dtype = x.dtype           # preserve the caller's dtype (like PyTorch)
    ni = orig_shape[-1]
    nh = w1.shape[1]
    assert w1.shape == (ni, nh) and w2.shape == (nh, nh) and w3.shape == (nh, ni)

    m = 1
    for d in orig_shape[:-1]:
        m *= d
    tm, grid_m = _choose_row_tiling(m, _tensorcores_per_chip())
    m_total = tm * grid_m

    # bf16 streaming: the MXU at DEFAULT precision only keeps bf16 mantissas,
    # so casting operands at the boundary halves HBM traffic / VMEM with
    # negligible extra error; accumulation stays f32 inside the kernel.
    # NOTE: if num_inputs were not a multiple of 128, also pad the feature
    # axis here to keep output stores lane-dense (demo uses ni=128).
    x2 = x.reshape(m, ni).astype(jnp.bfloat16)
    if m_total != m:
        # Rare fallback (huge M with no multiple-of-16 divisor).
        # TODO(synk): replace with a scalar-prefetched row count + masked tail
        # store to avoid this extra pad/slice HBM traffic entirely.
        x2 = jnp.pad(x2, ((0, m_total - m), (0, 0)))
    w1b = w1.astype(jnp.bfloat16)
    w2b = w2.astype(jnp.bfloat16)
    w3b = w3.astype(jnp.bfloat16)
    b1b = b1.reshape(1, nh).astype(jnp.bfloat16)
    b2b = b2.reshape(1, nh).astype(jnp.bfloat16)
    b3b = b3.reshape(1, ni).astype(jnp.bfloat16)
    operands = (x2, w1b, b1b, w2b, b2b, w3b, b3b)

    kwargs = dict(m_total=m_total, tm=tm, grid_m=grid_m, ni=ni, nh=nh,
                  out_dtype=out_dtype)
    try:
        out = _build_pallas_call(single_buffer_weights=True, **kwargs)(*operands)
    except Exception:
        # Graceful fallback if this toolchain rejects pl.Buffered(1) on
        # grid-invariant blocks: default double-buffered weights (correct,
        # only costs ~2x weight VMEM at these sizes).
        out = _build_pallas_call(single_buffer_weights=False, **kwargs)(*operands)

    if m_total != m:
        out = out[:m]
    return out.reshape(orig_shape)


if __name__ == "__main__":
    # Lane-aligned demo shapes: batch=2, seq=128, num_inputs=128,
    # num_hidden=256 -> M = 256 rows.  On v5e/v6e this runs as one 256-row
    # tile (grid=1); on v7x it splits into 2 parallel 128-row steps.
    B, S = 2, 128
    num_inputs, num_hidden = 128, 256

    key = jax.random.PRNGKey(0)
    kx, k1, k2, k3, k4, k5, k6 = jax.random.split(key, 7)
    x = jax.random.normal(kx, (B, S, num_inputs), dtype=jnp.float32)

    def linear_init(kw, kb, fan_in, fan_out):
        # PyTorch nn.Linear default init: U(-1/sqrt(fan_in), 1/sqrt(fan_in)).
        bound = 1.0 / (fan_in ** 0.5)
        w = jax.random.uniform(kw, (fan_in, fan_out), jnp.float32, -bound, bound)
        b = jax.random.uniform(kb, (fan_out,), jnp.float32, -bound, bound)
        return w, b

    w1, b1 = linear_init(k1, k2, num_inputs, num_hidden)
    w2, b2 = linear_init(k3, k4, num_hidden, num_hidden)
    w3, b3 = linear_init(k5, k6, num_hidden, num_inputs)

    out = amplitude_mlp(x, w1, b1, w2, b2, w3, b3)
    out = jax.block_until_ready(out)

    # Pure-JAX f32 reference (eval mode: dropout = identity).  The kernel
    # streams bf16 operands with f32 accumulation (DEFAULT MXU precision), so
    # compare at bf16-level tolerance.
    h = jnp.maximum(x @ w1 + b1, 0.0)
    h = jnp.maximum(h @ w2 + b2, 0.0)
    ref = h @ w3 + b3

    err = float(jnp.max(jnp.abs(out - ref)))
    assert jnp.allclose(out, ref, atol=5e-2, rtol=5e-2), f"max abs err = {err}"
    print("KERNEL_OK")
</pallas_src>

<mosaic_0001>
module attributes {stable_mosaic.version = 11 : i64} {
  func.func @_amlp_kernel(%arg0: i32, %arg1: memref<256x128xbf16, #tpu.memory_space<vmem>>, %arg2: memref<128x256xbf16, #tpu.memory_space<vmem>>, %arg3: memref<1x256xbf16, #tpu.memory_space<vmem>>, %arg4: memref<256x256xbf16, #tpu.memory_space<vmem>>, %arg5: memref<1x256xbf16, #tpu.memory_space<vmem>>, %arg6: memref<256x128xbf16, #tpu.memory_space<vmem>>, %arg7: memref<1x128xbf16, #tpu.memory_space<vmem>>, %arg8: memref<256x128xf32, #tpu.memory_space<vmem>>) attributes {dimension_semantics = [#tpu.dimension_semantics<parallel>], iteration_bounds = array<i64: 1>, scalar_prefetch = 0 : i64, scratch_operands = 0 : i64, tpu.core_type = #tpu.core_type<tc>, window_params = [{transform_indices = @transform_0, window_bounds = array<i64: 256, 128>}, {pipeline_mode = #tpu.pipeline_mode<synchronous>, transform_indices = @transform_1, window_bounds = array<i64: 128, 256>}, {pipeline_mode = #tpu.pipeline_mode<synchronous>, transform_indices = @transform_2, window_bounds = array<i64: 1, 256>}, {pipeline_mode = #tpu.pipeline_mode<synchronous>, transform_indices = @transform_3, window_bounds = array<i64: 256, 256>}, {pipeline_mode = #tpu.pipeline_mode<synchronous>, transform_indices = @transform_4, window_bounds = array<i64: 1, 256>}, {pipeline_mode = #tpu.pipeline_mode<synchronous>, transform_indices = @transform_5, window_bounds = array<i64: 256, 128>}, {pipeline_mode = #tpu.pipeline_mode<synchronous>, transform_indices = @transform_6, window_bounds = array<i64: 1, 128>}, {transform_indices = @transform_7, window_bounds = array<i64: 256, 128>}]} {
    %c0 = arith.constant 0 : index
    %c0_0 = arith.constant 0 : index
    %0 = vector.load %arg1[%c0, %c0_0] : memref<256x128xbf16, #tpu.memory_space<vmem>>, vector<256x128xbf16>
    %c0_1 = arith.constant 0 : index
    %c0_2 = arith.constant 0 : index
    %1 = vector.load %arg2[%c0_1, %c0_2] : memref<128x256xbf16, #tpu.memory_space<vmem>>, vector<128x256xbf16>
    %cst = arith.constant dense<0.000000e+00> : vector<256x256xf32>
    %2 = tpu.matmul %0, %1, %cst {dimension_numbers = #tpu.dot_dimension_numbers<[1], [0], [0], [1], [0, 0, 1, 1], [], []>} : vector<256x128xbf16>, vector<128x256xbf16>, vector<256x256xf32> -> vector<256x256xf32>
    %c0_3 = arith.constant 0 : index
    %c0_4 = arith.constant 0 : index
    %3 = vector.load %arg3[%c0_3, %c0_4] : memref<1x256xbf16, #tpu.memory_space<vmem>>, vector<1x256xbf16>
    %4 = arith.extf %3 : vector<1x256xbf16> to vector<1x256xf32>
    %5 = vector.broadcast %4 : vector<1x256xf32> to vector<256x256xf32>
    %6 = arith.addf %2, %5 : vector<256x256xf32>
    %cst_5 = arith.constant 0.000000e+00 : f32
    %7 = vector.broadcast %cst_5 : f32 to vector<256x256xf32>
    %8 = arith.maximumf %6, %7 : vector<256x256xf32>
    %9 = arith.truncf %8 : vector<256x256xf32> to vector<256x256xbf16>
    %c0_6 = arith.constant 0 : index
    %c0_7 = arith.constant 0 : index
    %10 = vector.load %arg4[%c0_6, %c0_7] : memref<256x256xbf16, #tpu.memory_space<vmem>>, vector<256x256xbf16>
    %cst_8 = arith.constant dense<0.000000e+00> : vector<256x256xf32>
    %11 = tpu.matmul %9, %10, %cst_8 {dimension_numbers = #tpu.dot_dimension_numbers<[1], [0], [0], [1], [0, 0, 1, 1], [], []>} : vector<256x256xbf16>, vector<256x256xbf16>, vector<256x256xf32> -> vector<256x256xf32>
    %c0_9 = arith.constant 0 : index
    %c0_10 = arith.constant 0 : index
    %12 = vector.load %arg5[%c0_9, %c0_10] : memref<1x256xbf16, #tpu.memory_space<vmem>>, vector<1x256xbf16>
    %13 = arith.extf %12 : vector<1x256xbf16> to vector<1x256xf32>
    %14 = vector.broadcast %13 : vector<1x256xf32> to vector<256x256xf32>
    %15 = arith.addf %11, %14 : vector<256x256xf32>
    %cst_11 = arith.constant 0.000000e+00 : f32
    %16 = vector.broadcast %cst_11 : f32 to vector<256x256xf32>
    %17 = arith.maximumf %15, %16 : vector<256x256xf32>
    %18 = arith.truncf %17 : vector<256x256xf32> to vector<256x256xbf16>
    %c0_12 = arith.constant 0 : index
    %c0_13 = arith.constant 0 : index
    %19 = vector.load %arg6[%c0_12, %c0_13] : memref<256x128xbf16, #tpu.memory_space<vmem>>, vector<256x128xbf16>
    %cst_14 = arith.constant dense<0.000000e+00> : vector<256x128xf32>
    %20 = tpu.matmul %18, %19, %cst_14 {dimension_numbers = #tpu.dot_dimension_numbers<[1], [0], [0], [1], [0, 0, 1, 1], [], []>} : vector<256x256xbf16>, vector<256x128xbf16>, vector<256x128xf32> -> vector<256x128xf32>
    %c0_15 = arith.constant 0 : index
    %c0_16 = arith.constant 0 : index
    %21 = vector.load %arg7[%c0_15, %c0_16] : memref<1x128xbf16, #tpu.memory_space<vmem>>, vector<1x128xbf16>
    %22 = arith.extf %21 : vector<1x128xbf16> to vector<1x128xf32>
    %23 = vector.broadcast %22 : vector<1x128xf32> to vector<256x128xf32>
    %24 = arith.addf %20, %23 : vector<256x128xf32>
    %c0_17 = arith.constant 0 : index
    %c0_18 = arith.constant 0 : index
    %25 = vector.load %arg8[%c0_17, %c0_18] : memref<256x128xf32, #tpu.memory_space<vmem>>, vector<256x128xf32>
    tpu.vector_store %arg8[%c0_17, %c0_18], %24 {strides = array<i32>} : memref<256x128xf32, #tpu.memory_space<vmem>>, vector<256x128xf32>,
    return
  }
  func.func @transform_0(%arg0: i32) -> (i32, i32) {
    %c0_i32 = arith.constant 0 : i32
    %c0_i32_0 = arith.constant 0 : i32
    return %arg0, %c0_i32 : i32, i32
  }
  func.func @transform_1(%arg0: i32) -> (i32, i32) {
    %c0_i32 = arith.constant 0 : i32
    %c0_i32_0 = arith.constant 0 : i32
    %c0_i32_1 = arith.constant 0 : i32
    return %c0_i32, %c0_i32_0 : i32, i32
  }
  func.func @transform_2(%arg0: i32) -> (i32, i32) {
    %c0_i32 = arith.constant 0 : i32
    %c0_i32_0 = arith.constant 0 : i32
    %c0_i32_1 = arith.constant 0 : i32
    return %c0_i32, %c0_i32_0 : i32, i32
  }
  func.func @transform_3(%arg0: i32) -> (i32, i32) {
    %c0_i32 = arith.constant 0 : i32
    %c0_i32_0 = arith.constant 0 : i32
    %c0_i32_1 = arith.constant 0 : i32
    return %c0_i32, %c0_i32_0 : i32, i32
  }
  func.func @transform_4(%arg0: i32) -> (i32, i32) {
    %c0_i32 = arith.constant 0 : i32
    %c0_i32_0 = arith.constant 0 : i32
    %c0_i32_1 = arith.constant 0 : i32
    return %c0_i32, %c0_i32_0 : i32, i32
  }
  func.func @transform_5(%arg0: i32) -> (i32, i32) {
    %c0_i32 = arith.constant 0 : i32
    %c0_i32_0 = arith.constant 0 : i32
    %c0_i32_1 = arith.constant 0 : i32
    return %c0_i32, %c0_i32_0 : i32, i32
  }
  func.func @transform_6(%arg0: i32) -> (i32, i32) {
    %c0_i32 = arith.constant 0 : i32
    %c0_i32_0 = arith.constant 0 : i32
    %c0_i32_1 = arith.constant 0 : i32
    return %c0_i32, %c0_i32_0 : i32, i32
  }
  func.func @transform_7(%arg0: i32) -> (i32, i32) {
    %c0_i32 = arith.constant 0 : i32
    %c0_i32_0 = arith.constant 0 : i32
    return %arg0, %c0_i32 : i32, i32
  }
}

module attributes {stable_mosaic.version = 11 : i64} {
  func.func @_amlp_kernel(%arg0: i32, %arg1: memref<256x128xbf16, #tpu.memory_space<vmem>>, %arg2: memref<128x256xbf16, #tpu.memory_space<vmem>>, %arg3: memref<1x256xbf16, #tpu.memory_space<vmem>>, %arg4: memref<256x256xbf16, #tpu.memory_space<vmem>>, %arg5: memref<1x256xbf16, #tpu.memory_space<vmem>>, %arg6: memref<256x128xbf16, #tpu.memory_space<vmem>>, %arg7: memref<1x128xbf16, #tpu.memory_space<vmem>>, %arg8: memref<256x128xf32, #tpu.memory_space<vmem>>) attributes {dimension_semantics = [#tpu.dimension_semantics<parallel>], iteration_bounds = array<i64: 1>, scalar_prefetch = 0 : i64, scratch_operands = 0 : i64, tpu.core_type = #tpu.core_type<tc>, window_params = [{transform_indices = @transform_0, window_bounds = array<i64: 256, 128>}, {pipeline_mode = #tpu.pipeline_mode<synchronous>, transform_indices = @transform_1, window_bounds = array<i64: 128, 256>}, {pipeline_mode = #tpu.pipeline_mode<synchronous>, transform_indices = @transform_2, window_bounds = array<i64: 1, 256>}, {pipeline_mode = #tpu.pipeline_mode<synchronous>, transform_indices = @transform_3, window_bounds = array<i64: 256, 256>}, {pipeline_mode = #tpu.pipeline_mode<synchronous>, transform_indices = @transform_4, window_bounds = array<i64: 1, 256>}, {pipeline_mode = #tpu.pipeline_mode<synchronous>, transform_indices = @transform_5, window_bounds = array<i64: 256, 128>}, {pipeline_mode = #tpu.pipeline_mode<synchronous>, transform_indices = @transform_6, window_bounds = array<i64: 1, 128>}, {transform_indices = @transform_7, window_bounds = array<i64: 256, 128>}]} {
    %c0 = arith.constant 0 : index
    %c0_0 = arith.constant 0 : index
    %0 = vector.load %arg1[%c0, %c0_0] : memref<256x128xbf16, #tpu.memory_space<vmem>>, vector<256x128xbf16>
    %c0_1 = arith.constant 0 : index
    %c0_2 = arith.constant 0 : index
    %1 = vector.load %arg2[%c0_1, %c0_2] : memref<128x256xbf16, #tpu.memory_space<vmem>>, vector<128x256xbf16>
    %cst = arith.constant dense<0.000000e+00> : vector<256x256xf32>
    %2 = tpu.matmul %0, %1, %cst {dimension_numbers = #tpu.dot_dimension_numbers<[1], [0], [0], [1], [0, 0, 1, 1], [], []>} : vector<256x128xbf16>, vector<128x256xbf16>, vector<256x256xf32> -> vector<256x256xf32>
    %c0_3 = arith.constant 0 : index
    %c0_4 = arith.constant 0 : index
    %3 = vector.load %arg3[%c0_3, %c0_4] : memref<1x256xbf16, #tpu.memory_space<vmem>>, vector<1x256xbf16>
    %4 = arith.extf %3 : vector<1x256xbf16> to vector<1x256xf32>
    %5 = vector.broadcast %4 : vector<1x256xf32> to vector<256x256xf32>
    %6 = arith.addf %2, %5 : vector<256x256xf32>
    %cst_5 = arith.constant 0.000000e+00 : f32
    %7 = vector.broadcast %cst_5 : f32 to vector<256x256xf32>
    %8 = arith.maximumf %6, %7 : vector<256x256xf32>
    %9 = arith.truncf %8 : vector<256x256xf32> to vector<256x256xbf16>
    %c0_6 = arith.constant 0 : index
    %c0_7 = arith.constant 0 : index
    %10 = vector.load %arg4[%c0_6, %c0_7] : memref<256x256xbf16, #tpu.memory_space<vmem>>, vector<256x256xbf16>
    %cst_8 = arith.constant dense<0.000000e+00> : vector<256x256xf32>
    %11 = tpu.matmul %9, %10, %cst_8 {dimension_numbers = #tpu.dot_dimension_numbers<[1], [0], [0], [1], [0, 0, 1, 1], [], []>} : vector<256x256xbf16>, vector<256x256xbf16>, vector<256x256xf32> -> vector<256x256xf32>
    %c0_9 = arith.constant 0 : index
    %c0_10 = arith.constant 0 : index
    %12 = vector.load %arg5[%c0_9, %c0_10] : memref<1x256xbf16, #tpu.memory_space<vmem>>, vector<1x256xbf16>
    %13 = arith.extf %12 : vector<1x256xbf16> to vector<1x256xf32>
    %14 = vector.broadcast %13 : vector<1x256xf32> to vector<256x256xf32>
    %15 = arith.addf %11, %14 : vector<256x256xf32>
    %cst_11 = arith.constant 0.000000e+00 : f32
    %16 = vector.broadcast %cst_11 : f32 to vector<256x256xf32>
    %17 = arith.maximumf %15, %16 : vector<256x256xf32>
    %18 = arith.truncf %17 : vector<256x256xf32> to vector<256x256xbf16>
    %c0_12 = arith.constant 0 : index
    %c0_13 = arith.constant 0 : index
    %19 = vector.load %arg6[%c0_12, %c0_13] : memref<256x128xbf16, #tpu.memory_space<vmem>>, vector<256x128xbf16>
    %cst_14 = arith.constant dense<0.000000e+00> : vector<256x128xf32>
    %20 = tpu.matmul %18, %19, %cst_14 {dimension_numbers = #tpu.dot_dimension_numbers<[1], [0], [0], [1], [0, 0, 1, 1], [], []>} : vector<256x256xbf16>, vector<256x128xbf16>, vector<256x128xf32> -> vector<256x128xf32>
    %c0_15 = arith.constant 0 : index
    %c0_16 = arith.constant 0 : index
    %21 = vector.load %arg7[%c0_15, %c0_16] : memref<1x128xbf16, #tpu.memory_space<vmem>>, vector<1x128xbf16>
    %22 = arith.extf %21 : vector<1x128xbf16> to vector<1x128xf32>
    %23 = vector.broadcast %22 : vector<1x128xf32> to vector<256x128xf32>
    %24 = arith.addf %20, %23 : vector<256x128xf32>
    %c0_17 = arith.constant 0 : index
    %c0_18 = arith.constant 0 : index
    %25 = vector.load %arg8[%c0_17, %c0_18] : memref<256x128xf32, #tpu.memory_space<vmem>>, vector<256x128xf32>
    tpu.vector_store %arg8[%c0_17, %c0_18], %24 {strides = array<i32>} : memref<256x128xf32, #tpu.memory_space<vmem>>, vector<256x128xf32>,
    return
  }
  func.func @transform_0(%arg0: i32) -> (i32, i32) {
    %c0_i32 = arith.constant 0 : i32
    %c0_i32_0 = arith.constant 0 : i32
    return %arg0, %c0_i32 : i32, i32
  }
  func.func @transform_1(%arg0: i32) -> (i32, i32) {
    %c0_i32 = arith.constant 0 : i32
    %c0_i32_0 = arith.constant 0 : i32
    %c0_i32_1 = arith.constant 0 : i32
    return %c0_i32, %c0_i32_0 : i32, i32
  }
  func.func @transform_2(%arg0: i32) -> (i32, i32) {
    %c0_i32 = arith.constant 0 : i32
    %c0_i32_0 = arith.constant 0 : i32
    %c0_i32_1 = arith.constant 0 : i32
    return %c0_i32, %c0_i32_0 : i32, i32
  }
  func.func @transform_3(%arg0: i32) -> (i32, i32) {
    %c0_i32 = arith.constant 0 : i32
    %c0_i32_0 = arith.constant 0 : i32
    %c0_i32_1 = arith.constant 0 : i32
    return %c0_i32, %c0_i32_0 : i32, i32
  }
  func.func @transform_4(%arg0: i32) -> (i32, i32) {
    %c0_i32 = arith.constant 0 : i32
    %c0_i32_0 = arith.constant 0 : i32
    %c0_i32_1 = arith.constant 0 : i32
    return %c0_i32, %c0_i32_0 : i32, i32
  }
  func.func @transform_5(%arg0: i32) -> (i32, i32) {
    %c0_i32 = arith.constant 0 : i32
    %c0_i32_0 = arith.constant 0 : i32
    %c0_i32_1 = arith.constant 0 : i32
    return %c0_i32, %c0_i32_0 : i32, i32
  }
  func.func @transform_6(%arg0: i32) -> (i32, i32) {
    %c0_i32 = arith.constant 0 : i32
    %c0_i32_0 = arith.constant 0 : i32
    %c0_i32_1 = arith.constant 0 : i32
    return %c0_i32, %c0_i32_0 : i32, i32
  }
  func.func @transform_7(%arg0: i32) -> (i32, i32) {
    %c0_i32 = arith.constant 0 : i32
    %c0_i32_0 = arith.constant 0 : i32
    return %arg0, %c0_i32 : i32, i32
  }
}

</mosaic_0001>

<bundles_post_ra>
// kernel: tpu_custom_call.1
= control target key start
LH: loop header
LB: loop body
LE: loop exit
PB: predicated region body
PF: predicated region fallthrough
CT: control target
= control target key end

     0   :  { %12 = vsyncpa [#allocation3], 0  ;;  %s2241_s0 = inlined_call_operand.hbm [shape: bf16[256,128], index: 0, kind: input, shape index: {}]   ;;  %s2242_s1 = inlined_call_operand.hbm [shape: bf16[128,256], index: 1, kind: input, shape index: {}]   ;;  %s2243_s2 = inlined_call_operand.vmem [shape: bf16[1,256], index: 2, kind: input, shape index: {}]   ;;  %s2244_s3 = inlined_call_operand.hbm [shape: bf16[256,256], index: 3, kind: input, shape index: {}]   ;;  %s2245_s4 = inlined_call_operand.vmem [shape: bf16[1,256], index: 4, kind: input, shape index: {}]   ;;  %s2246_s5 = inlined_call_operand.hbm [shape: bf16[256,128], index: 5, kind: input, shape index: {}]   ;;  %s2247_s6 = inlined_call_operand.vmem [shape: bf16[1,128], index: 6, kind: input, shape index: {}]   ;;  %s2248_s7 = inlined_call_operand.hbm [shape: f32[256,128], index: 7, kind: output, shape index: {}]  }
   0x1   :  { %13 = vsyncpa [#allocation6], 0 }
   0x2   :  { %14 = vsyncpa [#allocation9], 0 }
   0x3   :  { %15 = vsyncpa [#allocation4], 0  ;;  %s1895_s24 = smov [#allocation5]  }
   0x4   :  { %s33_s25 = sshll.u32 %s1895_s24, 4  ;;  %s34_s25 = int_to_ptr.vmem [resolvable:$true] %s33_s25 }
   0x5   :  { %s1795_s26 = scalar_lea.vmem %s34_s25, 2048  ;;  %p1800_p1 = scmp.lt.s32.totalorder %s34_s25, %s34_s25 }
   0x6   :  { %p1796_p0 = scmp.ne.s32.totalorder %s34_s25, %s1795_s26  ;;  %p1801_p2 = scmp.lt.s32.totalorder %s1795_s26, %s1795_s26 }
   0x8   :  { %p1802_p3 = por %p1801_p2, %p1800_p1 }
   0xa   :  { %p1803_p4 = pnand %p1802_p3, %p1796_p0 }
   0xc   :  { %1806 = shalt.err (!%p1803_p4)
}
   0xd   :  { %s1896_s27 = smov 128   ;;  %s1897_s28 = smov 8  }
   0xe   :  { %39 = dma.hbm_to_vmem [thread:$0]  %s2242_s1, 2048, %s34_s25, [#allocation6], %s1896_s27, %s1896_s27, %s1897_s28  }
   0xf   :  { %s1898_s8 = smov [#allocation2]  }
  0x10   :  { %s21_s9 = sshll.u32 %s1898_s8, 4  ;;  %s22_s9 = int_to_ptr.vmem [resolvable:$true] %s21_s9 }
  0x11   :  { %s1815_s10 = scalar_lea.vmem %s22_s9, 2048  ;;  %p1820_p6 = scmp.lt.s32.totalorder %s22_s9, %s22_s9 }
  0x12   :  { %p1816_p5 = scmp.ne.s32.totalorder %s22_s9, %s1815_s10  ;;  %p1821_p7 = scmp.lt.s32.totalorder %s1815_s10, %s1815_s10 }
  0x14   :  { %p1822_p8 = por %p1821_p7, %p1820_p6 }
  0x16   :  { %p1823_p9 = pnand %p1822_p8, %p1816_p5 }
  0x18   :  { %1826 = shalt.err (!%p1823_p9)
}
  0x19   :  { %s1899_s11 = smov 64   ;;  %s1900_s12 = smov 4  }
  0x1a   :  { %27 = dma.hbm_to_vmem [thread:$0]  %s2241_s0, 2048, %s22_s9, [#allocation3], %s1899_s11, %s1899_s11, %s1900_s12  }
  0x1b   :  { %s1901_s15 = smov [#allocation7]   ;;  %s1902_s17 = smov [#allocation8]  }
  0x1c   :  { %s47_s16 = sshll.u32 %s1901_s15, 4  ;;  %s61_s1 = sshll.u32 %s1902_s17, 4  ;;  %s48_s16 = int_to_ptr.vmem [resolvable:$true] %s47_s16  ;;  %s62_s1 = int_to_ptr.vmem [resolvable:$true] %s61_s1 }
  0x1d   :  { %s1835_s18 = scalar_lea.vmem %s48_s16, 4096  ;;  %p1840_p11 = scmp.lt.s32.totalorder %s48_s16, %s48_s16 }
  0x1e   :  { %p1836_p10 = scmp.ne.s32.totalorder %s48_s16, %s1835_s18  ;;  %p1841_p12 = scmp.lt.s32.totalorder %s1835_s18, %s1835_s18 }
  0x20   :  { %p1842_p13 = por %p1841_p12, %p1840_p11 }
  0x22   :  { %p1843_p0 = pnand %p1842_p13, %p1836_p10 }
  0x24   :  { %1846 = shalt.err (!%p1843_p0)
}
  0x25   :  { %53 = dma.hbm_to_vmem [thread:$0]  %s2244_s3, 4096, %s48_s16, [#allocation6], %s1896_s27, %s1896_s27, %s1897_s28  }
  0x26   :  { %s1855_s0 = scalar_lea.vmem %s62_s1, 2048  ;;  %p1860_p2 = scmp.lt.s32.totalorder %s62_s1, %s62_s1 }
  0x27   :  { %p1856_p1 = scmp.ne.s32.totalorder %s62_s1, %s1855_s0  ;;  %p1861_p3 = scmp.lt.s32.totalorder %s1855_s0, %s1855_s0 }
  0x29   :  { %p1862_p4 = por %p1861_p3, %p1860_p2 }
  0x2b   :  { %p1863_p5 = pnand %p1862_p4, %p1856_p1 }
  0x2d   :  { %1866 = shalt.err (!%p1863_p5)
}
  0x2e   :  { %67 = dma.hbm_to_vmem [thread:$0]  %s2246_s5, 2048, %s62_s1, [#allocation9], %s1899_s11, %s1899_s11, %s1900_s12  }
  0x2f   :  { %1887 = dma.done.wait [#allocation3], 2048  }
  0x30   :  { %1888 = vsyncadd [#allocation3], 4294965248 }
  0x31   :  { %1889 = dma.done.wait [#allocation6], 6144  }
  0x32   :  { %1890 = vsyncadd [#allocation6], 4294961152 }
  0x33   :  { %1891 = dma.done.wait [#allocation9], 2048  }
  0x34   :  { %1892 = vsyncadd [#allocation9], 4294965248  ;;  %v1903_v0 = vmov 0   ;;  %v1683_v1 = vld [vmem:[#allocation5 + $0x74] ss:$8 sps:$4 sm:$0xff]   ;;  %v1707_v18 = vld [vmem:[#allocation2] sm:$0xff]  }
  0x35   :  { %360 = vmatprep.mubr.bf16.mxu0 %v1903_v0  ;;  %440 = vmatprep.mubr.bf16.mxu1 %v1903_v0  ;;  %v1685_v2 = vld [vmem:[#allocation5 + $0x70] ss:$8 sps:$4 sm:$0xff]   ;;  %v1686_v3 = vld [vmem:[#allocation5 + $0x64] ss:$8 sps:$4 sm:$0xff]   ;;  %v1688_v4 = vld [vmem:[#allocation5 + $0x60] ss:$8 sps:$4 sm:$0xff]  }
  0x36   :  { %328 = vmatprep.subr.bf16.mxu0 %v1683_v1  ;;  %1657 = vmatprep.subr.bf16.mxu1 %v1683_v1  ;;  %v1689_v5 = vld [vmem:[#allocation5 + $0x54] ss:$8 sps:$4 sm:$0xff]   ;;  %v1691_v6 = vld [vmem:[#allocation5 + $0x50] ss:$8 sps:$4 sm:$0xff]   ;;  %v1692_v7 = vld [vmem:[#allocation5 + $0x44] ss:$8 sps:$4 sm:$0xff]  }
  0x37   :  { %329 = vmatpush1.bf16.msra.mxu0 %v1685_v2  ;;  %1665 = vmatpush1.bf16.msra.mxu1 %v1685_v2  ;;  %v1694_v8 = vld [vmem:[#allocation5 + $0x40] ss:$8 sps:$4 sm:$0xff]   ;;  %v1695_v9 = vld [vmem:[#allocation5 + $0x34] ss:$8 sps:$4 sm:$0xff]   ;;  %v1697_v10 = vld [vmem:[#allocation5 + $0x30] ss:$8 sps:$4 sm:$0xff]   ;;  %v134_v2 = vlaneseq }
  0x38   :  { %330 = vmatprep.subr.bf16.mxu0 %v1686_v3  ;;  %1658 = vmatprep.subr.bf16.mxu1 %v1686_v3  ;;  %v1698_v11 = vld [vmem:[#allocation5 + $0x24] ss:$8 sps:$4 sm:$0xff]   ;;  %v1700_v12 = vld [vmem:[#allocation5 + $0x20] ss:$8 sps:$4 sm:$0xff]   ;;  %v1701_v13 = vld [vmem:[#allocation5 + $0x14] ss:$8 sps:$4 sm:$0xff]  }
  0x39   :  { %v1703_v14 = vld [vmem:[#allocation5 + $0x10] ss:$8 sps:$4 sm:$0xff]   ;;  %v1704_v15 = vld [vmem:[#allocation5 + $0x4] ss:$8 sps:$4 sm:$0xff]   ;;  %v1706_v16 = vld [vmem:[#allocation5] ss:$8 sps:$4 sm:$0xff]  }
  0x3a   :  { %v1725_v17 = vld [vmem:[#allocation7 + $0x74] ss:$8 sps:$4 sm:$0xff]   ;;  %v1715_v19 = vld [vmem:[#allocation2 + $0x40] sm:$0xff]   ;;  %v1723_v20 = vld [vmem:[#allocation7 + $0x70] ss:$8 sps:$4 sm:$0xff]   ;;  %v1979_v3 = vshrl.u32 %v134_v2, 7 }
  0x3b   :  { %331 = vmatpush1.bf16.msra.mxu0 %v1688_v4  ;;  %1666 = vmatpush1.bf16.msra.mxu1 %v1688_v4  ;;  %v1728_v21 = vld [vmem:[#allocation7 + $0x64] ss:$8 sps:$4 sm:$0xff]   ;;  %v1726_v22 = vld [vmem:[#allocation7 + $0x60] ss:$8 sps:$4 sm:$0xff]   ;;  %v1731_v23 = vld [vmem:[#allocation7 + $0x54] ss:$8 sps:$4 sm:$0xff]  }
  0x3c   :  { %332 = vmatprep.subr.bf16.mxu0 %v1689_v5  ;;  %1659 = vmatprep.subr.bf16.mxu1 %v1689_v5  ;;  %v1708_v24 = vld [vmem:[#allocation2 + $0x8] sm:$0xff]   ;;  %v1729_v26 = vld [vmem:[#allocation7 + $0x50] ss:$8 sps:$4 sm:$0xff]   ;;  %v1737_v31 = vld [vmem:[#allocation7 + $0x34] ss:$8 sps:$4 sm:$0xff]   ;;  %v140_v4 = vsub.s32 2, %v1979_v3 }
  0x3d   :  { %v1716_v25 = vld [vmem:[#allocation2 + $0x48] sm:$0xff]   ;;  %v1709_v29 = vld [vmem:[#allocation2 + $0x10] sm:$0xff]   ;;  %v1710_v36 = vld [vmem:[#allocation2 + $0x18] sm:$0xff]  }
  0x3e   :  { %v1734_v27 = vld [vmem:[#allocation7 + $0x44] ss:$8 sps:$4 sm:$0xff]   ;;  %v1732_v28 = vld [vmem:[#allocation7 + $0x40] ss:$8 sps:$4 sm:$0xff]   ;;  %v1717_v30 = vld [vmem:[#allocation2 + $0x50] sm:$0xff]  }
  0x3f   :  { %333 = vmatpush1.bf16.msra.mxu0 %v1691_v6  ;;  %1667 = vmatpush1.bf16.msra.mxu1 %v1691_v6  ;;  %v1735_v32 = vld [vmem:[#allocation7 + $0x30] ss:$8 sps:$4 sm:$0xff]   ;;  %v1740_v33 = vld [vmem:[#allocation7 + $0x24] ss:$8 sps:$4 sm:$0xff]   ;;  %v1738_v34 = vld [vmem:[#allocation7 + $0x20] ss:$8 sps:$4 sm:$0xff]  }
  0x40   :  { %334 = vmatprep.subr.bf16.mxu0 %v1692_v7  ;;  %1660 = vmatprep.subr.bf16.mxu1 %v1692_v7  ;;  %v1743_v35 = vld [vmem:[#allocation7 + $0x14] ss:$8 sps:$4 sm:$0xff]   ;;  %v1741_v38 = vld [vmem:[#allocation7 + $0x10] ss:$8 sps:$4 sm:$0xff]   ;;  %v1746_v39 = vld [vmem:[#allocation7 + $0x4] ss:$8 sps:$4 sm:$0xff]  }
  0x41   :  { %v1718_v37 = vld [vmem:[#allocation2 + $0x58] sm:$0xff]   ;;  %v1744_v40 = vld [vmem:[#allocation7] ss:$8 sps:$4 sm:$0xff]   ;;  %v1752_v45 = vld [vmem:[#allocation7 + $0xe4] ss:$8 sps:$4 sm:$0xff]   ;;  %v1986_v6 = vsub.s32 0, %v1979_v3 }
  0x42   :  { %v1749_v41 = vld [vmem:[#allocation7 + $0xf4] ss:$8 sps:$4 sm:$0xff]   ;;  %v1711_v42 = vld [vmem:[#allocation2 + $0x20] sm:$0xff]   ;;  %v1747_v44 = vld [vmem:[#allocation7 + $0xf0] ss:$8 sps:$4 sm:$0xff]  }
  0x43   :  { %335 = vmatpush1.bf16.msra.mxu0 %v1694_v8  ;;  %1668 = vmatpush1.bf16.msra.mxu1 %v1694_v8  ;;  %v1719_v43 = vld [vmem:[#allocation2 + $0x60] sm:$0xff]   ;;  %v1755_v47 = vld [vmem:[#allocation7 + $0xd4] ss:$8 sps:$4 sm:$0xff]   ;;  %v1712_v48 = vld [vmem:[#allocation2 + $0x28] sm:$0xff]  }
  0x44   :  { %336 = vmatprep.subr.bf16.mxu0 %v1695_v9  ;;  %1661 = vmatprep.subr.bf16.mxu1 %v1695_v9  ;;  %v1750_v46 = vld [vmem:[#allocation7 + $0xe0] ss:$8 sps:$4 sm:$0xff]   ;;  %v1753_v50 = vld [vmem:[#allocation7 + $0xd0] ss:$8 sps:$4 sm:$0xff]   ;;  %v1758_v51 = vld [vmem:[#allocation7 + $0xc4] ss:$8 sps:$4 sm:$0xff]  }
  0x45   :  { %v1720_v49 = vld [vmem:[#allocation2 + $0x68] sm:$0xff]   ;;  %v1761_v53 = vld [vmem:[#allocation7 + $0xb4] ss:$8 sps:$4 sm:$0xff]   ;;  %v1759_v56 = vld [vmem:[#allocation7 + $0xb0] ss:$8 sps:$4 sm:$0xff]  }
  0x46   :  { %v1756_v52 = vld [vmem:[#allocation7 + $0xc0] ss:$8 sps:$4 sm:$0xff]   ;;  %v1713_v54 = vld [vmem:[#allocation2 + $0x30] sm:$0xff]   ;;  %v1714_v57 = vld [vmem:[#allocation2 + $0x38] sm:$0xff]  }
  0x47   :  { %337 = vmatpush1.bf16.msra.mxu0 %v1697_v10  ;;  %1669 = vmatpush1.bf16.msra.mxu1 %v1697_v10  ;;  %v1721_v55 = vld [vmem:[#allocation2 + $0x70] sm:$0xff]   ;;  %v1722_v58 = vld [vmem:[#allocation2 + $0x78] sm:$0xff]   ;;  %v1764_v59 = vld [vmem:[#allocation7 + $0xa4] ss:$8 sps:$4 sm:$0xff]  }
  0x48   :  { %338 = vmatprep.subr.bf16.mxu0 %v1698_v11  ;;  %1662 = vmatprep.subr.bf16.mxu1 %v1698_v11  ;;  %v1762_v60 = vld [vmem:[#allocation7 + $0xa0] ss:$8 sps:$4 sm:$0xff]   ;;  %v1767_v61 = vld [vmem:[#allocation7 + $0x94] ss:$8 sps:$4 sm:$0xff]   ;;  %v1765_v62 = vld [vmem:[#allocation7 + $0x90] ss:$8 sps:$4 sm:$0xff]  }
  0x49   :  { %v1770_v63 = vld [vmem:[#allocation7 + $0x84] ss:$8 sps:$4 sm:$0xff]   ;;  %v1768_v1 = vld [vmem:[#allocation7 + $0x80] ss:$8 sps:$4 sm:$0xff]   ;;  %v1781_v2 = vld [vmem:[#allocation8 + $0x50] sm:$0xff]  }
  0x4b   :  { %339 = vmatpush1.bf16.msra.mxu0 %v1700_v12  ;;  %1670 = vmatpush1.bf16.msra.mxu1 %v1700_v12 }
  0x4c   :  { %340 = vmatprep.subr.bf16.mxu0 %v1701_v13  ;;  %1663 = vmatprep.subr.bf16.mxu1 %v1701_v13 }
  0x4f   :  { %341 = vmatpush1.bf16.msra.mxu0 %v1703_v14  ;;  %1671 = vmatpush1.bf16.msra.mxu1 %v1703_v14 }
  0x50   :  { %342 = vmatprep.subr.bf16.mxu0 %v1704_v15  ;;  %1664 = vmatprep.subr.bf16.mxu1 %v1704_v15 }
  0x53   :  { %343 = vmatpush1.bf16.msra.mxu0 %v1706_v16  ;;  %1672 = vmatpush1.bf16.msra.mxu1 %v1706_v16 }
  0x54   :  { %830 = vmatprep.subr.bf16.mxu1 %v1725_v17 }
  0x56   :  { %361 = vmatmul.mubr.bf16.vlgmr.msra.gmra.mxu0 %v1707_v18  ;;  %441 = vmatmul.mubr.bf16.vlgmr.msra.gmra.mxu1 %v1715_v19 }
  0x57   :  { %370 = vmatprep.mubr.bf16.mxu0 %v1903_v0  ;;  %450 = vmatprep.mubr.bf16.mxu1 %v1903_v0 }
  0x58   :  { %831 = vmatpush1.bf16.msra.mxu1 %v1723_v20 }
  0x59   :  { %832 = vmatprep.subr.bf16.mxu1 %v1728_v21 }
  0x5c   :  { %833 = vmatpush1.bf16.msra.mxu1 %v1726_v22  ;;  %v1771_v22 = vld [vmem:[#allocation8 + $0x78] sm:$0xff]  }
  0x5d   :  { %834 = vmatprep.subr.bf16.mxu1 %v1731_v23  ;;  %v1772_v23 = vld [vmem:[#allocation8 + $0x38] sm:$0xff]   ;;  %1545 = vmatprep.subr.bf16.mxu0 %v1771_v22 }
  0x5e   :  { %371 = vmatmul.mubr.bf16.gmra.mxu0 %v1708_v24  ;;  %451 = vmatmul.mubr.bf16.gmra.mxu1 %v1716_v25  ;;  %v1773_v24 = vld [vmem:[#allocation8 + $0x70] sm:$0xff]  }
  0x5f   :  { %380 = vmatprep.mubr.bf16.mxu0 %v1903_v0  ;;  %460 = vmatprep.mubr.bf16.mxu1 %v1903_v0 }
  0x60   :  { %835 = vmatpush1.bf16.msra.mxu1 %v1729_v26  ;;  %1546 = vmatpush3.bf16.msra.mxu0 %v1772_v23 }
  0x61   :  { %836 = vmatprep.subr.bf16.mxu1 %v1734_v27  ;;  %1547 = vmatprep.subr.bf16.mxu0 %v1773_v24 }
  0x64   :  { %837 = vmatpush1.bf16.msra.mxu1 %v1732_v28 }
  0x65   :  { %838 = vmatprep.subr.bf16.mxu1 %v1737_v31  ;;  %v1774_v31 = vld [vmem:[#allocation8 + $0x30] sm:$0xff]  }
  0x66   :  { %381 = vmatmul.mubr.bf16.gmra.mxu0 %v1709_v29  ;;  %461 = vmatmul.mubr.bf16.gmra.mxu1 %v1717_v30 }
  0x67   :  { %390 = vmatprep.mubr.bf16.mxu0 %v1903_v0  ;;  %470 = vmatprep.mubr.bf16.mxu1 %v1903_v0 }
  0x68   :  { %839 = vmatpush1.bf16.msra.mxu1 %v1735_v32  ;;  %1548 = vmatpush3.bf16.msra.mxu0 %v1774_v31 }
  0x69   :  { %840 = vmatprep.subr.bf16.mxu1 %v1740_v33 }
  0x6c   :  { %841 = vmatpush1.bf16.msra.mxu1 %v1738_v34 }
  0x6d   :  { %842 = vmatprep.subr.bf16.mxu1 %v1743_v35  ;;  %v1775_v35 = vld [vmem:[#allocation8 + $0x68] sm:$0xff]  }
  0x6e   :  { %391 = vmatmul.mubr.bf16.gmra.mxu0 %v1710_v36  ;;  %471 = vmatmul.mubr.bf16.gmra.mxu1 %v1718_v37 }
  0x6f   :  { %400 = vmatprep.mubr.bf16.mxu0 %v1903_v0  ;;  %480 = vmatprep.mubr.bf16.mxu1 %v1903_v0 }
  0x70   :  { %843 = vmatpush1.bf16.msra.mxu1 %v1741_v38  ;;  %1549 = vmatprep.subr.bf16.mxu0 %v1775_v35 }
  0x71   :  { %844 = vmatprep.subr.bf16.mxu1 %v1746_v39 }
  0x74   :  { %845 = vmatpush1.bf16.msra.mxu1 %v1744_v40 }
  0x75   :  { %846 = vmatprep.subr.bf16.mxu1 %v1749_v41 }
  0x76   :  { %401 = vmatmul.mubr.bf16.gmra.mxu0 %v1711_v42  ;;  %481 = vmatmul.mubr.bf16.gmra.mxu1 %v1719_v43  ;;  %v1776_v42 = vld [vmem:[#allocation8 + $0x28] sm:$0xff]  }
  0x77   :  { %410 = vmatprep.mubr.bf16.mxu0 %v1903_v0  ;;  %490 = vmatprep.mubr.bf16.mxu1 %v1903_v0 }
  0x78   :  { %847 = vmatpush2.bf16.msra.mxu1 %v1747_v44  ;;  %1550 = vmatpush3.bf16.msra.mxu0 %v1776_v42 }
  0x79   :  { %848 = vmatprep.subr.bf16.mxu1 %v1752_v45  ;;  %v1777_v45 = vld [vmem:[#allocation8 + $0x60] sm:$0xff]  }
  0x7a   :  { %1551 = vmatprep.subr.bf16.mxu0 %v1777_v45 }
  0x7c   :  { %849 = vmatpush2.bf16.msra.mxu1 %v1750_v46 }
  0x7d   :  { %850 = vmatprep.subr.bf16.mxu1 %v1755_v47 }
  0x7e   :  { %411 = vmatmul.mubr.bf16.gmra.mxu0 %v1712_v48  ;;  %491 = vmatmul.mubr.bf16.gmra.mxu1 %v1720_v49 }
  0x7f   :  { %420 = vmatprep.mubr.bf16.mxu0 %v1903_v0  ;;  %500 = vmatprep.mubr.bf16.mxu1 %v1903_v0 }
  0x80   :  { %851 = vmatpush2.bf16.msra.mxu1 %v1753_v50 }
  0x81   :  { %852 = vmatprep.subr.bf16.mxu1 %v1758_v51 }
  0x84   :  { %853 = vmatpush2.bf16.msra.mxu1 %v1756_v52  ;;  %v1778_v52 = vld [vmem:[#allocation8 + $0x20] sm:$0xff]  }
  0x85   :  { %854 = vmatprep.subr.bf16.mxu1 %v1761_v53  ;;  %1552 = vmatpush3.bf16.msra.mxu0 %v1778_v52 }
  0x86   :  { %421 = vmatmul.mubr.bf16.gmra.mxu0 %v1713_v54  ;;  %501 = vmatmul.mubr.bf16.gmra.mxu1 %v1721_v55  ;;  %v1779_v55 = vld [vmem:[#allocation8 + $0x58] sm:$0xff]  }
  0x87   :  { %430 = vmatprep.mubr.bf16.mxu0 %v1903_v0  ;;  %510 = vmatprep.mubr.bf16.mxu1 %v1903_v0  ;;  %v131_v0 = vld [vmem:[%s2243_s2] sm:$0x3] }
  0x88   :  { %855 = vmatpush2.bf16.msra.mxu1 %v1759_v56  ;;  %v132_v5 = vunpack.c.l.bf16 %v131_v0  ;;  %1553 = vmatprep.subr.bf16.mxu0 %v1779_v55 }
  0x89   :  { %856 = vmatprep.subr.bf16.mxu1 %v1764_v59 }
  0x8a   :  { %v141_v7 = vrot.slane %v132_v5, %v140_v4  ;;  %v137_v8 = vrot.slane %v132_v5, %v1986_v6 }
  0x8c   :  { %857 = vmatpush2.bf16.msra.mxu1 %v1762_v60  ;;  %v1994_v11 = vrot.slane %v141_v7, %v1986_v6  ;;  %v1997_v12 = vrot.slane %v137_v8, %v1986_v6 }
  0x8d   :  { %858 = vmatprep.subr.bf16.mxu1 %v1767_v61 }
  0x8e   :  { %431 = vmatmul.mubr.bf16.gmra.mxu0 %v1714_v57  ;;  %511 = vmatmul.mubr.bf16.gmra.mxu1 %v1722_v58 }
  0x90   :  { %859 = vmatpush2.bf16.msra.mxu1 %v1765_v62  ;;  %v1780_v62 = vld [vmem:[#allocation8 + $0x18] sm:$0xff]  }
  0x91   :  { %860 = vmatprep.subr.bf16.mxu1 %v1770_v63  ;;  %1554 = vmatpush3.bf16.msra.mxu0 %v1780_v62 }
  0x92   :  { %1555 = vmatprep.subr.bf16.mxu0 %v1781_v2 }
  0x94   :  { %861 = vmatpush2.bf16.msra.mxu1 %v1768_v1 }
 0x116   :  { %v362_v9 = vpop.f32.mrf.mxu0  ;;  %v1991_v10 = vpop.f32.mrf.mxu1 }
 0x117   :  { %v363_v19 = vadd.f32 %v362_v9, %v1997_v12 }
 0x118   :  { %v364_v13 = vpop.f32.mrf.mxu0  ;;  %v1999_v14 = vpop.f32.mrf.mxu1 }
 0x119   :  { %v365_v17 = vadd.f32 %v364_v13, %v1994_v11  ;;  %v521_v32 = vmax.f32 %v363_v19, 0.0  ;;  %v1783_v19 = vld [vmem:[#allocation8 + $0x48] sm:$0xff]  }
 0x11a   :  { %v366_v15 = vpop.f32.mrf.mxu0  ;;  %v2001_v16 = vpop.f32.mrf.mxu1 }
 0x11b   :  { %v367_v18 = vadd.f32 %v366_v15, %v1997_v12  ;;  %v522_v29 = vmax.f32 %v365_v17, 0.0  ;;  %v1782_v15 = vld [vmem:[#allocation8 + $0x10] sm:$0xff]  }
 0x11c   :  { %v368_v20 = vpop.f32.mrf.mxu0  ;;  %v2006_v21 = vpop.f32.mrf.mxu1  ;;  %1556 = vmatpush3.bf16.msra.mxu0 %v1782_v15 }
 0x11d   :  { %v369_v25 = vadd.f32 %v368_v20, %v1994_v11  ;;  %v523_v26 = vmax.f32 %v367_v18, 0.0  ;;  %1557 = vmatprep.subr.bf16.mxu0 %v1783_v19 }
 0x11e   :  { %v372_v27 = vpop.f32.mrf.mxu0  ;;  %v2009_v28 = vpop.f32.mrf.mxu1 }
 0x11f   :  { %v524_v30 = vmax.f32 %v369_v25, 0.0  ;;  %v585_v37 = vpack.c.bf16 %v523_v26, %v521_v32  ;;  %v373_v43 = vadd.f32 %v372_v27, %v1997_v12  ;;  %v1784_v27 = vld [vmem:[#allocation8 + $0x8] sm:$0xff]  }
 0x120   :  { %v374_v33 = vpop.f32.mrf.mxu0  ;;  %v2011_v34 = vpop.f32.mrf.mxu1  ;;  %1558 = vmatpush3.bf16.msra.mxu0 %v1784_v27 }
 0x121   :  { %v586_v36 = vpack.c.bf16 %v524_v30, %v522_v29  ;;  %v375_v40 = vadd.f32 %v374_v33, %v1994_v11  ;;  %v525_v53 = vmax.f32 %v373_v43, 0.0 }
 0x122   :  { %v376_v38 = vpop.f32.mrf.mxu0  ;;  %v2013_v39 = vpop.f32.mrf.mxu1 }
 0x123   :  { %v377_v41 = vadd.f32 %v376_v38, %v1997_v12  ;;  %862 = vmatprep.mubr.bf16.mxu1 %v586_v36  ;;  %v526_v50 = vmax.f32 %v375_v40, 0.0 }
 0x124   :  { %v378_v44 = vpop.f32.mrf.mxu0  ;;  %863 = vmatmul.mubr.bf16.vlgmr.msra.gmra.mxu1 %v585_v37  ;;  %v2019_v49 = vpop.f32.mrf.mxu1 }
 0x125   :  { %v379_v46 = vadd.f32 %v378_v44, %v1994_v11  ;;  %v527_v47 = vmax.f32 %v377_v41, 0.0 }
 0x126   :  { %v382_v48 = vpop.f32.mrf.mxu0  ;;  %v2021_v59 = vpop.f32.mrf.mxu1 }
 0x127   :  { %v528_v51 = vmax.f32 %v379_v46, 0.0  ;;  %v587_v57 = vpack.c.bf16 %v527_v47, %v525_v53  ;;  %v383_v63 = vadd.f32 %v382_v48, %v1997_v12 }
 0x128   :  { %v384_v54 = vpop.f32.mrf.mxu0  ;;  %v2027_v8 = vpop.f32.mrf.mxu1 }
 0x129   :  { %v588_v56 = vpack.c.bf16 %v528_v51, %v526_v50  ;;  %v385_v60 = vadd.f32 %v384_v54, %v1994_v11  ;;  %v529_v17 = vmax.f32 %v383_v63, 0.0 }
 0x12a   :  { %v386_v58 = vpop.f32.mrf.mxu0  ;;  %v2029_v24 = vpop.f32.mrf.mxu1 }
 0x12b   :  { %v387_v61 = vadd.f32 %v386_v58, %v1997_v12  ;;  %872 = vmatprep.mubr.bf16.mxu1 %v588_v56  ;;  %v530_v9 = vmax.f32 %v385_v60, 0.0 }
 0x12c   :  { %v388_v1 = vpop.f32.mrf.mxu0  ;;  %873 = vmatmul.mubr.bf16.gmra.mxu1 %v587_v57  ;;  %v2035_v35 = vpop.f32.mrf.mxu1 }
 0x12d   :  { %v389_v0 = vadd.f32 %v388_v1, %v1994_v11  ;;  %v531_v5 = vmax.f32 %v387_v61, 0.0 }
 0x12e   :  { %v392_v7 = vpop.f32.mrf.mxu0  ;;  %v2037_v44 = vpop.f32.mrf.mxu1 }
 0x12f   :  { %v532_v13 = vmax.f32 %v389_v0, 0.0  ;;  %v589_v22 = vpack.c.bf16 %v531_v5, %v529_v17  ;;  %v393_v29 = vadd.f32 %v392_v7, %v1997_v12 }
 0x130   :  { %v394_v18 = vpop.f32.mrf.mxu0  ;;  %v2043_v53 = vpop.f32.mrf.mxu1 }
 0x131   :  { %v590_v20 = vpack.c.bf16 %v532_v13, %v530_v9  ;;  %v395_v25 = vadd.f32 %v394_v18, %v1994_v11  ;;  %v533_v38 = vmax.f32 %v393_v29, 0.0 }
 0x132   :  { %v396_v23 = vpop.f32.mrf.mxu0  ;;  %v2045_v62 = vpop.f32.mrf.mxu1 }
 0x133   :  { %v397_v26 = vadd.f32 %v396_v23, %v1997_v12  ;;  %882 = vmatprep.mubr.bf16.mxu1 %v590_v20  ;;  %v534_v36 = vmax.f32 %v395_v25, 0.0 }
 0x134   :  { %v398_v30 = vpop.f32.mrf.mxu0  ;;  %883 = vmatmul.mubr.bf16.gmra.mxu1 %v589_v22  ;;  %v2051_v13 = vpop.f32.mrf.mxu1 }
 0x135   :  { %v399_v31 = vadd.f32 %v398_v30, %v1994_v11  ;;  %v535_v32 = vmax.f32 %v397_v26, 0.0 }
 0x136   :  { %v402_v33 = vpop.f32.mrf.mxu0  ;;  %v2053_v25 = vpop.f32.mrf.mxu1 }
 0x137   :  { %v536_v37 = vmax.f32 %v399_v31, 0.0  ;;  %v591_v42 = vpack.c.bf16 %v535_v32, %v533_v38  ;;  %v403_v47 = vadd.f32 %v402_v33, %v1997_v12 }
 0x138   :  { %v404_v40 = vpop.f32.mrf.mxu0 }
 0x139   :  { %v592_v41 = vpack.c.bf16 %v536_v37, %v534_v36  ;;  %v405_v45 = vadd.f32 %v404_v40, %v1994_v11  ;;  %v537_v56 = vmax.f32 %v403_v47, 0.0  ;;  %v2059_v36 = vpop.f32.mrf.mxu1 }
 0x13a   :  { %v406_v43 = vpop.f32.mrf.mxu0 }
 0x13b   :  { %v407_v46 = vadd.f32 %v406_v43, %v1997_v12  ;;  %892 = vmatprep.mubr.bf16.mxu1 %v592_v41  ;;  %v538_v54 = vmax.f32 %v405_v45, 0.0  ;;  %v445_v43 = vadd.f32 %v1999_v14, %v1994_v11  ;;  %v449_v45 = vadd.f32 %v2006_v21, %v1994_v11 }
 0x13c   :  { %v408_v48 = vpop.f32.mrf.mxu0  ;;  %893 = vmatmul.mubr.bf16.gmra.mxu1 %v591_v42 }
 0x13d   :  { %v409_v50 = vadd.f32 %v408_v48, %v1994_v11  ;;  %v539_v51 = vmax.f32 %v407_v46, 0.0  ;;  %v2065_v48 = vpop.f32.mrf.mxu1  ;;  %v556_v14 = vmax.f32 %v449_v45, 0.0  ;;  %v1786_v45 = vld [vmem:[#allocation8] sm:$0xff]  }
 0x13e   :  { %v412_v52 = vpop.f32.mrf.mxu0 }
 0x13f   :  { %v540_v55 = vmax.f32 %v409_v50, 0.0  ;;  %v593_v60 = vpack.c.bf16 %v539_v51, %v537_v56  ;;  %v413_v2 = vadd.f32 %v412_v52, %v1997_v12 }
 0x140   :  { %v414_v57 = vpop.f32.mrf.mxu0 }
 0x141   :  { %v594_v58 = vpack.c.bf16 %v540_v55, %v538_v54  ;;  %v415_v63 = vadd.f32 %v414_v57, %v1994_v11  ;;  %v541_v18 = vmax.f32 %v413_v2, 0.0  ;;  %v554_v55 = vmax.f32 %v445_v43, 0.0 }
 0x142   :  { %v416_v61 = vpop.f32.mrf.mxu0  ;;  %v455_v2 = vadd.f32 %v2011_v34, %v1994_v11 }
 0x143   :  { %v417_v1 = vadd.f32 %v416_v61, %v1997_v12  ;;  %902 = vmatprep.mubr.bf16.mxu1 %v594_v58  ;;  %v542_v15 = vmax.f32 %v415_v63, 0.0  ;;  %v488_v58 = vpop.f32.mrf.mxu1 }
 0x144   :  { %v418_v0 = vpop.f32.mrf.mxu0  ;;  %903 = vmatmul.mubr.bf16.gmra.mxu1 %v593_v60 }
 0x145   :  { %v419_v5 = vadd.f32 %v418_v0, %v1994_v11  ;;  %v543_v7 = vmax.f32 %v417_v1, 0.0  ;;  %v602_v1 = vpack.c.bf16 %v556_v14, %v554_v55  ;;  %v459_v0 = vadd.f32 %v2019_v49, %v1994_v11 }
 0x146   :  { %v422_v9 = vpop.f32.mrf.mxu0  ;;  %v465_v49 = vadd.f32 %v2027_v8, %v1994_v11  ;;  %v475_v8 = vadd.f32 %v2043_v53, %v1994_v11 }
 0x147   :  { %v544_v17 = vmax.f32 %v419_v5, 0.0  ;;  %v595_v22 = vpack.c.bf16 %v543_v7, %v541_v18  ;;  %v423_v29 = vadd.f32 %v422_v9, %v1997_v12  ;;  %v443_v5 = vadd.f32 %v1991_v10, %v1997_v12 }
 0x148   :  { %v424_v19 = vpop.f32.mrf.mxu0  ;;  %v447_v9 = vadd.f32 %v2001_v16, %v1997_v12  ;;  %v560_v18 = vmax.f32 %v459_v0, 0.0  ;;  %v469_v10 = vadd.f32 %v2035_v35, %v1994_v11  ;;  %v453_v16 = vadd.f32 %v2009_v28, %v1997_v12 }
 0x149   :  { %v596_v20 = vpack.c.bf16 %v544_v17, %v542_v15  ;;  %v425_v26 = vadd.f32 %v424_v19, %v1994_v11  ;;  %v545_v40 = vmax.f32 %v423_v29, 0.0  ;;  %v2079_v15 = vpop.f32.mrf.mxu1  ;;  %v558_v17 = vmax.f32 %v455_v2, 0.0 }
 0x14a   :  { %v426_v23 = vpop.f32.mrf.mxu0  ;;  %v553_v19 = vmax.f32 %v443_v5, 0.0  ;;  %v562_v29 = vmax.f32 %v465_v49, 0.0  ;;  %v479_v35 = vadd.f32 %v2051_v13, %v1994_v11  ;;  %v463_v28 = vadd.f32 %v2021_v59, %v1997_v12 }
 0x14b   :  { %v427_v27 = vadd.f32 %v426_v23, %v1997_v12  ;;  %912 = vmatprep.mubr.bf16.mxu1 %v596_v20  ;;  %v546_v37 = vmax.f32 %v425_v26, 0.0  ;;  %v555_v20 = vmax.f32 %v447_v9, 0.0  ;;  %v494_v34 = vpop.f32.mrf.mxu1  ;;  %v457_v26 = vadd.f32 %v2013_v39, %v1997_v12 }
 0x14c   :  { %v428_v30 = vpop.f32.mrf.mxu0  ;;  %913 = vmatmul.mubr.bf16.gmra.mxu1 %v595_v22  ;;  %v604_v22 = vpack.c.bf16 %v560_v18, %v558_v17  ;;  %v467_v39 = vadd.f32 %v2029_v24, %v1997_v12  ;;  %v568_v43 = vmax.f32 %v479_v35, 0.0  ;;  %v489_v59 = vadd.f32 %v488_v58, %v1994_v11 }
 0x14d   :  { %v429_v31 = vadd.f32 %v428_v30, %v1994_v11  ;;  %v547_v32 = vmax.f32 %v427_v27, 0.0  ;;  %v601_v23 = vpack.c.bf16 %v555_v20, %v553_v19  ;;  %v496_v27 = vpop.f32.mrf.mxu1  ;;  %v564_v30 = vmax.f32 %v469_v10, 0.0 }
 0x14e   :  { %v432_v33 = vpop.f32.mrf.mxu0  ;;  %v473_v24 = vadd.f32 %v2037_v44, %v1997_v12  ;;  %v483_v44 = vadd.f32 %v2053_v25, %v1997_v12  ;;  %v493_v25 = vadd.f32 %v2079_v15, %v1997_v12  ;;  %v497_v20 = vadd.f32 %v496_v27, %v1997_v12 }
 0x14f   :  { %v548_v38 = vmax.f32 %v429_v31, 0.0  ;;  %v597_v46 = vpack.c.bf16 %v547_v32, %v545_v40  ;;  %v433_v52 = vadd.f32 %v432_v33, %v1997_v12  ;;  %v557_v31 = vmax.f32 %v453_v16, 0.0  ;;  %v498_v33 = vpop.f32.mrf.mxu1 }
 0x150   :  { %v434_v41 = vpop.f32.mrf.mxu0  ;;  %v559_v32 = vmax.f32 %v457_v26, 0.0  ;;  %v565_v14 = vmax.f32 %v473_v24, 0.0  ;;  %v499_v58 = vadd.f32 %v498_v33, %v1994_v11  ;;  %v569_v0 = vmax.f32 %v483_v44, 0.0 }
 0x151   :  { %v598_v42 = vpack.c.bf16 %v548_v38, %v546_v37  ;;  %v435_v50 = vadd.f32 %v434_v41, %v1994_v11  ;;  %v549_v61 = vmax.f32 %v433_v52, 0.0  ;;  %v606_v37 = vpack.c.bf16 %v564_v30, %v562_v29  ;;  %v502_v40 = vpop.f32.mrf.mxu1  ;;  %v1785_v41 = vld [vmem:[#allocation8 + $0x40] sm:$0xff]  }
 0x152   :  { %v436_v47 = vpop.f32.mrf.mxu0  ;;  %v603_v38 = vpack.c.bf16 %v559_v32, %v557_v31  ;;  %1559 = vmatprep.subr.bf16.mxu0 %v1785_v41  ;;  %v477_v52 = vadd.f32 %v2045_v62, %v1997_v12  ;;  %v487_v62 = vadd.f32 %v2065_v48, %v1997_v12  ;;  %v576_v2 = vmax.f32 %v499_v58, 0.0 }
 0x153   :  { %v437_v51 = vadd.f32 %v436_v47, %v1997_v12  ;;  %922 = vmatprep.mubr.bf16.mxu1 %v598_v42  ;;  %v550_v21 = vmax.f32 %v435_v50, 0.0  ;;  %v566_v42 = vmax.f32 %v475_v8, 0.0  ;;  %v563_v47 = vmax.f32 %v467_v39, 0.0  ;;  %v504_v53 = vpop.f32.mrf.mxu1  ;;  %1560 = vmatpush3.bf16.msra.mxu0 %v1786_v45 }
 0x154   :  { %v438_v54 = vpop.f32.mrf.mxu0  ;;  %923 = vmatmul.mubr.bf16.gmra.mxu1 %v597_v46  ;;  %v561_v46 = vmax.f32 %v463_v28, 0.0  ;;  %v485_v50 = vadd.f32 %v2059_v36, %v1994_v11  ;;  %v495_v36 = vadd.f32 %v494_v34, %v1994_v11  ;;  %v571_v5 = vmax.f32 %v487_v62, 0.0 }
 0x155   :  { %v439_v56 = vadd.f32 %v438_v54, %v1994_v11  ;;  %v551_v57 = vmax.f32 %v437_v51, 0.0  ;;  %v608_v13 = vpack.c.bf16 %v568_v43, %v566_v42  ;;  %v506_v54 = vpop.f32.mrf.mxu1  ;;  %v505_v17 = vadd.f32 %v504_v53, %v1994_v11 }
 0x156   :  { %v605_v51 = vpack.c.bf16 %v563_v47, %v561_v46  ;;  %v570_v55 = vmax.f32 %v485_v50, 0.0  ;;  %v609_v19 = vpack.c.bf16 %v571_v5, %v569_v0  ;;  %v573_v49 = vmax.f32 %v493_v25, 0.0 }
 0x157   :  { %v552_v60 = vmax.f32 %v439_v56, 0.0  ;;  %v599_v7 = vpack.c.bf16 %v551_v57, %v549_v61  ;;  %v572_v56 = vmax.f32 %v489_v59, 0.0  ;;  %v567_v57 = vmax.f32 %v477_v52, 0.0 }
 0x158   :  { %v578_v34 = vmax.f32 %v505_v17, 0.0  ;;  %v575_v10 = vmax.f32 %v497_v20, 0.0  ;;  %v503_v31 = vadd.f32 %v502_v40, %v1997_v12  ;;  %v507_v15 = vadd.f32 %v506_v54, %v1997_v12  ;;  %v649_v40 = vld [vmem:[%s2245_s4] sm:$0x3] }
 0x159   :  { %v600_v63 = vpack.c.bf16 %v552_v60, %v550_v21  ;;  %v508_v21 = vpop.f32.mrf.mxu1  ;;  %v610_v60 = vpack.c.bf16 %v572_v56, %v570_v55  ;;  %v607_v61 = vpack.c.bf16 %v567_v57, %v565_v14  ;;  %v650_v42 = vunpack.c.l.bf16 %v649_v40 }
 0x15a   :  { %v509_v18 = vadd.f32 %v508_v21, %v1994_v11  ;;  %v611_v30 = vpack.c.bf16 %v575_v10, %v573_v49  ;;  %v577_v33 = vmax.f32 %v503_v31, 0.0 }
 0x15b   :  { %932 = vmatprep.mubr.bf16.mxu1 %v600_v63  ;;  %v512_v63 = vpop.f32.mrf.mxu1  ;;  %v659_v43 = vrot.slane %v650_v42, %v140_v4  ;;  %v655_v45 = vrot.slane %v650_v42, %v1986_v6 }
 0x15c   :  { %933 = vmatmul.mubr.bf16.gmra.mxu1 %v599_v7 }
 0x15d   :  { %942 = vmatprep.mubr.bf16.mxu1 %v602_v1  ;;  %v574_v1 = vmax.f32 %v495_v36, 0.0  ;;  %v514_v7 = vpop.f32.mrf.mxu1  ;;  %v2128_v47 = vrot.slane %v659_v43, %v1986_v6 }
 0x15e   :  { %v515_v26 = vadd.f32 %v514_v7, %v1994_v11 }
 0x15f   :  { %v612_v9 = vpack.c.bf16 %v576_v2, %v574_v1  ;;  %v516_v48 = vpop.f32.mrf.mxu1 }
 0x160   :  { %v582_v27 = vmax.f32 %v515_v26, 0.0  ;;  %v517_v28 = vadd.f32 %v516_v48, %v1997_v12 }
 0x162   :  { %v583_v39 = vmax.f32 %v517_v28, 0.0 }
 0x164   :  { %943 = vmatmul.mubr.bf16.gmra.mxu1 %v601_v23  ;;  %v518_v23 = vpop.f32.mrf.mxu1 }
 0x165   :  { %952 = vmatprep.mubr.bf16.mxu1 %v604_v22  ;;  %v580_v22 = vmax.f32 %v509_v18, 0.0  ;;  %v519_v29 = vadd.f32 %v518_v23, %v1994_v11 }
 0x167   :  { %v614_v16 = vpack.c.bf16 %v580_v22, %v578_v34  ;;  %v584_v32 = vmax.f32 %v519_v29, 0.0 }
 0x169   :  { %v616_v8 = vpack.c.bf16 %v584_v32, %v582_v27 }
 0x16c   :  { %953 = vmatmul.mubr.bf16.gmra.mxu1 %v603_v38  ;;  %v513_v38 = vadd.f32 %v512_v63, %v1997_v12  ;;  %v2131_v12 = vrot.slane %v655_v45, %v1986_v6 }
 0x16d   :  { %962 = vmatprep.mubr.bf16.mxu1 %v606_v37  ;;  %v579_v37 = vmax.f32 %v507_v15, 0.0 }
 0x16e   :  { %v581_v11 = vmax.f32 %v513_v38, 0.0 }
 0x16f   :  { %v613_v35 = vpack.c.bf16 %v579_v37, %v577_v33 }
 0x170   :  { %v615_v41 = vpack.c.bf16 %v583_v39, %v581_v11 }
 0x174   :  { %963 = vmatmul.mubr.bf16.gmra.mxu1 %v605_v51 }
 0x175   :  { %972 = vmatprep.mubr.bf16.mxu1 %v608_v13 }
 0x17c   :  { %973 = vmatmul.mubr.bf16.gmra.mxu1 %v607_v61 }
 0x17d   :  { %982 = vmatprep.mubr.bf16.mxu1 %v610_v60 }
 0x184   :  { %983 = vmatmul.mubr.bf16.gmra.mxu1 %v609_v19 }
 0x185   :  { %992 = vmatprep.mubr.bf16.mxu1 %v612_v9 }
 0x18c   :  { %993 = vmatmul.mubr.bf16.gmra.mxu1 %v611_v30 }
 0x18d   :  { %1002 = vmatprep.mubr.bf16.mxu1 %v614_v16 }
 0x194   :  { %1003 = vmatmul.mubr.bf16.gmra.mxu1 %v613_v35 }
 0x195   :  { %1012 = vmatprep.mubr.bf16.mxu1 %v616_v8 }
 0x19c   :  { %1013 = vmatmul.mubr.bf16.gmra.mxu1 %v615_v41 }
 0x1e4   :  { %v864_v46 = vpop.f32.mrf.mxu1 }
 0x1e5   :  { %v865_v51 = vadd.f32 %v864_v46, %v2131_v12 }
 0x1e6   :  { %v866_v53 = vpop.f32.mrf.mxu1 }
 0x1e7   :  { %v867_v50 = vadd.f32 %v866_v53, %v2128_v47  ;;  %v1023_v56 = vmax.f32 %v865_v51, 0.0 }
 0x1e8   :  { %v868_v13 = vpop.f32.mrf.mxu1 }
 0x1e9   :  { %v869_v59 = vadd.f32 %v868_v13, %v2131_v12  ;;  %v1024_v54 = vmax.f32 %v867_v50, 0.0 }
 0x1ea   :  { %v870_v24 = vpop.f32.mrf.mxu1 }
 0x1eb   :  { %v871_v3 = vadd.f32 %v870_v24, %v2128_v47  ;;  %v1025_v4 = vmax.f32 %v869_v59, 0.0 }
 0x1ec   :  { %v874_v52 = vpop.f32.mrf.mxu1 }
 0x1ed   :  { %v1026_v55 = vmax.f32 %v871_v3, 0.0  ;;  %v1087_v21 = vpack.c.bf16 %v1025_v4, %v1023_v56  ;;  %v875_v61 = vadd.f32 %v874_v52, %v2131_v12 }
 0x1ee   :  { %v876_v14 = vpop.f32.mrf.mxu1 }
 0x1ef   :  { %v1088_v57 = vpack.c.bf16 %v1026_v55, %v1024_v54  ;;  %v877_v36 = vadd.f32 %v876_v14, %v2128_v47  ;;  %v1027_v5 = vmax.f32 %v875_v61, 0.0 }
 0x1f0   :  { %v878_v60 = vpop.f32.mrf.mxu1 }
 0x1f1   :  { %v879_v58 = vadd.f32 %v878_v60, %v2131_v12  ;;  %1285 = vmatprep.mubr.bf16.mxu0 %v1088_v57  ;;  %v1028_v2 = vmax.f32 %v877_v36, 0.0 }
 0x1f2   :  { %v880_v44 = vpop.f32.mrf.mxu1  ;;  %1286 = vmatmul.mubr.bf16.vlgmr.msra.gmra.mxu0 %v1087_v21 }
 0x1f3   :  { %v881_v62 = vadd.f32 %v880_v44, %v2128_v47  ;;  %v1029_v63 = vmax.f32 %v879_v58, 0.0 }
 0x1f4   :  { %v884_v1 = vpop.f32.mrf.mxu1 }
 0x1f5   :  { %v1030_v0 = vmax.f32 %v881_v62, 0.0  ;;  %v1089_v17 = vpack.c.bf16 %v1029_v63, %v1027_v5  ;;  %v885_v20 = vadd.f32 %v884_v1, %v2131_v12 }
 0x1f6   :  { %v886_v7 = vpop.f32.mrf.mxu1 }
 0x1f7   :  { %v1090_v9 = vpack.c.bf16 %v1030_v0, %v1028_v2  ;;  %v887_v19 = vadd.f32 %v886_v7, %v2128_v47  ;;  %v1031_v16 = vmax.f32 %v885_v20, 0.0 }
 0x1f8   :  { %v888_v18 = vpop.f32.mrf.mxu1 }
 0x1f9   :  { %v889_v25 = vadd.f32 %v888_v18, %v2131_v12  ;;  %1293 = vmatprep.mubr.bf16.mxu0 %v1090_v9  ;;  %v1032_v10 = vmax.f32 %v887_v19, 0.0 }
 0x1fa   :  { %v890_v48 = vpop.f32.mrf.mxu1  ;;  %1294 = vmatmul.mubr.bf16.gmra.mxu0 %v1089_v17 }
 0x1fb   :  { %v891_v34 = vadd.f32 %v890_v48, %v2128_v47  ;;  %v1033_v22 = vmax.f32 %v889_v25, 0.0 }
 0x1fc   :  { %v894_v49 = vpop.f32.mrf.mxu1 }
 0x1fd   :  { %v1034_v23 = vmax.f32 %v891_v34, 0.0  ;;  %v1091_v30 = vpack.c.bf16 %v1033_v22, %v1031_v16  ;;  %v895_v32 = vadd.f32 %v894_v49, %v2131_v12 }
 0x1fe   :  { %v896_v26 = vpop.f32.mrf.mxu1 }
 0x1ff   :  { %v1092_v29 = vpack.c.bf16 %v1034_v23, %v1032_v10  ;;  %v897_v15 = vadd.f32 %v896_v26, %v2128_v47  ;;  %v1035_v11 = vmax.f32 %v895_v32, 0.0 }
 0x200   :  { %v898_v31 = vpop.f32.mrf.mxu1 }
 0x201   :  { %v899_v27 = vadd.f32 %v898_v31, %v2131_v12  ;;  %1301 = vmatprep.mubr.bf16.mxu0 %v1092_v29  ;;  %v1036_v38 = vmax.f32 %v897_v15, 0.0 }
 0x202   :  { %v900_v33 = vpop.f32.mrf.mxu1  ;;  %1302 = vmatmul.mubr.bf16.gmra.mxu0 %v1091_v30 }
 0x203   :  { %v901_v37 = vadd.f32 %v900_v33, %v2128_v47  ;;  %v1037_v8 = vmax.f32 %v899_v27, 0.0 }
 0x204   :  { %v904_v35 = vpop.f32.mrf.mxu1 }
 0x205   :  { %v1038_v28 = vmax.f32 %v901_v37, 0.0  ;;  %v1093_v40 = vpack.c.bf16 %v1037_v8, %v1035_v11  ;;  %v905_v46 = vadd.f32 %v904_v35, %v2131_v12 }
 0x206   :  { %v906_v39 = vpop.f32.mrf.mxu1 }
 0x207   :  { %v1094_v41 = vpack.c.bf16 %v1038_v28, %v1036_v38  ;;  %v907_v43 = vadd.f32 %v906_v39, %v2128_v47  ;;  %v1039_v3 = vmax.f32 %v905_v46, 0.0 }
 0x208   :  { %v908_v42 = vpop.f32.mrf.mxu1 }
 0x209   :  { %v909_v45 = vadd.f32 %v908_v42, %v2131_v12  ;;  %1309 = vmatprep.mubr.bf16.mxu0 %v1094_v41  ;;  %v1040_v51 = vmax.f32 %v907_v43, 0.0 }
 0x20a   :  { %v910_v53 = vpop.f32.mrf.mxu1  ;;  %1310 = vmatmul.mubr.bf16.gmra.mxu0 %v1093_v40 }
 0x20b   :  { %v911_v13 = vadd.f32 %v910_v53, %v2128_v47  ;;  %v1041_v50 = vmax.f32 %v909_v45, 0.0 }
 0x20c   :  { %v914_v59 = vpop.f32.mrf.mxu1 }
 0x20d   :  { %v1042_v24 = vmax.f32 %v911_v13, 0.0  ;;  %v1095_v54 = vpack.c.bf16 %v1041_v50, %v1039_v3  ;;  %v915_v57 = vadd.f32 %v914_v59, %v2131_v12 }
 0x20e   :  { %v916_v4 = vpop.f32.mrf.mxu1 }
 0x20f   :  { %v1096_v52 = vpack.c.bf16 %v1042_v24, %v1040_v51  ;;  %v917_v56 = vadd.f32 %v916_v4, %v2128_v47  ;;  %v1043_v62 = vmax.f32 %v915_v57, 0.0 }
 0x210   :  { %v918_v55 = vpop.f32.mrf.mxu1 }
 0x211   :  { %v919_v14 = vadd.f32 %v918_v55, %v2131_v12  ;;  %1317 = vmatprep.mubr.bf16.mxu0 %v1096_v52  ;;  %v1044_v61 = vmax.f32 %v917_v56, 0.0 }
 0x212   :  { %v920_v21 = vpop.f32.mrf.mxu1  ;;  %1318 = vmatmul.mubr.bf16.gmra.mxu0 %v1095_v54 }
 0x213   :  { %v921_v60 = vadd.f32 %v920_v21, %v2128_v47  ;;  %v1045_v36 = vmax.f32 %v919_v14, 0.0 }
 0x214   :  { %v924_v58 = vpop.f32.mrf.mxu1 }
 0x215   :  { %v1046_v44 = vmax.f32 %v921_v60, 0.0  ;;  %v1097_v2 = vpack.c.bf16 %v1045_v36, %v1043_v62  ;;  %v925_v9 = vadd.f32 %v924_v58, %v2131_v12 }
 0x216   :  { %v926_v63 = vpop.f32.mrf.mxu1 }
 0x217   :  { %v1098_v1 = vpack.c.bf16 %v1046_v44, %v1044_v61  ;;  %v927_v5 = vadd.f32 %v926_v63, %v2128_v47  ;;  %v1047_v34 = vmax.f32 %v925_v9, 0.0 }
 0x218   :  { %v928_v0 = vpop.f32.mrf.mxu1 }
 0x219   :  { %v929_v7 = vadd.f32 %v928_v0, %v2131_v12  ;;  %1325 = vmatprep.mubr.bf16.mxu0 %v1098_v1  ;;  %v1048_v20 = vmax.f32 %v927_v5, 0.0 }
 0x21a   :  { %v930_v17 = vpop.f32.mrf.mxu1  ;;  %1326 = vmatmul.mubr.bf16.gmra.mxu0 %v1097_v2 }
 0x21b   :  { %v931_v18 = vadd.f32 %v930_v17, %v2128_v47  ;;  %v1049_v19 = vmax.f32 %v929_v7, 0.0 }
 0x21c   :  { %v934_v25 = vpop.f32.mrf.mxu1 }
 0x21d   :  { %v1050_v48 = vmax.f32 %v931_v18, 0.0  ;;  %v1099_v10 = vpack.c.bf16 %v1049_v19, %v1047_v34  ;;  %v935_v29 = vadd.f32 %v934_v25, %v2131_v12 }
 0x21e   :  { %v936_v22 = vpop.f32.mrf.mxu1 }
 0x21f   :  { %v1100_v49 = vpack.c.bf16 %v1050_v48, %v1048_v20  ;;  %v937_v16 = vadd.f32 %v936_v22, %v2128_v47  ;;  %v1051_v37 = vmax.f32 %v935_v29, 0.0 }
 0x220   :  { %v938_v23 = vpop.f32.mrf.mxu1 }
 0x221   :  { %v939_v26 = vadd.f32 %v938_v23, %v2131_v12  ;;  %1333 = vmatprep.mubr.bf16.mxu0 %v1100_v49  ;;  %v1052_v32 = vmax.f32 %v937_v16, 0.0 }
 0x222   :  { %v940_v30 = vpop.f32.mrf.mxu1  ;;  %1334 = vmatmul.mubr.bf16.gmra.mxu0 %v1099_v10 }
 0x223   :  { %v941_v31 = vadd.f32 %v940_v30, %v2128_v47  ;;  %v1053_v15 = vmax.f32 %v939_v26, 0.0 }
 0x224   :  { %v944_v27 = vpop.f32.mrf.mxu1 }
 0x225   :  { %v1054_v33 = vmax.f32 %v941_v31, 0.0  ;;  %v1101_v38 = vpack.c.bf16 %v1053_v15, %v1051_v37  ;;  %v945_v41 = vadd.f32 %v944_v27, %v2131_v12 }
 0x226   :  { %v946_v8 = vpop.f32.mrf.mxu1 }
 0x227   :  { %v1102_v35 = vpack.c.bf16 %v1054_v33, %v1052_v32  ;;  %v947_v11 = vadd.f32 %v946_v8, %v2128_v47  ;;  %v1055_v13 = vmax.f32 %v945_v41, 0.0 }
 0x228   :  { %v948_v28 = vpop.f32.mrf.mxu1 }
 0x229   :  { %v949_v39 = vadd.f32 %v948_v28, %v2131_v12  ;;  %1341 = vmatprep.mubr.bf16.mxu0 %v1102_v35  ;;  %v1056_v46 = vmax.f32 %v947_v11, 0.0 }
 0x22a   :  { %v950_v40 = vpop.f32.mrf.mxu1  ;;  %1342 = vmatmul.mubr.bf16.gmra.mxu0 %v1101_v38 }
 0x22b   :  { %v951_v42 = vadd.f32 %v950_v40, %v2128_v47  ;;  %v1057_v43 = vmax.f32 %v949_v39, 0.0 }
 0x22c   :  { %v954_v45 = vpop.f32.mrf.mxu1 }
 0x22d   :  { %v1058_v53 = vmax.f32 %v951_v42, 0.0  ;;  %v1103_v51 = vpack.c.bf16 %v1057_v43, %v1055_v13  ;;  %v955_v52 = vadd.f32 %v954_v45, %v2131_v12 }
 0x22e   :  { %v956_v50 = vpop.f32.mrf.mxu1 }
 0x22f   :  { %v1104_v59 = vpack.c.bf16 %v1058_v53, %v1056_v46  ;;  %v957_v3 = vadd.f32 %v956_v50, %v2128_v47  ;;  %v1059_v60 = vmax.f32 %v955_v52, 0.0 }
 0x230   :  { %v958_v24 = vpop.f32.mrf.mxu1 }
 0x231   :  { %v959_v4 = vadd.f32 %v958_v24, %v2131_v12  ;;  %1349 = vmatprep.mubr.bf16.mxu0 %v1104_v59  ;;  %v1060_v57 = vmax.f32 %v957_v3, 0.0 }
 0x232   :  { %v960_v54 = vpop.f32.mrf.mxu1  ;;  %1350 = vmatmul.mubr.bf16.gmra.mxu0 %v1103_v51 }
 0x233   :  { %v961_v55 = vadd.f32 %v960_v54, %v2128_v47  ;;  %v1061_v56 = vmax.f32 %v959_v4, 0.0 }
 0x234   :  { %v964_v14 = vpop.f32.mrf.mxu1 }
 0x235   :  { %v1062_v21 = vmax.f32 %v961_v55, 0.0  ;;  %v1105_v61 = vpack.c.bf16 %v1061_v56, %v1059_v60  ;;  %v965_v1 = vadd.f32 %v964_v14, %v2131_v12 }
 0x236   :  { %v966_v36 = vpop.f32.mrf.mxu1 }
 0x237   :  { %v1106_v58 = vpack.c.bf16 %v1062_v21, %v1060_v57  ;;  %v967_v62 = vadd.f32 %v966_v36, %v2128_v47  ;;  %v1063_v18 = vmax.f32 %v965_v1, 0.0 }
 0x238   :  { %v968_v44 = vpop.f32.mrf.mxu1 }
 0x239   :  { %v969_v63 = vadd.f32 %v968_v44, %v2131_v12  ;;  %1357 = vmatprep.mubr.bf16.mxu0 %v1106_v58  ;;  %v1064_v9 = vmax.f32 %v967_v62, 0.0 }
 0x23a   :  { %v970_v2 = vpop.f32.mrf.mxu1  ;;  %1358 = vmatmul.mubr.bf16.gmra.mxu0 %v1105_v61 }
 0x23b   :  { %v971_v0 = vadd.f32 %v970_v2, %v2128_v47  ;;  %v1065_v5 = vmax.f32 %v969_v63, 0.0 }
 0x23c   :  { %v974_v7 = vpop.f32.mrf.mxu1 }
 0x23d   :  { %v1066_v17 = vmax.f32 %v971_v0, 0.0  ;;  %v1107_v20 = vpack.c.bf16 %v1065_v5, %v1063_v18  ;;  %v975_v49 = vadd.f32 %v974_v7, %v2131_v12 }
 0x23e   :  { %v976_v19 = vpop.f32.mrf.mxu1 }
 0x23f   :  { %v1108_v25 = vpack.c.bf16 %v1066_v17, %v1064_v9  ;;  %v977_v34 = vadd.f32 %v976_v19, %v2128_v47  ;;  %v1067_v31 = vmax.f32 %v975_v49, 0.0 }
 0x240   :  { %v978_v48 = vpop.f32.mrf.mxu1 }
 0x241   :  { %v979_v22 = vadd.f32 %v978_v48, %v2131_v12  ;;  %1365 = vmatprep.mubr.bf16.mxu0 %v1108_v25  ;;  %v1068_v29 = vmax.f32 %v977_v34, 0.0 }
 0x242   :  { %v980_v10 = vpop.f32.mrf.mxu1  ;;  %1366 = vmatmul.mubr.bf16.gmra.mxu0 %v1107_v20 }
 0x243   :  { %v981_v23 = vadd.f32 %v980_v10, %v2128_v47  ;;  %v1069_v16 = vmax.f32 %v979_v22, 0.0 }
 0x244   :  { %v984_v26 = vpop.f32.mrf.mxu1 }
 0x245   :  { %v1070_v30 = vmax.f32 %v981_v23, 0.0  ;;  %v1109_v32 = vpack.c.bf16 %v1069_v16, %v1067_v31  ;;  %v985_v35 = vadd.f32 %v984_v26, %v2131_v12  ;;  %v1151_v26 = vld [vmem:[%s2247_s6] sm:$0x1]  ;;  %s1904_s6 = smov [#allocation10]  }
 0x246   :  { %v986_v15 = vpop.f32.mrf.mxu1  ;;  %s1451_s25 = sshll.u32 %s1904_s6, 4  ;;  %s1452_s25 = int_to_ptr.vmem [resolvable:$true] %s1451_s25 }
 0x247   :  { %v1110_v27 = vpack.c.bf16 %v1070_v30, %v1068_v29  ;;  %v987_v37 = vadd.f32 %v986_v15, %v2128_v47  ;;  %v1071_v42 = vmax.f32 %v985_v35, 0.0  ;;  %v1152_v29 = vunpack.c.l.bf16 %v1151_v26  ;;  %s1867_s26 = scalar_lea.vmem %s1452_s25, 4096  ;;  %p1872_p7 = scmp.lt.s32.totalorder %s1452_s25, %s1452_s25 }
 0x248   :  { %v988_v33 = vpop.f32.mrf.mxu1  ;;  %p1868_p6 = scmp.ne.s32.totalorder %s1452_s25, %s1867_s26  ;;  %p1873_p8 = scmp.lt.s32.totalorder %s1867_s26, %s1867_s26 }
 0x249   :  { %v989_v8 = vadd.f32 %v988_v33, %v2131_v12  ;;  %1373 = vmatprep.mubr.bf16.mxu0 %v1110_v27  ;;  %v1072_v41 = vmax.f32 %v987_v37, 0.0 }
 0x24a   :  { %v990_v38 = vpop.f32.mrf.mxu1  ;;  %1374 = vmatmul.mubr.bf16.gmra.mxu0 %v1109_v32  ;;  %p1874_p9 = por %p1873_p8, %p1872_p7 }
 0x24b   :  { %v991_v28 = vadd.f32 %v990_v38, %v2128_v47  ;;  %v1073_v11 = vmax.f32 %v989_v8, 0.0 }
 0x24c   :  { %v994_v39 = vpop.f32.mrf.mxu1  ;;  %p1875_p10 = pnand %p1874_p9, %p1868_p6 }
 0x24d   :  { %v1074_v40 = vmax.f32 %v991_v28, 0.0  ;;  %v1111_v46 = vpack.c.bf16 %v1073_v11, %v1071_v42  ;;  %v995_v59 = vadd.f32 %v994_v39, %v2131_v12 }
 0x24e   :  { %v996_v43 = vpop.f32.mrf.mxu1 }
 0x24f   :  { %v1112_v45 = vpack.c.bf16 %v1074_v40, %v1072_v41  ;;  %v997_v13 = vadd.f32 %v996_v43, %v2128_v47  ;;  %v1075_v55 = vmax.f32 %v995_v59, 0.0 }
 0x250   :  { %v998_v53 = vpop.f32.mrf.mxu1 }
 0x251   :  { %v999_v50 = vadd.f32 %v998_v53, %v2131_v12  ;;  %1381 = vmatprep.mubr.bf16.mxu0 %v1112_v45  ;;  %v1076_v52 = vmax.f32 %v997_v13, 0.0 }
 0x252   :  { %v1000_v51 = vpop.f32.mrf.mxu1  ;;  %1382 = vmatmul.mubr.bf16.gmra.mxu0 %v1111_v46 }
 0x253   :  { %v1001_v24 = vadd.f32 %v1000_v51, %v2128_v47  ;;  %v1077_v3 = vmax.f32 %v999_v50, 0.0 }
 0x254   :  { %v1004_v4 = vpop.f32.mrf.mxu1 }
 0x255   :  { %v1078_v54 = vmax.f32 %v1001_v24, 0.0  ;;  %v1113_v57 = vpack.c.bf16 %v1077_v3, %v1075_v55  ;;  %v1005_v58 = vadd.f32 %v1004_v4, %v2131_v12 }
 0x256   :  { %v1006_v56 = vpop.f32.mrf.mxu1 }
 0x257   :  { %v1114_v14 = vpack.c.bf16 %v1078_v54, %v1076_v52  ;;  %v1007_v60 = vadd.f32 %v1006_v56, %v2128_v47  ;;  %v1079_v0 = vmax.f32 %v1005_v58, 0.0 }
 0x258   :  { %v1008_v21 = vpop.f32.mrf.mxu1 }
 0x259   :  { %v1009_v36 = vadd.f32 %v1008_v21, %v2131_v12  ;;  %1389 = vmatprep.mubr.bf16.mxu0 %v1114_v14  ;;  %v1080_v1 = vmax.f32 %v1007_v60, 0.0 }
 0x25a   :  { %v1010_v61 = vpop.f32.mrf.mxu1  ;;  %1390 = vmatmul.mubr.bf16.gmra.mxu0 %v1113_v57 }
 0x25b   :  { %v1011_v44 = vadd.f32 %v1010_v61, %v2128_v47  ;;  %v1081_v62 = vmax.f32 %v1009_v36, 0.0 }
 0x25c   :  { %v1014_v63 = vpop.f32.mrf.mxu1 }
 0x25d   :  { %v1082_v2 = vmax.f32 %v1011_v44, 0.0  ;;  %v1115_v9 = vpack.c.bf16 %v1081_v62, %v1079_v0  ;;  %v1015_v25 = vadd.f32 %v1014_v63, %v2131_v12 }
 0x25e   :  { %v1016_v5 = vpop.f32.mrf.mxu1 }
 0x25f   :  { %v1116_v7 = vpack.c.bf16 %v1082_v2, %v1080_v1  ;;  %v1017_v18 = vadd.f32 %v1016_v5, %v2128_v47  ;;  %v1083_v10 = vmax.f32 %v1015_v25, 0.0 }
 0x260   :  { %v1018_v17 = vpop.f32.mrf.mxu1 }
 0x261   :  { %v1019_v19 = vadd.f32 %v1018_v17, %v2131_v12  ;;  %1397 = vmatprep.mubr.bf16.mxu0 %v1116_v7  ;;  %v1084_v22 = vmax.f32 %v1017_v18, 0.0  ;;  %v2201_v12 = vrot.slane %v1152_v29, %v1986_v6 }
 0x262   :  { %v1020_v20 = vpop.f32.mrf.mxu1  ;;  %1398 = vmatmul.mubr.bf16.gmra.mxu0 %v1115_v9 }
 0x263   :  { %v1021_v48 = vadd.f32 %v1020_v20, %v2128_v47  ;;  %v1085_v34 = vmax.f32 %v1019_v19, 0.0 }
 0x265   :  { %v1086_v49 = vmax.f32 %v1021_v48, 0.0  ;;  %v1117_v16 = vpack.c.bf16 %v1085_v34, %v1083_v10 }
 0x267   :  { %v1118_v23 = vpack.c.bf16 %v1086_v49, %v1084_v22 }
 0x269   :  { %1405 = vmatprep.mubr.bf16.mxu0 %v1118_v23 }
 0x26a   :  { %1406 = vmatmul.mubr.bf16.gmra.mxu0 %v1117_v16 }
 0x2b2   :  { %v1561_v30 = vpop.f32.mrf.mxu0 }
 0x2b4   :  { %v1562_v31 = vpop.f32.mrf.mxu0 }
 0x2b5   :  { %v1563_v15 = vadd.f32 %v1562_v31, %v1561_v30 }
 0x2b6   :  { %v1564_v47 = vpop.f32.mrf.mxu0 }
 0x2b7   :  { %v1288_v27 = vadd.f32 %v1563_v15, %v2201_v12 }
 0x2b8   :  { %v1565_v32 = vpop.f32.mrf.mxu0 }
 0x2b9   :  { %1414 = vst [vmem:[#allocation10] sm:$0xff] %v1288_v27  ;;  %v1566_v33 = vadd.f32 %v1565_v32, %v1564_v47 }
 0x2ba   :  { %v1567_v37 = vpop.f32.mrf.mxu0 }
 0x2bb   :  { %v1291_v8 = vadd.f32 %v1566_v33, %v2201_v12 }
 0x2bc   :  { %v1568_v35 = vpop.f32.mrf.mxu0 }
 0x2bd   :  { %1415 = vst [vmem:[#allocation10 + $0x8] sm:$0xff] %v1291_v8  ;;  %v1569_v38 = vadd.f32 %v1568_v35, %v1567_v37 }
 0x2be   :  { %v1570_v28 = vpop.f32.mrf.mxu0 }
 0x2bf   :  { %v1296_v11 = vadd.f32 %v1569_v38, %v2201_v12 }
 0x2c0   :  { %v1571_v39 = vpop.f32.mrf.mxu0 }
 0x2c1   :  { %1416 = vst [vmem:[#allocation10 + $0x10] sm:$0xff] %v1296_v11  ;;  %v1572_v6 = vadd.f32 %v1571_v39, %v1570_v28 }
 0x2c2   :  { %v1573_v41 = vpop.f32.mrf.mxu0 }
 0x2c3   :  { %v1299_v40 = vadd.f32 %v1572_v6, %v2201_v12 }
 0x2c4   :  { %v1574_v42 = vpop.f32.mrf.mxu0 }
 0x2c5   :  { %1417 = vst [vmem:[#allocation10 + $0x18] sm:$0xff] %v1299_v40  ;;  %v1575_v43 = vadd.f32 %v1574_v42, %v1573_v41 }
 0x2c6   :  { %v1576_v45 = vpop.f32.mrf.mxu0 }
 0x2c7   :  { %v1304_v46 = vadd.f32 %v1575_v43, %v2201_v12 }
 0x2c8   :  { %v1577_v53 = vpop.f32.mrf.mxu0 }
 0x2c9   :  { %1418 = vst [vmem:[#allocation10 + $0x20] sm:$0xff] %v1304_v46  ;;  %v1578_v13 = vadd.f32 %v1577_v53, %v1576_v45 }
 0x2ca   :  { %v1579_v50 = vpop.f32.mrf.mxu0 }
 0x2cb   :  { %v1307_v59 = vadd.f32 %v1578_v13, %v2201_v12 }
 0x2cc   :  { %v1580_v51 = vpop.f32.mrf.mxu0 }
 0x2cd   :  { %1419 = vst [vmem:[#allocation10 + $0x28] sm:$0xff] %v1307_v59  ;;  %v1581_v24 = vadd.f32 %v1580_v51, %v1579_v50 }
 0x2ce   :  { %v1582_v3 = vpop.f32.mrf.mxu0 }
 0x2cf   :  { %v1312_v4 = vadd.f32 %v1581_v24, %v2201_v12 }
 0x2d0   :  { %v1583_v52 = vpop.f32.mrf.mxu0 }
 0x2d1   :  { %1420 = vst [vmem:[#allocation10 + $0x30] sm:$0xff] %v1312_v4  ;;  %v1584_v54 = vadd.f32 %v1583_v52, %v1582_v3 }
 0x2d2   :  { %v1585_v55 = vpop.f32.mrf.mxu0 }
 0x2d3   :  { %v1315_v56 = vadd.f32 %v1584_v54, %v2201_v12 }
 0x2d4   :  { %v1586_v14 = vpop.f32.mrf.mxu0 }
 0x2d5   :  { %1421 = vst [vmem:[#allocation10 + $0x38] sm:$0xff] %v1315_v56  ;;  %v1587_v57 = vadd.f32 %v1586_v14, %v1585_v55 }
 0x2d6   :  { %v1588_v21 = vpop.f32.mrf.mxu0 }
 0x2d7   :  { %v1320_v60 = vadd.f32 %v1587_v57, %v2201_v12 }
 0x2d8   :  { %v1589_v36 = vpop.f32.mrf.mxu0 }
 0x2d9   :  { %1422 = vst [vmem:[#allocation10 + $0x40] sm:$0xff] %v1320_v60  ;;  %v1590_v58 = vadd.f32 %v1589_v36, %v1588_v21 }
 0x2da   :  { %v1591_v61 = vpop.f32.mrf.mxu0 }
 0x2db   :  { %v1323_v44 = vadd.f32 %v1590_v58, %v2201_v12 }
 0x2dc   :  { %v1592_v62 = vpop.f32.mrf.mxu0 }
 0x2dd   :  { %1423 = vst [vmem:[#allocation10 + $0x48] sm:$0xff] %v1323_v44  ;;  %v1593_v63 = vadd.f32 %v1592_v62, %v1591_v61 }
 0x2de   :  { %v1594_v1 = vpop.f32.mrf.mxu0 }
 0x2df   :  { %v1328_v2 = vadd.f32 %v1593_v63, %v2201_v12 }
 0x2e0   :  { %v1595_v0 = vpop.f32.mrf.mxu0 }
 0x2e1   :  { %1424 = vst [vmem:[#allocation10 + $0x50] sm:$0xff] %v1328_v2  ;;  %v1596_v5 = vadd.f32 %v1595_v0, %v1594_v1 }
 0x2e2   :  { %v1597_v7 = vpop.f32.mrf.mxu0 }
 0x2e3   :  { %v1331_v9 = vadd.f32 %v1596_v5, %v2201_v12 }
 0x2e4   :  { %v1598_v17 = vpop.f32.mrf.mxu0 }
 0x2e5   :  { %1425 = vst [vmem:[#allocation10 + $0x58] sm:$0xff] %v1331_v9  ;;  %v1599_v18 = vadd.f32 %v1598_v17, %v1597_v7 }
 0x2e6   :  { %v1600_v19 = vpop.f32.mrf.mxu0 }
 0x2e7   :  { %v1336_v25 = vadd.f32 %v1599_v18, %v2201_v12 }
 0x2e8   :  { %v1601_v20 = vpop.f32.mrf.mxu0 }
 0x2e9   :  { %1426 = vst [vmem:[#allocation10 + $0x60] sm:$0xff] %v1336_v25  ;;  %v1602_v48 = vadd.f32 %v1601_v20, %v1600_v19 }
 0x2ea   :  { %v1603_v34 = vpop.f32.mrf.mxu0 }
 0x2eb   :  { %v1339_v22 = vadd.f32 %v1602_v48, %v2201_v12 }
 0x2ec   :  { %v1604_v49 = vpop.f32.mrf.mxu0 }
 0x2ed   :  { %1427 = vst [vmem:[#allocation10 + $0x68] sm:$0xff] %v1339_v22  ;;  %v1605_v10 = vadd.f32 %v1604_v49, %v1603_v34 }
 0x2ee   :  { %v1606_v23 = vpop.f32.mrf.mxu0 }
 0x2ef   :  { %v1344_v16 = vadd.f32 %v1605_v10, %v2201_v12 }
 0x2f0   :  { %v1607_v26 = vpop.f32.mrf.mxu0 }
 0x2f1   :  { %1428 = vst [vmem:[#allocation10 + $0x70] sm:$0xff] %v1344_v16  ;;  %v1608_v29 = vadd.f32 %v1607_v26, %v1606_v23 }
 0x2f2   :  { %v1609_v30 = vpop.f32.mrf.mxu0 }
 0x2f3   :  { %v1347_v31 = vadd.f32 %v1608_v29, %v2201_v12 }
 0x2f4   :  { %v1610_v15 = vpop.f32.mrf.mxu0 }
 0x2f5   :  { %1429 = vst [vmem:[#allocation10 + $0x78] sm:$0xff] %v1347_v31  ;;  %v1611_v47 = vadd.f32 %v1610_v15, %v1609_v30 }
 0x2f6   :  { %v1612_v27 = vpop.f32.mrf.mxu0 }
 0x2f7   :  { %v1352_v32 = vadd.f32 %v1611_v47, %v2201_v12 }
 0x2f8   :  { %v1613_v33 = vpop.f32.mrf.mxu0 }
 0x2f9   :  { %1430 = vst [vmem:[#allocation10 + $0x80] sm:$0xff] %v1352_v32  ;;  %v1614_v37 = vadd.f32 %v1613_v33, %v1612_v27 }
 0x2fa   :  { %v1615_v8 = vpop.f32.mrf.mxu0 }
 0x2fb   :  { %v1355_v35 = vadd.f32 %v1614_v37, %v2201_v12 }
 0x2fc   :  { %v1616_v38 = vpop.f32.mrf.mxu0 }
 0x2fd   :  { %1431 = vst [vmem:[#allocation10 + $0x88] sm:$0xff] %v1355_v35  ;;  %v1617_v28 = vadd.f32 %v1616_v38, %v1615_v8 }
 0x2fe   :  { %v1618_v11 = vpop.f32.mrf.mxu0 }
 0x2ff   :  { %v1360_v39 = vadd.f32 %v1617_v28, %v2201_v12 }
 0x300   :  { %v1619_v6 = vpop.f32.mrf.mxu0 }
 0x301   :  { %1432 = vst [vmem:[#allocation10 + $0x90] sm:$0xff] %v1360_v39  ;;  %v1620_v41 = vadd.f32 %v1619_v6, %v1618_v11 }
 0x302   :  { %v1621_v40 = vpop.f32.mrf.mxu0 }
 0x303   :  { %v1363_v42 = vadd.f32 %v1620_v41, %v2201_v12 }
 0x304   :  { %v1622_v43 = vpop.f32.mrf.mxu0 }
 0x305   :  { %1433 = vst [vmem:[#allocation10 + $0x98] sm:$0xff] %v1363_v42  ;;  %v1623_v45 = vadd.f32 %v1622_v43, %v1621_v40 }
 0x306   :  { %v1624_v46 = vpop.f32.mrf.mxu0 }
 0x307   :  { %v1368_v53 = vadd.f32 %v1623_v45, %v2201_v12 }
 0x308   :  { %v1625_v13 = vpop.f32.mrf.mxu0 }
 0x309   :  { %1434 = vst [vmem:[#allocation10 + $0xa0] sm:$0xff] %v1368_v53  ;;  %v1626_v50 = vadd.f32 %v1625_v13, %v1624_v46 }
 0x30a   :  { %v1627_v59 = vpop.f32.mrf.mxu0 }
 0x30b   :  { %v1371_v51 = vadd.f32 %v1626_v50, %v2201_v12 }
 0x30c   :  { %v1628_v24 = vpop.f32.mrf.mxu0 }
 0x30d   :  { %1435 = vst [vmem:[#allocation10 + $0xa8] sm:$0xff] %v1371_v51  ;;  %v1629_v3 = vadd.f32 %v1628_v24, %v1627_v59 }
 0x30e   :  { %v1630_v4 = vpop.f32.mrf.mxu0 }
 0x30f   :  { %v1376_v52 = vadd.f32 %v1629_v3, %v2201_v12 }
 0x310   :  { %v1631_v54 = vpop.f32.mrf.mxu0 }
 0x311   :  { %1436 = vst [vmem:[#allocation10 + $0xb0] sm:$0xff] %v1376_v52  ;;  %v1632_v55 = vadd.f32 %v1631_v54, %v1630_v4 }
 0x312   :  { %v1633_v56 = vpop.f32.mrf.mxu0 }
 0x313   :  { %v1379_v14 = vadd.f32 %v1632_v55, %v2201_v12 }
 0x314   :  { %v1634_v57 = vpop.f32.mrf.mxu0 }
 0x315   :  { %1437 = vst [vmem:[#allocation10 + $0xb8] sm:$0xff] %v1379_v14  ;;  %v1635_v21 = vadd.f32 %v1634_v57, %v1633_v56 }
 0x316   :  { %v1636_v60 = vpop.f32.mrf.mxu0 }
 0x317   :  { %v1384_v36 = vadd.f32 %v1635_v21, %v2201_v12 }
 0x318   :  { %v1637_v58 = vpop.f32.mrf.mxu0 }
 0x319   :  { %1438 = vst [vmem:[#allocation10 + $0xc0] sm:$0xff] %v1384_v36  ;;  %v1638_v61 = vadd.f32 %v1637_v58, %v1636_v60 }
 0x31a   :  { %v1639_v44 = vpop.f32.mrf.mxu0 }
 0x31b   :  { %v1387_v62 = vadd.f32 %v1638_v61, %v2201_v12 }
 0x31c   :  { %v1640_v63 = vpop.f32.mrf.mxu0 }
 0x31d   :  { %1439 = vst [vmem:[#allocation10 + $0xc8] sm:$0xff] %v1387_v62  ;;  %v1641_v1 = vadd.f32 %v1640_v63, %v1639_v44 }
 0x31e   :  { %v1642_v2 = vpop.f32.mrf.mxu0 }
 0x31f   :  { %v1392_v0 = vadd.f32 %v1641_v1, %v2201_v12 }
 0x320   :  { %v1643_v5 = vpop.f32.mrf.mxu0 }
 0x321   :  { %1440 = vst [vmem:[#allocation10 + $0xd0] sm:$0xff] %v1392_v0  ;;  %v1644_v7 = vadd.f32 %v1643_v5, %v1642_v2 }
 0x322   :  { %v1645_v9 = vpop.f32.mrf.mxu0 }
 0x323   :  { %v1395_v17 = vadd.f32 %v1644_v7, %v2201_v12 }
 0x324   :  { %v1646_v18 = vpop.f32.mrf.mxu0 }
 0x325   :  { %1441 = vst [vmem:[#allocation10 + $0xd8] sm:$0xff] %v1395_v17  ;;  %v1647_v19 = vadd.f32 %v1646_v18, %v1645_v9 }
 0x326   :  { %v1648_v25 = vpop.f32.mrf.mxu0 }
 0x327   :  { %v1400_v20 = vadd.f32 %v1647_v19, %v2201_v12 }
 0x328   :  { %v1649_v48 = vpop.f32.mrf.mxu0 }
 0x329   :  { %1442 = vst [vmem:[#allocation10 + $0xe0] sm:$0xff] %v1400_v20  ;;  %v1650_v34 = vadd.f32 %v1649_v48, %v1648_v25 }
 0x32a   :  { %v1651_v22 = vpop.f32.mrf.mxu0 }
 0x32b   :  { %v1403_v49 = vadd.f32 %v1650_v34, %v2201_v12 }
 0x32c   :  { %v1652_v10 = vpop.f32.mrf.mxu0 }
 0x32d   :  { %1443 = vst [vmem:[#allocation10 + $0xe8] sm:$0xff] %v1403_v49  ;;  %v1653_v23 = vadd.f32 %v1652_v10, %v1651_v22 }
 0x32e   :  { %v1654_v16 = vpop.f32.mrf.mxu0 }
 0x32f   :  { %v1408_v26 = vadd.f32 %v1653_v23, %v2201_v12 }
 0x330   :  { %v1655_v29 = vpop.f32.mrf.mxu0 }
 0x331   :  { %1444 = vst [vmem:[#allocation10 + $0xf0] sm:$0xff] %v1408_v26  ;;  %v1656_v30 = vadd.f32 %v1655_v29, %v1654_v16 }
 0x333   :  { %v1411_v31 = vadd.f32 %v1656_v30, %v2201_v12 }
 0x335   :  { %1445 = vst [vmem:[#allocation10 + $0xf8] sm:$0xff] %v1411_v31 }
 0x336   :  { %1878 = shalt.err (!%p1875_p10)
}
 0x337   :  { %1457 = dma.vmem_to_hbm [thread:$0]  %s1452_s25, 4096, %s2248_s7, [#allocation4], %s1896_s27, %s1896_s27, %s1897_s28  }
 0x338   :  { %1893 = dma.done.wait [#allocation4], 4096  }
 0x339   :  { %1894 = vsyncadd [#allocation4], 4294963200 }
 0x33a   :  { %1461 = vsyncpa [#allocation3], 1 }
 0x33b   :  { %1462 = vsyncpa [#allocation6], 1 }
 0x33c   :  { %1463 = vsyncpa [#allocation9], 1 }
 0x33d   :  { %1464 = vsyncpa [#allocation4], 1 }

// kernel: tpu_custom_call.1
= control target key start
LH: loop header
LB: loop body
LE: loop exit
PB: predicated region body
PF: predicated region fallthrough
CT: control target
= control target key end

     0   :  { %12 = vsyncpa [#allocation3], 0  ;;  %s2241_s0 = inlined_call_operand.hbm [shape: bf16[256,128], index: 0, kind: input, shape index: {}]   ;;  %s2242_s1 = inlined_call_operand.hbm [shape: bf16[128,256], index: 1, kind: input, shape index: {}]   ;;  %s2243_s2 = inlined_call_operand.vmem [shape: bf16[1,256], index: 2, kind: input, shape index: {}]   ;;  %s2244_s3 = inlined_call_operand.hbm [shape: bf16[256,256], index: 3, kind: input, shape index: {}]   ;;  %s2245_s4 = inlined_call_operand.vmem [shape: bf16[1,256], index: 4, kind: input, shape index: {}]   ;;  %s2246_s5 = inlined_call_operand.hbm [shape: bf16[256,128], index: 5, kind: input, shape index: {}]   ;;  %s2247_s6 = inlined_call_operand.vmem [shape: bf16[1,128], index: 6, kind: input, shape index: {}]   ;;  %s2248_s7 = inlined_call_operand.hbm [shape: f32[256,128], index: 7, kind: output, shape index: {}]  }
   0x1   :  { %13 = vsyncpa [#allocation6], 0 }
   0x2   :  { %14 = vsyncpa [#allocation9], 0 }
   0x3   :  { %15 = vsyncpa [#allocation4], 0  ;;  %s1895_s24 = smov [#allocation5]  }
   0x4   :  { %s33_s25 = sshll.u32 %s1895_s24, 4  ;;  %s34_s25 = int_to_ptr.vmem [resolvable:$true] %s33_s25 }
   0x5   :  { %s1795_s26 = scalar_lea.vmem %s34_s25, 2048  ;;  %p1800_p1 = scmp.lt.s32.totalorder %s34_s25, %s34_s25 }
   0x6   :  { %p1796_p0 = scmp.ne.s32.totalorder %s34_s25, %s1795_s26  ;;  %p1801_p2 = scmp.lt.s32.totalorder %s1795_s26, %s1795_s26 }
   0x8   :  { %p1802_p3 = por %p1801_p2, %p1800_p1 }
   0xa   :  { %p1803_p4 = pnand %p1802_p3, %p1796_p0 }
   0xc   :  { %1806 = shalt.err (!%p1803_p4)
}
   0xd   :  { %s1896_s27 = smov 128   ;;  %s1897_s28 = smov 8  }
   0xe   :  { %39 = dma.hbm_to_vmem [thread:$0]  %s2242_s1, 2048, %s34_s25, [#allocation6], %s1896_s27, %s1896_s27, %s1897_s28  }
   0xf   :  { %s1898_s8 = smov [#allocation2]  }
  0x10   :  { %s21_s9 = sshll.u32 %s1898_s8, 4  ;;  %s22_s9 = int_to_ptr.vmem [resolvable:$true] %s21_s9 }
  0x11   :  { %s1815_s10 = scalar_lea.vmem %s22_s9, 2048  ;;  %p1820_p6 = scmp.lt.s32.totalorder %s22_s9, %s22_s9 }
  0x12   :  { %p1816_p5 = scmp.ne.s32.totalorder %s22_s9, %s1815_s10  ;;  %p1821_p7 = scmp.lt.s32.totalorder %s1815_s10, %s1815_s10 }
  0x14   :  { %p1822_p8 = por %p1821_p7, %p1820_p6 }
  0x16   :  { %p1823_p9 = pnand %p1822_p8, %p1816_p5 }
  0x18   :  { %1826 = shalt.err (!%p1823_p9)
}
  0x19   :  { %s1899_s11 = smov 64   ;;  %s1900_s12 = smov 4  }
  0x1a   :  { %27 = dma.hbm_to_vmem [thread:$0]  %s2241_s0, 2048, %s22_s9, [#allocation3], %s1899_s11, %s1899_s11, %s1900_s12  }
  0x1b   :  { %s1901_s15 = smov [#allocation7]   ;;  %s1902_s17 = smov [#allocation8]  }
  0x1c   :  { %s47_s16 = sshll.u32 %s1901_s15, 4  ;;  %s61_s1 = sshll.u32 %s1902_s17, 4  ;;  %s48_s16 = int_to_ptr.vmem [resolvable:$true] %s47_s16  ;;  %s62_s1 = int_to_ptr.vmem [resolvable:$true] %s61_s1 }
  0x1d   :  { %s1835_s18 = scalar_lea.vmem %s48_s16, 4096  ;;  %p1840_p11 = scmp.lt.s32.totalorder %s48_s16, %s48_s16 }
  0x1e   :  { %p1836_p10 = scmp.ne.s32.totalorder %s48_s16, %s1835_s18  ;;  %p1841_p12 = scmp.lt.s32.totalorder %s1835_s18, %s1835_s18 }
  0x20   :  { %p1842_p13 = por %p1841_p12, %p1840_p11 }
  0x22   :  { %p1843_p0 = pnand %p1842_p13, %p1836_p10 }
  0x24   :  { %1846 = shalt.err (!%p1843_p0)
}
  0x25   :  { %53 = dma.hbm_to_vmem [thread:$0]  %s2244_s3, 4096, %s48_s16, [#allocation6], %s1896_s27, %s1896_s27, %s1897_s28  }
  0x26   :  { %s1855_s0 = scalar_lea.vmem %s62_s1, 2048  ;;  %p1860_p2 = scmp.lt.s32.totalorder %s62_s1, %s62_s1 }
  0x27   :  { %p1856_p1 = scmp.ne.s32.totalorder %s62_s1, %s1855_s0  ;;  %p1861_p3 = scmp.lt.s32.totalorder %s1855_s0, %s1855_s0 }
  0x29   :  { %p1862_p4 = por %p1861_p3, %p1860_p2 }
  0x2b   :  { %p1863_p5 = pnand %p1862_p4, %p1856_p1 }
  0x2d   :  { %1866 = shalt.err (!%p1863_p5)
}
  0x2e   :  { %67 = dma.hbm_to_vmem [thread:$0]  %s2246_s5, 2048, %s62_s1, [#allocation9], %s1899_s11, %s1899_s11, %s1900_s12  }
  0x2f   :  { %1887 = dma.done.wait [#allocation3], 2048  }
  0x30   :  { %1888 = vsyncadd [#allocation3], 4294965248 }
  0x31   :  { %1889 = dma.done.wait [#allocation6], 6144  }
  0x32   :  { %1890 = vsyncadd [#allocation6], 4294961152 }
  0x33   :  { %1891 = dma.done.wait [#allocation9], 2048  }
  0x34   :  { %1892 = vsyncadd [#allocation9], 4294965248  ;;  %v1903_v0 = vmov 0   ;;  %v1683_v1 = vld [vmem:[#allocation5 + $0x74] ss:$8 sps:$4 sm:$0xff]   ;;  %v1707_v18 = vld [vmem:[#allocation2] sm:$0xff]  }
  0x35   :  { %360 = vmatprep.mubr.bf16.mxu0 %v1903_v0  ;;  %440 = vmatprep.mubr.bf16.mxu1 %v1903_v0  ;;  %v1685_v2 = vld [vmem:[#allocation5 + $0x70] ss:$8 sps:$4 sm:$0xff]   ;;  %v1686_v3 = vld [vmem:[#allocation5 + $0x64] ss:$8 sps:$4 sm:$0xff]   ;;  %v1688_v4 = vld [vmem:[#allocation5 + $0x60] ss:$8 sps:$4 sm:$0xff]  }
  0x36   :  { %328 = vmatprep.subr.bf16.mxu0 %v1683_v1  ;;  %1657 = vmatprep.subr.bf16.mxu1 %v1683_v1  ;;  %v1689_v5 = vld [vmem:[#allocation5 + $0x54] ss:$8 sps:$4 sm:$0xff]   ;;  %v1691_v6 = vld [vmem:[#allocation5 + $0x50] ss:$8 sps:$4 sm:$0xff]   ;;  %v1692_v7 = vld [vmem:[#allocation5 + $0x44] ss:$8 sps:$4 sm:$0xff]  }
  0x37   :  { %329 = vmatpush1.bf16.msra.mxu0 %v1685_v2  ;;  %1665 = vmatpush1.bf16.msra.mxu1 %v1685_v2  ;;  %v1694_v8 = vld [vmem:[#allocation5 + $0x40] ss:$8 sps:$4 sm:$0xff]   ;;  %v1695_v9 = vld [vmem:[#allocation5 + $0x34] ss:$8 sps:$4 sm:$0xff]   ;;  %v1697_v10 = vld [vmem:[#allocation5 + $0x30] ss:$8 sps:$4 sm:$0xff]   ;;  %v134_v2 = vlaneseq }
  0x38   :  { %330 = vmatprep.subr.bf16.mxu0 %v1686_v3  ;;  %1658 = vmatprep.subr.bf16.mxu1 %v1686_v3  ;;  %v1698_v11 = vld [vmem:[#allocation5 + $0x24] ss:$8 sps:$4 sm:$0xff]   ;;  %v1700_v12 = vld [vmem:[#allocation5 + $0x20] ss:$8 sps:$4 sm:$0xff]   ;;  %v1701_v13 = vld [vmem:[#allocation5 + $0x14] ss:$8 sps:$4 sm:$0xff]  }
  0x39   :  { %v1703_v14 = vld [vmem:[#allocation5 + $0x10] ss:$8 sps:$4 sm:$0xff]   ;;  %v1704_v15 = vld [vmem:[#allocation5 + $0x4] ss:$8 sps:$4 sm:$0xff]   ;;  %v1706_v16 = vld [vmem:[#allocation5] ss:$8 sps:$4 sm:$0xff]  }
  0x3a   :  { %v1725_v17 = vld [vmem:[#allocation7 + $0x74] ss:$8 sps:$4 sm:$0xff]   ;;  %v1715_v19 = vld [vmem:[#allocation2 + $0x40] sm:$0xff]   ;;  %v1723_v20 = vld [vmem:[#allocation7 + $0x70] ss:$8 sps:$4 sm:$0xff]   ;;  %v1979_v3 = vshrl.u32 %v134_v2, 7 }
  0x3b   :  { %331 = vmatpush1.bf16.msra.mxu0 %v1688_v4  ;;  %1666 = vmatpush1.bf16.msra.mxu1 %v1688_v4  ;;  %v1728_v21 = vld [vmem:[#allocation7 + $0x64] ss:$8 sps:$4 sm:$0xff]   ;;  %v1726_v22 = vld [vmem:[#allocation7 + $0x60] ss:$8 sps:$4 sm:$0xff]   ;;  %v1731_v23 = vld [vmem:[#allocation7 + $0x54] ss:$8 sps:$4 sm:$0xff]  }
  0x3c   :  { %332 = vmatprep.subr.bf16.mxu0 %v1689_v5  ;;  %1659 = vmatprep.subr.bf16.mxu1 %v1689_v5  ;;  %v1708_v24 = vld [vmem:[#allocation2 + $0x8] sm:$0xff]   ;;  %v1729_v26 = vld [vmem:[#allocation7 + $0x50] ss:$8 sps:$4 sm:$0xff]   ;;  %v1737_v31 = vld [vmem:[#allocation7 + $0x34] ss:$8 sps:$4 sm:$0xff]   ;;  %v140_v4 = vsub.s32 2, %v1979_v3 }
  0x3d   :  { %v1716_v25 = vld [vmem:[#allocation2 + $0x48] sm:$0xff]   ;;  %v1709_v29 = vld [vmem:[#allocation2 + $0x10] sm:$0xff]   ;;  %v1710_v36 = vld [vmem:[#allocation2 + $0x18] sm:$0xff]  }
  0x3e   :  { %v1734_v27 = vld [vmem:[#allocation7 + $0x44] ss:$8 sps:$4 sm:$0xff]   ;;  %v1732_v28 = vld [vmem:[#allocation7 + $0x40] ss:$8 sps:$4 sm:$0xff]   ;;  %v1717_v30 = vld [vmem:[#allocation2 + $0x50] sm:$0xff]  }
  0x3f   :  { %333 = vmatpush1.bf16.msra.mxu0 %v1691_v6  ;;  %1667 = vmatpush1.bf16.msra.mxu1 %v1691_v6  ;;  %v1735_v32 = vld [vmem:[#allocation7 + $0x30] ss:$8 sps:$4 sm:$0xff]   ;;  %v1740_v33 = vld [vmem:[#allocation7 + $0x24] ss:$8 sps:$4 sm:$0xff]   ;;  %v1738_v34 = vld [vmem:[#allocation7 + $0x20] ss:$8 sps:$4 sm:$0xff]  }
  0x40   :  { %334 = vmatprep.subr.bf16.mxu0 %v1692_v7  ;;  %1660 = vmatprep.subr.bf16.mxu1 %v1692_v7  ;;  %v1743_v35 = vld [vmem:[#allocation7 + $0x14] ss:$8 sps:$4 sm:$0xff]   ;;  %v1741_v38 = vld [vmem:[#allocation7 + $0x10] ss:$8 sps:$4 sm:$0xff]   ;;  %v1746_v39 = vld [vmem:[#allocation7 + $0x4] ss:$8 sps:$4 sm:$0xff]  }
  0x41   :  { %v1718_v37 = vld [vmem:[#allocation2 + $0x58] sm:$0xff]   ;;  %v1744_v40 = vld [vmem:[#allocation7] ss:$8 sps:$4 sm:$0xff]   ;;  %v1752_v45 = vld [vmem:[#allocation7 + $0xe4] ss:$8 sps:$4 sm:$0xff]   ;;  %v1986_v6 = vsub.s32 0, %v1979_v3 }
  0x42   :  { %v1749_v41 = vld [vmem:[#allocation7 + $0xf4] ss:$8 sps:$4 sm:$0xff]   ;;  %v1711_v42 = vld [vmem:[#allocation2 + $0x20] sm:$0xff]   ;;  %v1747_v44 = vld [vmem:[#allocation7 + $0xf0] ss:$8 sps:$4 sm:$0xff]  }
  0x43   :  { %335 = vmatpush1.bf16.msra.mxu0 %v1694_v8  ;;  %1668 = vmatpush1.bf16.msra.mxu1 %v1694_v8  ;;  %v1719_v43 = vld [vmem:[#allocation2 + $0x60] sm:$0xff]   ;;  %v1755_v47 = vld [vmem:[#allocation7 + $0xd4] ss:$8 sps:$4 sm:$0xff]   ;;  %v1712_v48 = vld [vmem:[#allocation2 + $0x28] sm:$0xff]  }
  0x44   :  { %336 = vmatprep.subr.bf16.mxu0 %v1695_v9  ;;  %1661 = vmatprep.subr.bf16.mxu1 %v1695_v9  ;;  %v1750_v46 = vld [vmem:[#allocation7 + $0xe0] ss:$8 sps:$4 sm:$0xff]   ;;  %v1753_v50 = vld [vmem:[#allocation7 + $0xd0] ss:$8 sps:$4 sm:$0xff]   ;;  %v1758_v51 = vld [vmem:[#allocation7 + $0xc4] ss:$8 sps:$4 sm:$0xff]  }
  0x45   :  { %v1720_v49 = vld [vmem:[#allocation2 + $0x68] sm:$0xff]   ;;  %v1761_v53 = vld [vmem:[#allocation7 + $0xb4] ss:$8 sps:$4 sm:$0xff]   ;;  %v1759_v56 = vld [vmem:[#allocation7 + $0xb0] ss:$8 sps:$4 sm:$0xff]  }
  0x46   :  { %v1756_v52 = vld [vmem:[#allocation7 + $0xc0] ss:$8 sps:$4 sm:$0xff]   ;;  %v1713_v54 = vld [vmem:[#allocation2 + $0x30] sm:$0xff]   ;;  %v1714_v57 = vld [vmem:[#allocation2 + $0x38] sm:$0xff]  }
  0x47   :  { %337 = vmatpush1.bf16.msra.mxu0 %v1697_v10  ;;  %1669 = vmatpush1.bf16.msra.mxu1 %v1697_v10  ;;  %v1721_v55 = vld [vmem:[#allocation2 + $0x70] sm:$0xff]   ;;  %v1722_v58 = vld [vmem:[#allocation2 + $0x78] sm:$0xff]   ;;  %v1764_v59 = vld [vmem:[#allocation7 + $0xa4] ss:$8 sps:$4 sm:$0xff]  }
  0x48   :  { %338 = vmatprep.subr.bf16.mxu0 %v1698_v11  ;;  %1662 = vmatprep.subr.bf16.mxu1 %v1698_v11  ;;  %v1762_v60 = vld [vmem:[#allocation7 + $0xa0] ss:$8 sps:$4 sm:$0xff]   ;;  %v1767_v61 = vld [vmem:[#allocation7 + $0x94] ss:$8 sps:$4 sm:$0xff]   ;;  %v1765_v62 = vld [vmem:[#allocation7 + $0x90] ss:$8 sps:$4 sm:$0xff]  }
  0x49   :  { %v1770_v63 = vld [vmem:[#allocation7 + $0x84] ss:$8 sps:$4 sm:$0xff]   ;;  %v1768_v1 = vld [vmem:[#allocation7 + $0x80] ss:$8 sps:$4 sm:$0xff]   ;;  %v1781_v2 = vld [vmem:[#allocation8 + $0x50] sm:$0xff]  }
  0x4b   :  { %339 = vmatpush1.bf16.msra.mxu0 %v1700_v12  ;;  %1670 = vmatpush1.bf16.msra.mxu1 %v1700_v12 }
  0x4c   :  { %340 = vmatprep.subr.bf16.mxu0 %v1701_v13  ;;  %1663 = vmatprep.subr.bf16.mxu1 %v1701_v13 }
  0x4f   :  { %341 = vmatpush1.bf16.msra.mxu0 %v1703_v14  ;;  %1671 = vmatpush1.bf16.msra.mxu1 %v1703_v14 }
  0x50   :  { %342 = vmatprep.subr.bf16.mxu0 %v1704_v15  ;;  %1664 = vmatprep.subr.bf16.mxu1 %v1704_v15 }
  0x53   :  { %343 = vmatpush1.bf16.msra.mxu0 %v1706_v16  ;;  %1672 = vmatpush1.bf16.msra.mxu1 %v1706_v16 }
  0x54   :  { %830 = vmatprep.subr.bf16.mxu1 %v1725_v17 }
  0x56   :  { %361 = vmatmul.mubr.bf16.vlgmr.msra.gmra.mxu0 %v1707_v18  ;;  %441 = vmatmul.mubr.bf16.vlgmr.msra.gmra.mxu1 %v1715_v19 }
  0x57   :  { %370 = vmatprep.mubr.bf16.mxu0 %v1903_v0  ;;  %450 = vmatprep.mubr.bf16.mxu1 %v1903_v0 }
  0x58   :  { %831 = vmatpush1.bf16.msra.mxu1 %v1723_v20 }
  0x59   :  { %832 = vmatprep.subr.bf16.mxu1 %v1728_v21 }
  0x5c   :  { %833 = vmatpush1.bf16.msra.mxu1 %v1726_v22  ;;  %v1771_v22 = vld [vmem:[#allocation8 + $0x78] sm:$0xff]  }
  0x5d   :  { %834 = vmatprep.subr.bf16.mxu1 %v1731_v23  ;;  %v1772_v23 = vld [vmem:[#allocation8 + $0x38] sm:$0xff]   ;;  %1545 = vmatprep.subr.bf16.mxu0 %v1771_v22 }
  0x5e   :  { %371 = vmatmul.mubr.bf16.gmra.mxu0 %v1708_v24  ;;  %451 = vmatmul.mubr.bf16.gmra.mxu1 %v1716_v25  ;;  %v1773_v24 = vld [vmem:[#allocation8 + $0x70] sm:$0xff]  }
  0x5f   :  { %380 = vmatprep.mubr.bf16.mxu0 %v1903_v0  ;;  %460 = vmatprep.mubr.bf16.mxu1 %v1903_v0 }
  0x60   :  { %835 = vmatpush1.bf16.msra.mxu1 %v1729_v26  ;;  %1546 = vmatpush3.bf16.msra.mxu0 %v1772_v23 }
  0x61   :  { %836 = vmatprep.subr.bf16.mxu1 %v1734_v27  ;;  %1547 = vmatprep.subr.bf16.mxu0 %v1773_v24 }
  0x64   :  { %837 = vmatpush1.bf16.msra.mxu1 %v1732_v28 }
  0x65   :  { %838 = vmatprep.subr.bf16.mxu1 %v1737_v31  ;;  %v1774_v31 = vld [vmem:[#allocation8 + $0x30] sm:$0xff]  }
  0x66   :  { %381 = vmatmul.mubr.bf16.gmra.mxu0 %v1709_v29  ;;  %461 = vmatmul.mubr.bf16.gmra.mxu1 %v1717_v30 }
  0x67   :  { %390 = vmatprep.mubr.bf16.mxu0 %v1903_v0  ;;  %470 = vmatprep.mubr.bf16.mxu1 %v1903_v0 }
  0x68   :  { %839 = vmatpush1.bf16.msra.mxu1 %v1735_v32  ;;  %1548 = vmatpush3.bf16.msra.mxu0 %v1774_v31 }
  0x69   :  { %840 = vmatprep.subr.bf16.mxu1 %v1740_v33 }
  0x6c   :  { %841 = vmatpush1.bf16.msra.mxu1 %v1738_v34 }
  0x6d   :  { %842 = vmatprep.subr.bf16.mxu1 %v1743_v35  ;;  %v1775_v35 = vld [vmem:[#allocation8 + $0x68] sm:$0xff]  }
  0x6e   :  { %391 = vmatmul.mubr.bf16.gmra.mxu0 %v1710_v36  ;;  %471 = vmatmul.mubr.bf16.gmra.mxu1 %v1718_v37 }
  0x6f   :  { %400 = vmatprep.mubr.bf16.mxu0 %v1903_v0  ;;  %480 = vmatprep.mubr.bf16.mxu1 %v1903_v0 }
  0x70   :  { %843 = vmatpush1.bf16.msra.mxu1 %v1741_v38  ;;  %1549 = vmatprep.subr.bf16.mxu0 %v1775_v35 }
  0x71   :  { %844 = vmatprep.subr.bf16.mxu1 %v1746_v39 }
  0x74   :  { %845 = vmatpush1.bf16.msra.mxu1 %v1744_v40 }
  0x75   :  { %846 = vmatprep.subr.bf16.mxu1 %v1749_v41 }
  0x76   :  { %401 = vmatmul.mubr.bf16.gmra.mxu0 %v1711_v42  ;;  %481 = vmatmul.mubr.bf16.gmra.mxu1 %v1719_v43  ;;  %v1776_v42 = vld [vmem:[#allocation8 + $0x28] sm:$0xff]  }
  0x77   :  { %410 = vmatprep.mubr.bf16.mxu0 %v1903_v0  ;;  %490 = vmatprep.mubr.bf16.mxu1 %v1903_v0 }
  0x78   :  { %847 = vmatpush2.bf16.msra.mxu1 %v1747_v44  ;;  %1550 = vmatpush3.bf16.msra.mxu0 %v1776_v42 }
  0x79   :  { %848 = vmatprep.subr.bf16.mxu1 %v1752_v45  ;;  %v1777_v45 = vld [vmem:[#allocation8 + $0x60] sm:$0xff]  }
  0x7a   :  { %1551 = vmatprep.subr.bf16.mxu0 %v1777_v45 }
  0x7c   :  { %849 = vmatpush2.bf16.msra.mxu1 %v1750_v46 }
  0x7d   :  { %850 = vmatprep.subr.bf16.mxu1 %v1755_v47 }
  0x7e   :  { %411 = vmatmul.mubr.bf16.gmra.mxu0 %v1712_v48  ;;  %491 = vmatmul.mubr.bf16.gmra.mxu1 %v1720_v49 }
  0x7f   :  { %420 = vmatprep.mubr.bf16.mxu0 %v1903_v0  ;;  %500 = vmatprep.mubr.bf16.mxu1 %v1903_v0 }
  0x80   :  { %851 = vmatpush2.bf16.msra.mxu1 %v1753_v50 }
  0x81   :  { %852 = vmatprep.subr.bf16.mxu1 %v1758_v51 }
  0x84   :  { %853 = vmatpush2.bf16.msra.mxu1 %v1756_v52  ;;  %v1778_v52 = vld [vmem:[#allocation8 + $0x20] sm:$0xff]  }
  0x85   :  { %854 = vmatprep.subr.bf16.mxu1 %v1761_v53  ;;  %1552 = vmatpush3.bf16.msra.mxu0 %v1778_v52 }
  0x86   :  { %421 = vmatmul.mubr.bf16.gmra.mxu0 %v1713_v54  ;;  %501 = vmatmul.mubr.bf16.gmra.mxu1 %v1721_v55  ;;  %v1779_v55 = vld [vmem:[#allocation8 + $0x58] sm:$0xff]  }
  0x87   :  { %430 = vmatprep.mubr.bf16.mxu0 %v1903_v0  ;;  %510 = vmatprep.mubr.bf16.mxu1 %v1903_v0  ;;  %v131_v0 = vld [vmem:[%s2243_s2] sm:$0x3] }
  0x88   :  { %855 = vmatpush2.bf16.msra.mxu1 %v1759_v56  ;;  %v132_v5 = vunpack.c.l.bf16 %v131_v0  ;;  %1553 = vmatprep.subr.bf16.mxu0 %v1779_v55 }
  0x89   :  { %856 = vmatprep.subr.bf16.mxu1 %v1764_v59 }
  0x8a   :  { %v141_v7 = vrot.slane %v132_v5, %v140_v4  ;;  %v137_v8 = vrot.slane %v132_v5, %v1986_v6 }
  0x8c   :  { %857 = vmatpush2.bf16.msra.mxu1 %v1762_v60  ;;  %v1994_v11 = vrot.slane %v141_v7, %v1986_v6  ;;  %v1997_v12 = vrot.slane %v137_v8, %v1986_v6 }
  0x8d   :  { %858 = vmatprep.subr.bf16.mxu1 %v1767_v61 }
  0x8e   :  { %431 = vmatmul.mubr.bf16.gmra.mxu0 %v1714_v57  ;;  %511 = vmatmul.mubr.bf16.gmra.mxu1 %v1722_v58 }
  0x90   :  { %859 = vmatpush2.bf16.msra.mxu1 %v1765_v62  ;;  %v1780_v62 = vld [vmem:[#allocation8 + $0x18] sm:$0xff]  }
  0x91   :  { %860 = vmatprep.subr.bf16.mxu1 %v1770_v63  ;;  %1554 = vmatpush3.bf16.msra.mxu0 %v1780_v62 }
  0x92   :  { %1555 = vmatprep.subr.bf16.mxu0 %v1781_v2 }
  0x94   :  { %861 = vmatpush2.bf16.msra.mxu1 %v1768_v1 }
 0x116   :  { %v362_v9 = vpop.f32.mrf.mxu0  ;;  %v1991_v10 = vpop.f32.mrf.mxu1 }
 0x117   :  { %v363_v19 = vadd.f32 %v362_v9, %v1997_v12 }
 0x118   :  { %v364_v13 = vpop.f32.mrf.mxu0  ;;  %v1999_v14 = vpop.f32.mrf.mxu1 }
 0x119   :  { %v365_v17 = vadd.f32 %v364_v13, %v1994_v11  ;;  %v521_v32 = vmax.f32 %v363_v19, 0.0  ;;  %v1783_v19 = vld [vmem:[#allocation8 + $0x48] sm:$0xff]  }
 0x11a   :  { %v366_v15 = vpop.f32.mrf.mxu0  ;;  %v2001_v16 = vpop.f32.mrf.mxu1 }
 0x11b   :  { %v367_v18 = vadd.f32 %v366_v15, %v1997_v12  ;;  %v522_v29 = vmax.f32 %v365_v17, 0.0  ;;  %v1782_v15 = vld [vmem:[#allocation8 + $0x10] sm:$0xff]  }
 0x11c   :  { %v368_v20 = vpop.f32.mrf.mxu0  ;;  %v2006_v21 = vpop.f32.mrf.mxu1  ;;  %1556 = vmatpush3.bf16.msra.mxu0 %v1782_v15 }
 0x11d   :  { %v369_v25 = vadd.f32 %v368_v20, %v1994_v11  ;;  %v523_v26 = vmax.f32 %v367_v18, 0.0  ;;  %1557 = vmatprep.subr.bf16.mxu0 %v1783_v19 }
 0x11e   :  { %v372_v27 = vpop.f32.mrf.mxu0  ;;  %v2009_v28 = vpop.f32.mrf.mxu1 }
 0x11f   :  { %v524_v30 = vmax.f32 %v369_v25, 0.0  ;;  %v585_v37 = vpack.c.bf16 %v523_v26, %v521_v32  ;;  %v373_v43 = vadd.f32 %v372_v27, %v1997_v12  ;;  %v1784_v27 = vld [vmem:[#allocation8 + $0x8] sm:$0xff]  }
 0x120   :  { %v374_v33 = vpop.f32.mrf.mxu0  ;;  %v2011_v34 = vpop.f32.mrf.mxu1  ;;  %1558 = vmatpush3.bf16.msra.mxu0 %v1784_v27 }
 0x121   :  { %v586_v36 = vpack.c.bf16 %v524_v30, %v522_v29  ;;  %v375_v40 = vadd.f32 %v374_v33, %v1994_v11  ;;  %v525_v53 = vmax.f32 %v373_v43, 0.0 }
 0x122   :  { %v376_v38 = vpop.f32.mrf.mxu0  ;;  %v2013_v39 = vpop.f32.mrf.mxu1 }
 0x123   :  { %v377_v41 = vadd.f32 %v376_v38, %v1997_v12  ;;  %862 = vmatprep.mubr.bf16.mxu1 %v586_v36  ;;  %v526_v50 = vmax.f32 %v375_v40, 0.0 }
 0x124   :  { %v378_v44 = vpop.f32.mrf.mxu0  ;;  %863 = vmatmul.mubr.bf16.vlgmr.msra.gmra.mxu1 %v585_v37  ;;  %v2019_v49 = vpop.f32.mrf.mxu1 }
 0x125   :  { %v379_v46 = vadd.f32 %v378_v44, %v1994_v11  ;;  %v527_v47 = vmax.f32 %v377_v41, 0.0 }
 0x126   :  { %v382_v48 = vpop.f32.mrf.mxu0  ;;  %v2021_v59 = vpop.f32.mrf.mxu1 }
 0x127   :  { %v528_v51 = vmax.f32 %v379_v46, 0.0  ;;  %v587_v57 = vpack.c.bf16 %v527_v47, %v525_v53  ;;  %v383_v63 = vadd.f32 %v382_v48, %v1997_v12 }
 0x128   :  { %v384_v54 = vpop.f32.mrf.mxu0  ;;  %v2027_v8 = vpop.f32.mrf.mxu1 }
 0x129   :  { %v588_v56 = vpack.c.bf16 %v528_v51, %v526_v50  ;;  %v385_v60 = vadd.f32 %v384_v54, %v1994_v11  ;;  %v529_v17 = vmax.f32 %v383_v63, 0.0 }
 0x12a   :  { %v386_v58 = vpop.f32.mrf.mxu0  ;;  %v2029_v24 = vpop.f32.mrf.mxu1 }
 0x12b   :  { %v387_v61 = vadd.f32 %v386_v58, %v1997_v12  ;;  %872 = vmatprep.mubr.bf16.mxu1 %v588_v56  ;;  %v530_v9 = vmax.f32 %v385_v60, 0.0 }
 0x12c   :  { %v388_v1 = vpop.f32.mrf.mxu0  ;;  %873 = vmatmul.mubr.bf16.gmra.mxu1 %v587_v57  ;;  %v2035_v35 = vpop.f32.mrf.mxu1 }
 0x12d   :  { %v389_v0 = vadd.f32 %v388_v1, %v1994_v11  ;;  %v531_v5 = vmax.f32 %v387_v61, 0.0 }
 0x12e   :  { %v392_v7 = vpop.f32.mrf.mxu0  ;;  %v2037_v44 = vpop.f32.mrf.mxu1 }
 0x12f   :  { %v532_v13 = vmax.f32 %v389_v0, 0.0  ;;  %v589_v22 = vpack.c.bf16 %v531_v5, %v529_v17  ;;  %v393_v29 = vadd.f32 %v392_v7, %v1997_v12 }
 0x130   :  { %v394_v18 = vpop.f32.mrf.mxu0  ;;  %v2043_v53 = vpop.f32.mrf.mxu1 }
 0x131   :  { %v590_v20 = vpack.c.bf16 %v532_v13, %v530_v9  ;;  %v395_v25 = vadd.f32 %v394_v18, %v1994_v11  ;;  %v533_v38 = vmax.f32 %v393_v29, 0.0 }
 0x132   :  { %v396_v23 = vpop.f32.mrf.mxu0  ;;  %v2045_v62 = vpop.f32.mrf.mxu1 }
 0x133   :  { %v397_v26 = vadd.f32 %v396_v23, %v1997_v12  ;;  %882 = vmatprep.mubr.bf16.mxu1 %v590_v20  ;;  %v534_v36 = vmax.f32 %v395_v25, 0.0 }
 0x134   :  { %v398_v30 = vpop.f32.mrf.mxu0  ;;  %883 = vmatmul.mubr.bf16.gmra.mxu1 %v589_v22  ;;  %v2051_v13 = vpop.f32.mrf.mxu1 }
 0x135   :  { %v399_v31 = vadd.f32 %v398_v30, %v1994_v11  ;;  %v535_v32 = vmax.f32 %v397_v26, 0.0 }
 0x136   :  { %v402_v33 = vpop.f32.mrf.mxu0  ;;  %v2053_v25 = vpop.f32.mrf.mxu1 }
 0x137   :  { %v536_v37 = vmax.f32 %v399_v31, 0.0  ;;  %v591_v42 = vpack.c.bf16 %v535_v32, %v533_v38  ;;  %v403_v47 = vadd.f32 %v402_v33, %v1997_v12 }
 0x138   :  { %v404_v40 = vpop.f32.mrf.mxu0 }
 0x139   :  { %v592_v41 = vpack.c.bf16 %v536_v37, %v534_v36  ;;  %v405_v45 = vadd.f32 %v404_v40, %v1994_v11  ;;  %v537_v56 = vmax.f32 %v403_v47, 0.0  ;;  %v2059_v36 = vpop.f32.mrf.mxu1 }
 0x13a   :  { %v406_v43 = vpop.f32.mrf.mxu0 }
 0x13b   :  { %v407_v46 = vadd.f32 %v406_v43, %v1997_v12  ;;  %892 = vmatprep.mubr.bf16.mxu1 %v592_v41  ;;  %v538_v54 = vmax.f32 %v405_v45, 0.0  ;;  %v445_v43 = vadd.f32 %v1999_v14, %v1994_v11  ;;  %v449_v45 = vadd.f32 %v2006_v21, %v1994_v11 }
 0x13c   :  { %v408_v48 = vpop.f32.mrf.mxu0  ;;  %893 = vmatmul.mubr.bf16.gmra.mxu1 %v591_v42 }
 0x13d   :  { %v409_v50 = vadd.f32 %v408_v48, %v1994_v11  ;;  %v539_v51 = vmax.f32 %v407_v46, 0.0  ;;  %v2065_v48 = vpop.f32.mrf.mxu1  ;;  %v556_v14 = vmax.f32 %v449_v45, 0.0  ;;  %v1786_v45 = vld [vmem:[#allocation8] sm:$0xff]  }
 0x13e   :  { %v412_v52 = vpop.f32.mrf.mxu0 }
 0x13f   :  { %v540_v55 = vmax.f32 %v409_v50, 0.0  ;;  %v593_v60 = vpack.c.bf16 %v539_v51, %v537_v56  ;;  %v413_v2 = vadd.f32 %v412_v52, %v1997_v12 }
 0x140   :  { %v414_v57 = vpop.f32.mrf.mxu0 }
 0x141   :  { %v594_v58 = vpack.c.bf16 %v540_v55, %v538_v54  ;;  %v415_v63 = vadd.f32 %v414_v57, %v1994_v11  ;;  %v541_v18 = vmax.f32 %v413_v2, 0.0  ;;  %v554_v55 = vmax.f32 %v445_v43, 0.0 }
 0x142   :  { %v416_v61 = vpop.f32.mrf.mxu0  ;;  %v455_v2 = vadd.f32 %v2011_v34, %v1994_v11 }
 0x143   :  { %v417_v1 = vadd.f32 %v416_v61, %v1997_v12  ;;  %902 = vmatprep.mubr.bf16.mxu1 %v594_v58  ;;  %v542_v15 = vmax.f32 %v415_v63, 0.0  ;;  %v488_v58 = vpop.f32.mrf.mxu1 }
 0x144   :  { %v418_v0 = vpop.f32.mrf.mxu0  ;;  %903 = vmatmul.mubr.bf16.gmra.mxu1 %v593_v60 }
 0x145   :  { %v419_v5 = vadd.f32 %v418_v0, %v1994_v11  ;;  %v543_v7 = vmax.f32 %v417_v1, 0.0  ;;  %v602_v1 = vpack.c.bf16 %v556_v14, %v554_v55  ;;  %v459_v0 = vadd.f32 %v2019_v49, %v1994_v11 }
 0x146   :  { %v422_v9 = vpop.f32.mrf.mxu0  ;;  %v465_v49 = vadd.f32 %v2027_v8, %v1994_v11  ;;  %v475_v8 = vadd.f32 %v2043_v53, %v1994_v11 }
 0x147   :  { %v544_v17 = vmax.f32 %v419_v5, 0.0  ;;  %v595_v22 = vpack.c.bf16 %v543_v7, %v541_v18  ;;  %v423_v29 = vadd.f32 %v422_v9, %v1997_v12  ;;  %v443_v5 = vadd.f32 %v1991_v10, %v1997_v12 }
 0x148   :  { %v424_v19 = vpop.f32.mrf.mxu0  ;;  %v447_v9 = vadd.f32 %v2001_v16, %v1997_v12  ;;  %v560_v18 = vmax.f32 %v459_v0, 0.0  ;;  %v469_v10 = vadd.f32 %v2035_v35, %v1994_v11  ;;  %v453_v16 = vadd.f32 %v2009_v28, %v1997_v12 }
 0x149   :  { %v596_v20 = vpack.c.bf16 %v544_v17, %v542_v15  ;;  %v425_v26 = vadd.f32 %v424_v19, %v1994_v11  ;;  %v545_v40 = vmax.f32 %v423_v29, 0.0  ;;  %v2079_v15 = vpop.f32.mrf.mxu1  ;;  %v558_v17 = vmax.f32 %v455_v2, 0.0 }
 0x14a   :  { %v426_v23 = vpop.f32.mrf.mxu0  ;;  %v553_v19 = vmax.f32 %v443_v5, 0.0  ;;  %v562_v29 = vmax.f32 %v465_v49, 0.0  ;;  %v479_v35 = vadd.f32 %v2051_v13, %v1994_v11  ;;  %v463_v28 = vadd.f32 %v2021_v59, %v1997_v12 }
 0x14b   :  { %v427_v27 = vadd.f32 %v426_v23, %v1997_v12  ;;  %912 = vmatprep.mubr.bf16.mxu1 %v596_v20  ;;  %v546_v37 = vmax.f32 %v425_v26, 0.0  ;;  %v555_v20 = vmax.f32 %v447_v9, 0.0  ;;  %v494_v34 = vpop.f32.mrf.mxu1  ;;  %v457_v26 = vadd.f32 %v2013_v39, %v1997_v12 }
 0x14c   :  { %v428_v30 = vpop.f32.mrf.mxu0  ;;  %913 = vmatmul.mubr.bf16.gmra.mxu1 %v595_v22  ;;  %v604_v22 = vpack.c.bf16 %v560_v18, %v558_v17  ;;  %v467_v39 = vadd.f32 %v2029_v24, %v1997_v12  ;;  %v568_v43 = vmax.f32 %v479_v35, 0.0  ;;  %v489_v59 = vadd.f32 %v488_v58, %v1994_v11 }
 0x14d   :  { %v429_v31 = vadd.f32 %v428_v30, %v1994_v11  ;;  %v547_v32 = vmax.f32 %v427_v27, 0.0  ;;  %v601_v23 = vpack.c.bf16 %v555_v20, %v553_v19  ;;  %v496_v27 = vpop.f32.mrf.mxu1  ;;  %v564_v30 = vmax.f32 %v469_v10, 0.0 }
 0x14e   :  { %v432_v33 = vpop.f32.mrf.mxu0  ;;  %v473_v24 = vadd.f32 %v2037_v44, %v1997_v12  ;;  %v483_v44 = vadd.f32 %v2053_v25, %v1997_v12  ;;  %v493_v25 = vadd.f32 %v2079_v15, %v1997_v12  ;;  %v497_v20 = vadd.f32 %v496_v27, %v1997_v12 }
 0x14f   :  { %v548_v38 = vmax.f32 %v429_v31, 0.0  ;;  %v597_v46 = vpack.c.bf16 %v547_v32, %v545_v40  ;;  %v433_v52 = vadd.f32 %v432_v33, %v1997_v12  ;;  %v557_v31 = vmax.f32 %v453_v16, 0.0  ;;  %v498_v33 = vpop.f32.mrf.mxu1 }
 0x150   :  { %v434_v41 = vpop.f32.mrf.mxu0  ;;  %v559_v32 = vmax.f32 %v457_v26, 0.0  ;;  %v565_v14 = vmax.f32 %v473_v24, 0.0  ;;  %v499_v58 = vadd.f32 %v498_v33, %v1994_v11  ;;  %v569_v0 = vmax.f32 %v483_v44, 0.0 }
 0x151   :  { %v598_v42 = vpack.c.bf16 %v548_v38, %v546_v37  ;;  %v435_v50 = vadd.f32 %v434_v41, %v1994_v11  ;;  %v549_v61 = vmax.f32 %v433_v52, 0.0  ;;  %v606_v37 = vpack.c.bf16 %v564_v30, %v562_v29  ;;  %v502_v40 = vpop.f32.mrf.mxu1  ;;  %v1785_v41 = vld [vmem:[#allocation8 + $0x40] sm:$0xff]  }
 0x152   :  { %v436_v47 = vpop.f32.mrf.mxu0  ;;  %v603_v38 = vpack.c.bf16 %v559_v32, %v557_v31  ;;  %1559 = vmatprep.subr.bf16.mxu0 %v1785_v41  ;;  %v477_v52 = vadd.f32 %v2045_v62, %v1997_v12  ;;  %v487_v62 = vadd.f32 %v2065_v48, %v1997_v12  ;;  %v576_v2 = vmax.f32 %v499_v58, 0.0 }
 0x153   :  { %v437_v51 = vadd.f32 %v436_v47, %v1997_v12  ;;  %922 = vmatprep.mubr.bf16.mxu1 %v598_v42  ;;  %v550_v21 = vmax.f32 %v435_v50, 0.0  ;;  %v566_v42 = vmax.f32 %v475_v8, 0.0  ;;  %v563_v47 = vmax.f32 %v467_v39, 0.0  ;;  %v504_v53 = vpop.f32.mrf.mxu1  ;;  %1560 = vmatpush3.bf16.msra.mxu0 %v1786_v45 }
 0x154   :  { %v438_v54 = vpop.f32.mrf.mxu0  ;;  %923 = vmatmul.mubr.bf16.gmra.mxu1 %v597_v46  ;;  %v561_v46 = vmax.f32 %v463_v28, 0.0  ;;  %v485_v50 = vadd.f32 %v2059_v36, %v1994_v11  ;;  %v495_v36 = vadd.f32 %v494_v34, %v1994_v11  ;;  %v571_v5 = vmax.f32 %v487_v62, 0.0 }
 0x155   :  { %v439_v56 = vadd.f32 %v438_v54, %v1994_v11  ;;  %v551_v57 = vmax.f32 %v437_v51, 0.0  ;;  %v608_v13 = vpack.c.bf16 %v568_v43, %v566_v42  ;;  %v506_v54 = vpop.f32.mrf.mxu1  ;;  %v505_v17 = vadd.f32 %v504_v53, %v1994_v11 }
 0x156   :  { %v605_v51 = vpack.c.bf16 %v563_v47, %v561_v46  ;;  %v570_v55 = vmax.f32 %v485_v50, 0.0  ;;  %v609_v19 = vpack.c.bf16 %v571_v5, %v569_v0  ;;  %v573_v49 = vmax.f32 %v493_v25, 0.0 }
 0x157   :  { %v552_v60 = vmax.f32 %v439_v56, 0.0  ;;  %v599_v7 = vpack.c.bf16 %v551_v57, %v549_v61  ;;  %v572_v56 = vmax.f32 %v489_v59, 0.0  ;;  %v567_v57 = vmax.f32 %v477_v52, 0.0 }
 0x158   :  { %v578_v34 = vmax.f32 %v505_v17, 0.0  ;;  %v575_v10 = vmax.f32 %v497_v20, 0.0  ;;  %v503_v31 = vadd.f32 %v502_v40, %v1997_v12  ;;  %v507_v15 = vadd.f32 %v506_v54, %v1997_v12  ;;  %v649_v40 = vld [vmem:[%s2245_s4] sm:$0x3] }
 0x159   :  { %v600_v63 = vpack.c.bf16 %v552_v60, %v550_v21  ;;  %v508_v21 = vpop.f32.mrf.mxu1  ;;  %v610_v60 = vpack.c.bf16 %v572_v56, %v570_v55  ;;  %v607_v61 = vpack.c.bf16 %v567_v57, %v565_v14  ;;  %v650_v42 = vunpack.c.l.bf16 %v649_v40 }
 0x15a   :  { %v509_v18 = vadd.f32 %v508_v21, %v1994_v11  ;;  %v611_v30 = vpack.c.bf16 %v575_v10, %v573_v49  ;;  %v577_v33 = vmax.f32 %v503_v31, 0.0 }
 0x15b   :  { %932 = vmatprep.mubr.bf16.mxu1 %v600_v63  ;;  %v512_v63 = vpop.f32.mrf.mxu1  ;;  %v659_v43 = vrot.slane %v650_v42, %v140_v4  ;;  %v655_v45 = vrot.slane %v650_v42, %v1986_v6 }
 0x15c   :  { %933 = vmatmul.mubr.bf16.gmra.mxu1 %v599_v7 }
 0x15d   :  { %942 = vmatprep.mubr.bf16.mxu1 %v602_v1  ;;  %v574_v1 = vmax.f32 %v495_v36, 0.0  ;;  %v514_v7 = vpop.f32.mrf.mxu1  ;;  %v2128_v47 = vrot.slane %v659_v43, %v1986_v6 }
 0x15e   :  { %v515_v26 = vadd.f32 %v514_v7, %v1994_v11 }
 0x15f   :  { %v612_v9 = vpack.c.bf16 %v576_v2, %v574_v1  ;;  %v516_v48 = vpop.f32.mrf.mxu1 }
 0x160   :  { %v582_v27 = vmax.f32 %v515_v26, 0.0  ;;  %v517_v28 = vadd.f32 %v516_v48, %v1997_v12 }
 0x162   :  { %v583_v39 = vmax.f32 %v517_v28, 0.0 }
 0x164   :  { %943 = vmatmul.mubr.bf16.gmra.mxu1 %v601_v23  ;;  %v518_v23 = vpop.f32.mrf.mxu1 }
 0x165   :  { %952 = vmatprep.mubr.bf16.mxu1 %v604_v22  ;;  %v580_v22 = vmax.f32 %v509_v18, 0.0  ;;  %v519_v29 = vadd.f32 %v518_v23, %v1994_v11 }
 0x167   :  { %v614_v16 = vpack.c.bf16 %v580_v22, %v578_v34  ;;  %v584_v32 = vmax.f32 %v519_v29, 0.0 }
 0x169   :  { %v616_v8 = vpack.c.bf16 %v584_v32, %v582_v27 }
 0x16c   :  { %953 = vmatmul.mubr.bf16.gmra.mxu1 %v603_v38  ;;  %v513_v38 = vadd.f32 %v512_v63, %v1997_v12  ;;  %v2131_v12 = vrot.slane %v655_v45, %v1986_v6 }
 0x16d   :  { %962 = vmatprep.mubr.bf16.mxu1 %v606_v37  ;;  %v579_v37 = vmax.f32 %v507_v15, 0.0 }
 0x16e   :  { %v581_v11 = vmax.f32 %v513_v38, 0.0 }
 0x16f   :  { %v613_v35 = vpack.c.bf16 %v579_v37, %v577_v33 }
 0x170   :  { %v615_v41 = vpack.c.bf16 %v583_v39, %v581_v11 }
 0x174   :  { %963 = vmatmul.mubr.bf16.gmra.mxu1 %v605_v51 }
 0x175   :  { %972 = vmatprep.mubr.bf16.mxu1 %v608_v13 }
 0x17c   :  { %973 = vmatmul.mubr.bf16.gmra.mxu1 %v607_v61 }
 0x17d   :  { %982 = vmatprep.mubr.bf16.mxu1 %v610_v60 }
 0x184   :  { %983 = vmatmul.mubr.bf16.gmra.mxu1 %v609_v19 }
 0x185   :  { %992 = vmatprep.mubr.bf16.mxu1 %v612_v9 }
 0x18c   :  { %993 = vmatmul.mubr.bf16.gmra.mxu1 %v611_v30 }
 0x18d   :  { %1002 = vmatprep.mubr.bf16.mxu1 %v614_v16 }
 0x194   :  { %1003 = vmatmul.mubr.bf16.gmra.mxu1 %v613_v35 }
 0x195   :  { %1012 = vmatprep.mubr.bf16.mxu1 %v616_v8 }
 0x19c   :  { %1013 = vmatmul.mubr.bf16.gmra.mxu1 %v615_v41 }
 0x1e4   :  { %v864_v46 = vpop.f32.mrf.mxu1 }
 0x1e5   :  { %v865_v51 = vadd.f32 %v864_v46, %v2131_v12 }
 0x1e6   :  { %v866_v53 = vpop.f32.mrf.mxu1 }
 0x1e7   :  { %v867_v50 = vadd.f32 %v866_v53, %v2128_v47  ;;  %v1023_v56 = vmax.f32 %v865_v51, 0.0 }
 0x1e8   :  { %v868_v13 = vpop.f32.mrf.mxu1 }
 0x1e9   :  { %v869_v59 = vadd.f32 %v868_v13, %v2131_v12  ;;  %v1024_v54 = vmax.f32 %v867_v50, 0.0 }
 0x1ea   :  { %v870_v24 = vpop.f32.mrf.mxu1 }
 0x1eb   :  { %v871_v3 = vadd.f32 %v870_v24, %v2128_v47  ;;  %v1025_v4 = vmax.f32 %v869_v59, 0.0 }
 0x1ec   :  { %v874_v52 = vpop.f32.mrf.mxu1 }
 0x1ed   :  { %v1026_v55 = vmax.f32 %v871_v3, 0.0  ;;  %v1087_v21 = vpack.c.bf16 %v1025_v4, %v1023_v56  ;;  %v875_v61 = vadd.f32 %v874_v52, %v2131_v12 }
 0x1ee   :  { %v876_v14 = vpop.f32.mrf.mxu1 }
 0x1ef   :  { %v1088_v57 = vpack.c.bf16 %v1026_v55, %v1024_v54  ;;  %v877_v36 = vadd.f32 %v876_v14, %v2128_v47  ;;  %v1027_v5 = vmax.f32 %v875_v61, 0.0 }
 0x1f0   :  { %v878_v60 = vpop.f32.mrf.mxu1 }
 0x1f1   :  { %v879_v58 = vadd.f32 %v878_v60, %v2131_v12  ;;  %1285 = vmatprep.mubr.bf16.mxu0 %v1088_v57  ;;  %v1028_v2 = vmax.f32 %v877_v36, 0.0 }
 0x1f2   :  { %v880_v44 = vpop.f32.mrf.mxu1  ;;  %1286 = vmatmul.mubr.bf16.vlgmr.msra.gmra.mxu0 %v1087_v21 }
 0x1f3   :  { %v881_v62 = vadd.f32 %v880_v44, %v2128_v47  ;;  %v1029_v63 = vmax.f32 %v879_v58, 0.0 }
 0x1f4   :  { %v884_v1 = vpop.f32.mrf.mxu1 }
 0x1f5   :  { %v1030_v0 = vmax.f32 %v881_v62, 0.0  ;;  %v1089_v17 = vpack.c.bf16 %v1029_v63, %v1027_v5  ;;  %v885_v20 = vadd.f32 %v884_v1, %v2131_v12 }
 0x1f6   :  { %v886_v7 = vpop.f32.mrf.mxu1 }
 0x1f7   :  { %v1090_v9 = vpack.c.bf16 %v1030_v0, %v1028_v2  ;;  %v887_v19 = vadd.f32 %v886_v7, %v2128_v47  ;;  %v1031_v16 = vmax.f32 %v885_v20, 0.0 }
 0x1f8   :  { %v888_v18 = vpop.f32.mrf.mxu1 }
 0x1f9   :  { %v889_v25 = vadd.f32 %v888_v18, %v2131_v12  ;;  %1293 = vmatprep.mubr.bf16.mxu0 %v1090_v9  ;;  %v1032_v10 = vmax.f32 %v887_v19, 0.0 }
 0x1fa   :  { %v890_v48 = vpop.f32.mrf.mxu1  ;;  %1294 = vmatmul.mubr.bf16.gmra.mxu0 %v1089_v17 }
 0x1fb   :  { %v891_v34 = vadd.f32 %v890_v48, %v2128_v47  ;;  %v1033_v22 = vmax.f32 %v889_v25, 0.0 }
 0x1fc   :  { %v894_v49 = vpop.f32.mrf.mxu1 }
 0x1fd   :  { %v1034_v23 = vmax.f32 %v891_v34, 0.0  ;;  %v1091_v30 = vpack.c.bf16 %v1033_v22, %v1031_v16  ;;  %v895_v32 = vadd.f32 %v894_v49, %v2131_v12 }
 0x1fe   :  { %v896_v26 = vpop.f32.mrf.mxu1 }
 0x1ff   :  { %v1092_v29 = vpack.c.bf16 %v1034_v23, %v1032_v10  ;;  %v897_v15 = vadd.f32 %v896_v26, %v2128_v47  ;;  %v1035_v11 = vmax.f32 %v895_v32, 0.0 }
 0x200   :  { %v898_v31 = vpop.f32.mrf.mxu1 }
 0x201   :  { %v899_v27 = vadd.f32 %v898_v31, %v2131_v12  ;;  %1301 = vmatprep.mubr.bf16.mxu0 %v1092_v29  ;;  %v1036_v38 = vmax.f32 %v897_v15, 0.0 }
 0x202   :  { %v900_v33 = vpop.f32.mrf.mxu1  ;;  %1302 = vmatmul.mubr.bf16.gmra.mxu0 %v1091_v30 }
 0x203   :  { %v901_v37 = vadd.f32 %v900_v33, %v2128_v47  ;;  %v1037_v8 = vmax.f32 %v899_v27, 0.0 }
 0x204   :  { %v904_v35 = vpop.f32.mrf.mxu1 }
 0x205   :  { %v1038_v28 = vmax.f32 %v901_v37, 0.0  ;;  %v1093_v40 = vpack.c.bf16 %v1037_v8, %v1035_v11  ;;  %v905_v46 = vadd.f32 %v904_v35, %v2131_v12 }
 0x206   :  { %v906_v39 = vpop.f32.mrf.mxu1 }
 0x207   :  { %v1094_v41 = vpack.c.bf16 %v1038_v28, %v1036_v38  ;;  %v907_v43 = vadd.f32 %v906_v39, %v2128_v47  ;;  %v1039_v3 = vmax.f32 %v905_v46, 0.0 }
 0x208   :  { %v908_v42 = vpop.f32.mrf.mxu1 }
 0x209   :  { %v909_v45 = vadd.f32 %v908_v42, %v2131_v12  ;;  %1309 = vmatprep.mubr.bf16.mxu0 %v1094_v41  ;;  %v1040_v51 = vmax.f32 %v907_v43, 0.0 }
 0x20a   :  { %v910_v53 = vpop.f32.mrf.mxu1  ;;  %1310 = vmatmul.mubr.bf16.gmra.mxu0 %v1093_v40 }
 0x20b   :  { %v911_v13 = vadd.f32 %v910_v53, %v2128_v47  ;;  %v1041_v50 = vmax.f32 %v909_v45, 0.0 }
 0x20c   :  { %v914_v59 = vpop.f32.mrf.mxu1 }
 0x20d   :  { %v1042_v24 = vmax.f32 %v911_v13, 0.0  ;;  %v1095_v54 = vpack.c.bf16 %v1041_v50, %v1039_v3  ;;  %v915_v57 = vadd.f32 %v914_v59, %v2131_v12 }
 0x20e   :  { %v916_v4 = vpop.f32.mrf.mxu1 }
 0x20f   :  { %v1096_v52 = vpack.c.bf16 %v1042_v24, %v1040_v51  ;;  %v917_v56 = vadd.f32 %v916_v4, %v2128_v47  ;;  %v1043_v62 = vmax.f32 %v915_v57, 0.0 }
 0x210   :  { %v918_v55 = vpop.f32.mrf.mxu1 }
 0x211   :  { %v919_v14 = vadd.f32 %v918_v55, %v2131_v12  ;;  %1317 = vmatprep.mubr.bf16.mxu0 %v1096_v52  ;;  %v1044_v61 = vmax.f32 %v917_v56, 0.0 }
 0x212   :  { %v920_v21 = vpop.f32.mrf.mxu1  ;;  %1318 = vmatmul.mubr.bf16.gmra.mxu0 %v1095_v54 }
 0x213   :  { %v921_v60 = vadd.f32 %v920_v21, %v2128_v47  ;;  %v1045_v36 = vmax.f32 %v919_v14, 0.0 }
 0x214   :  { %v924_v58 = vpop.f32.mrf.mxu1 }
 0x215   :  { %v1046_v44 = vmax.f32 %v921_v60, 0.0  ;;  %v1097_v2 = vpack.c.bf16 %v1045_v36, %v1043_v62  ;;  %v925_v9 = vadd.f32 %v924_v58, %v2131_v12 }
 0x216   :  { %v926_v63 = vpop.f32.mrf.mxu1 }
 0x217   :  { %v1098_v1 = vpack.c.bf16 %v1046_v44, %v1044_v61  ;;  %v927_v5 = vadd.f32 %v926_v63, %v2128_v47  ;;  %v1047_v34 = vmax.f32 %v925_v9, 0.0 }
 0x218   :  { %v928_v0 = vpop.f32.mrf.mxu1 }
 0x219   :  { %v929_v7 = vadd.f32 %v928_v0, %v2131_v12  ;;  %1325 = vmatprep.mubr.bf16.mxu0 %v1098_v1  ;;  %v1048_v20 = vmax.f32 %v927_v5, 0.0 }
 0x21a   :  { %v930_v17 = vpop.f32.mrf.mxu1  ;;  %1326 = vmatmul.mubr.bf16.gmra.mxu0 %v1097_v2 }
 0x21b   :  { %v931_v18 = vadd.f32 %v930_v17, %v2128_v47  ;;  %v1049_v19 = vmax.f32 %v929_v7, 0.0 }
 0x21c   :  { %v934_v25 = vpop.f32.mrf.mxu1 }
 0x21d   :  { %v1050_v48 = vmax.f32 %v931_v18, 0.0  ;;  %v1099_v10 = vpack.c.bf16 %v1049_v19, %v1047_v34  ;;  %v935_v29 = vadd.f32 %v934_v25, %v2131_v12 }
 0x21e   :  { %v936_v22 = vpop.f32.mrf.mxu1 }
 0x21f   :  { %v1100_v49 = vpack.c.bf16 %v1050_v48, %v1048_v20  ;;  %v937_v16 = vadd.f32 %v936_v22, %v2128_v47  ;;  %v1051_v37 = vmax.f32 %v935_v29, 0.0 }
 0x220   :  { %v938_v23 = vpop.f32.mrf.mxu1 }
 0x221   :  { %v939_v26 = vadd.f32 %v938_v23, %v2131_v12  ;;  %1333 = vmatprep.mubr.bf16.mxu0 %v1100_v49  ;;  %v1052_v32 = vmax.f32 %v937_v16, 0.0 }
 0x222   :  { %v940_v30 = vpop.f32.mrf.mxu1  ;;  %1334 = vmatmul.mubr.bf16.gmra.mxu0 %v1099_v10 }
 0x223   :  { %v941_v31 = vadd.f32 %v940_v30, %v2128_v47  ;;  %v1053_v15 = vmax.f32 %v939_v26, 0.0 }
 0x224   :  { %v944_v27 = vpop.f32.mrf.mxu1 }
 0x225   :  { %v1054_v33 = vmax.f32 %v941_v31, 0.0  ;;  %v1101_v38 = vpack.c.bf16 %v1053_v15, %v1051_v37  ;;  %v945_v41 = vadd.f32 %v944_v27, %v2131_v12 }
 0x226   :  { %v946_v8 = vpop.f32.mrf.mxu1 }
 0x227   :  { %v1102_v35 = vpack.c.bf16 %v1054_v33, %v1052_v32  ;;  %v947_v11 = vadd.f32 %v946_v8, %v2128_v47  ;;  %v1055_v13 = vmax.f32 %v945_v41, 0.0 }
 0x228   :  { %v948_v28 = vpop.f32.mrf.mxu1 }
 0x229   :  { %v949_v39 = vadd.f32 %v948_v28, %v2131_v12  ;;  %1341 = vmatprep.mubr.bf16.mxu0 %v1102_v35  ;;  %v1056_v46 = vmax.f32 %v947_v11, 0.0 }
 0x22a   :  { %v950_v40 = vpop.f32.mrf.mxu1  ;;  %1342 = vmatmul.mubr.bf16.gmra.mxu0 %v1101_v38 }
 0x22b   :  { %v951_v42 = vadd.f32 %v950_v40, %v2128_v47  ;;  %v1057_v43 = vmax.f32 %v949_v39, 0.0 }
 0x22c   :  { %v954_v45 = vpop.f32.mrf.mxu1 }
 0x22d   :  { %v1058_v53 = vmax.f32 %v951_v42, 0.0  ;;  %v1103_v51 = vpack.c.bf16 %v1057_v43, %v1055_v13  ;;  %v955_v52 = vadd.f32 %v954_v45, %v2131_v12 }
 0x22e   :  { %v956_v50 = vpop.f32.mrf.mxu1 }
 0x22f   :  { %v1104_v59 = vpack.c.bf16 %v1058_v53, %v1056_v46  ;;  %v957_v3 = vadd.f32 %v956_v50, %v2128_v47  ;;  %v1059_v60 = vmax.f32 %v955_v52, 0.0 }
 0x230   :  { %v958_v24 = vpop.f32.mrf.mxu1 }
 0x231   :  { %v959_v4 = vadd.f32 %v958_v24, %v2131_v12  ;;  %1349 = vmatprep.mubr.bf16.mxu0 %v1104_v59  ;;  %v1060_v57 = vmax.f32 %v957_v3, 0.0 }
 0x232   :  { %v960_v54 = vpop.f32.mrf.mxu1  ;;  %1350 = vmatmul.mubr.bf16.gmra.mxu0 %v1103_v51 }
 0x233   :  { %v961_v55 = vadd.f32 %v960_v54, %v2128_v47  ;;  %v1061_v56 = vmax.f32 %v959_v4, 0.0 }
 0x234   :  { %v964_v14 = vpop.f32.mrf.mxu1 }
 0x235   :  { %v1062_v21 = vmax.f32 %v961_v55, 0.0  ;;  %v1105_v61 = vpack.c.bf16 %v1061_v56, %v1059_v60  ;;  %v965_v1 = vadd.f32 %v964_v14, %v2131_v12 }
 0x236   :  { %v966_v36 = vpop.f32.mrf.mxu1 }
 0x237   :  { %v1106_v58 = vpack.c.bf16 %v1062_v21, %v1060_v57  ;;  %v967_v62 = vadd.f32 %v966_v36, %v2128_v47  ;;  %v1063_v18 = vmax.f32 %v965_v1, 0.0 }
 0x238   :  { %v968_v44 = vpop.f32.mrf.mxu1 }
 0x239   :  { %v969_v63 = vadd.f32 %v968_v44, %v2131_v12  ;;  %1357 = vmatprep.mubr.bf16.mxu0 %v1106_v58  ;;  %v1064_v9 = vmax.f32 %v967_v62, 0.0 }
 0x23a   :  { %v970_v2 = vpop.f32.mrf.mxu1  ;;  %1358 = vmatmul.mubr.bf16.gmra.mxu0 %v1105_v61 }
 0x23b   :  { %v971_v0 = vadd.f32 %v970_v2, %v2128_v47  ;;  %v1065_v5 = vmax.f32 %v969_v63, 0.0 }
 0x23c   :  { %v974_v7 = vpop.f32.mrf.mxu1 }
 0x23d   :  { %v1066_v17 = vmax.f32 %v971_v0, 0.0  ;;  %v1107_v20 = vpack.c.bf16 %v1065_v5, %v1063_v18  ;;  %v975_v49 = vadd.f32 %v974_v7, %v2131_v12 }
 0x23e   :  { %v976_v19 = vpop.f32.mrf.mxu1 }
 0x23f   :  { %v1108_v25 = vpack.c.bf16 %v1066_v17, %v1064_v9  ;;  %v977_v34 = vadd.f32 %v976_v19, %v2128_v47  ;;  %v1067_v31 = vmax.f32 %v975_v49, 0.0 }
 0x240   :  { %v978_v48 = vpop.f32.mrf.mxu1 }
 0x241   :  { %v979_v22 = vadd.f32 %v978_v48, %v2131_v12  ;;  %1365 = vmatprep.mubr.bf16.mxu0 %v1108_v25  ;;  %v1068_v29 = vmax.f32 %v977_v34, 0.0 }
 0x242   :  { %v980_v10 = vpop.f32.mrf.mxu1  ;;  %1366 = vmatmul.mubr.bf16.gmra.mxu0 %v1107_v20 }
 0x243   :  { %v981_v23 = vadd.f32 %v980_v10, %v2128_v47  ;;  %v1069_v16 = vmax.f32 %v979_v22, 0.0 }
 0x244   :  { %v984_v26 = vpop.f32.mrf.mxu1 }
 0x245   :  { %v1070_v30 = vmax.f32 %v981_v23, 0.0  ;;  %v1109_v32 = vpack.c.bf16 %v1069_v16, %v1067_v31  ;;  %v985_v35 = vadd.f32 %v984_v26, %v2131_v12  ;;  %v1151_v26 = vld [vmem:[%s2247_s6] sm:$0x1]  ;;  %s1904_s6 = smov [#allocation10]  }
 0x246   :  { %v986_v15 = vpop.f32.mrf.mxu1  ;;  %s1451_s25 = sshll.u32 %s1904_s6, 4  ;;  %s1452_s25 = int_to_ptr.vmem [resolvable:$true] %s1451_s25 }
 0x247   :  { %v1110_v27 = vpack.c.bf16 %v1070_v30, %v1068_v29  ;;  %v987_v37 = vadd.f32 %v986_v15, %v2128_v47  ;;  %v1071_v42 = vmax.f32 %v985_v35, 0.0  ;;  %v1152_v29 = vunpack.c.l.bf16 %v1151_v26  ;;  %s1867_s26 = scalar_lea.vmem %s1452_s25, 4096  ;;  %p1872_p7 = scmp.lt.s32.totalorder %s1452_s25, %s1452_s25 }
 0x248   :  { %v988_v33 = vpop.f32.mrf.mxu1  ;;  %p1868_p6 = scmp.ne.s32.totalorder %s1452_s25, %s1867_s26  ;;  %p1873_p8 = scmp.lt.s32.totalorder %s1867_s26, %s1867_s26 }
 0x249   :  { %v989_v8 = vadd.f32 %v988_v33, %v2131_v12  ;;  %1373 = vmatprep.mubr.bf16.mxu0 %v1110_v27  ;;  %v1072_v41 = vmax.f32 %v987_v37, 0.0 }
 0x24a   :  { %v990_v38 = vpop.f32.mrf.mxu1  ;;  %1374 = vmatmul.mubr.bf16.gmra.mxu0 %v1109_v32  ;;  %p1874_p9 = por %p1873_p8, %p1872_p7 }
 0x24b   :  { %v991_v28 = vadd.f32 %v990_v38, %v2128_v47  ;;  %v1073_v11 = vmax.f32 %v989_v8, 0.0 }
 0x24c   :  { %v994_v39 = vpop.f32.mrf.mxu1  ;;  %p1875_p10 = pnand %p1874_p9, %p1868_p6 }
 0x24d   :  { %v1074_v40 = vmax.f32 %v991_v28, 0.0  ;;  %v1111_v46 = vpack.c.bf16 %v1073_v11, %v1071_v42  ;;  %v995_v59 = vadd.f32 %v994_v39, %v2131_v12 }
 0x24e   :  { %v996_v43 = vpop.f32.mrf.mxu1 }
 0x24f   :  { %v1112_v45 = vpack.c.bf16 %v1074_v40, %v1072_v41  ;;  %v997_v13 = vadd.f32 %v996_v43, %v2128_v47  ;;  %v1075_v55 = vmax.f32 %v995_v59, 0.0 }
 0x250   :  { %v998_v53 = vpop.f32.mrf.mxu1 }
 0x251   :  { %v999_v50 = vadd.f32 %v998_v53, %v2131_v12  ;;  %1381 = vmatprep.mubr.bf16.mxu0 %v1112_v45  ;;  %v1076_v52 = vmax.f32 %v997_v13, 0.0 }
 0x252   :  { %v1000_v51 = vpop.f32.mrf.mxu1  ;;  %1382 = vmatmul.mubr.bf16.gmra.mxu0 %v1111_v46 }
 0x253   :  { %v1001_v24 = vadd.f32 %v1000_v51, %v2128_v47  ;;  %v1077_v3 = vmax.f32 %v999_v50, 0.0 }
 0x254   :  { %v1004_v4 = vpop.f32.mrf.mxu1 }
 0x255   :  { %v1078_v54 = vmax.f32 %v1001_v24, 0.0  ;;  %v1113_v57 = vpack.c.bf16 %v1077_v3, %v1075_v55  ;;  %v1005_v58 = vadd.f32 %v1004_v4, %v2131_v12 }
 0x256   :  { %v1006_v56 = vpop.f32.mrf.mxu1 }
 0x257   :  { %v1114_v14 = vpack.c.bf16 %v1078_v54, %v1076_v52  ;;  %v1007_v60 = vadd.f32 %v1006_v56, %v2128_v47  ;;  %v1079_v0 = vmax.f32 %v1005_v58, 0.0 }
 0x258   :  { %v1008_v21 = vpop.f32.mrf.mxu1 }
 0x259   :  { %v1009_v36 = vadd.f32 %v1008_v21, %v2131_v12  ;;  %1389 = vmatprep.mubr.bf16.mxu0 %v1114_v14  ;;  %v1080_v1 = vmax.f32 %v1007_v60, 0.0 }
 0x25a   :  { %v1010_v61 = vpop.f32.mrf.mxu1  ;;  %1390 = vmatmul.mubr.bf16.gmra.mxu0 %v1113_v57 }
 0x25b   :  { %v1011_v44 = vadd.f32 %v1010_v61, %v2128_v47  ;;  %v1081_v62 = vmax.f32 %v1009_v36, 0.0 }
 0x25c   :  { %v1014_v63 = vpop.f32.mrf.mxu1 }
 0x25d   :  { %v1082_v2 = vmax.f32 %v1011_v44, 0.0  ;;  %v1115_v9 = vpack.c.bf16 %v1081_v62, %v1079_v0  ;;  %v1015_v25 = vadd.f32 %v1014_v63, %v2131_v12 }
 0x25e   :  { %v1016_v5 = vpop.f32.mrf.mxu1 }
 0x25f   :  { %v1116_v7 = vpack.c.bf16 %v1082_v2, %v1080_v1  ;;  %v1017_v18 = vadd.f32 %v1016_v5, %v2128_v47  ;;  %v1083_v10 = vmax.f32 %v1015_v25, 0.0 }
 0x260   :  { %v1018_v17 = vpop.f32.mrf.mxu1 }
 0x261   :  { %v1019_v19 = vadd.f32 %v1018_v17, %v2131_v12  ;;  %1397 = vmatprep.mubr.bf16.mxu0 %v1116_v7  ;;  %v1084_v22 = vmax.f32 %v1017_v18, 0.0  ;;  %v2201_v12 = vrot.slane %v1152_v29, %v1986_v6 }
 0x262   :  { %v1020_v20 = vpop.f32.mrf.mxu1  ;;  %1398 = vmatmul.mubr.bf16.gmra.mxu0 %v1115_v9 }
 0x263   :  { %v1021_v48 = vadd.f32 %v1020_v20, %v2128_v47  ;;  %v1085_v34 = vmax.f32 %v1019_v19, 0.0 }
 0x265   :  { %v1086_v49 = vmax.f32 %v1021_v48, 0.0  ;;  %v1117_v16 = vpack.c.bf16 %v1085_v34, %v1083_v10 }
 0x267   :  { %v1118_v23 = vpack.c.bf16 %v1086_v49, %v1084_v22 }
 0x269   :  { %1405 = vmatprep.mubr.bf16.mxu0 %v1118_v23 }
 0x26a   :  { %1406 = vmatmul.mubr.bf16.gmra.mxu0 %v1117_v16 }
 0x2b2   :  { %v1561_v30 = vpop.f32.mrf.mxu0 }
 0x2b4   :  { %v1562_v31 = vpop.f32.mrf.mxu0 }
 0x2b5   :  { %v1563_v15 = vadd.f32 %v1562_v31, %v1561_v30 }
 0x2b6   :  { %v1564_v47 = vpop.f32.mrf.mxu0 }
 0x2b7   :  { %v1288_v27 = vadd.f32 %v1563_v15, %v2201_v12 }
 0x2b8   :  { %v1565_v32 = vpop.f32.mrf.mxu0 }
 0x2b9   :  { %1414 = vst [vmem:[#allocation10] sm:$0xff] %v1288_v27  ;;  %v1566_v33 = vadd.f32 %v1565_v32, %v1564_v47 }
 0x2ba   :  { %v1567_v37 = vpop.f32.mrf.mxu0 }
 0x2bb   :  { %v1291_v8 = vadd.f32 %v1566_v33, %v2201_v12 }
 0x2bc   :  { %v1568_v35 = vpop.f32.mrf.mxu0 }
 0x2bd   :  { %1415 = vst [vmem:[#allocation10 + $0x8] sm:$0xff] %v1291_v8  ;;  %v1569_v38 = vadd.f32 %v1568_v35, %v1567_v37 }
 0x2be   :  { %v1570_v28 = vpop.f32.mrf.mxu0 }
 0x2bf   :  { %v1296_v11 = vadd.f32 %v1569_v38, %v2201_v12 }
 0x2c0   :  { %v1571_v39 = vpop.f32.mrf.mxu0 }
 0x2c1   :  { %1416 = vst [vmem:[#allocation10 + $0x10] sm:$0xff] %v1296_v11  ;;  %v1572_v6 = vadd.f32 %v1571_v39, %v1570_v28 }
 0x2c2   :  { %v1573_v41 = vpop.f32.mrf.mxu0 }
 0x2c3   :  { %v1299_v40 = vadd.f32 %v1572_v6, %v2201_v12 }
 0x2c4   :  { %v1574_v42 = vpop.f32.mrf.mxu0 }
 0x2c5   :  { %1417 = vst [vmem:[#allocation10 + $0x18] sm:$0xff] %v1299_v40  ;;  %v1575_v43 = vadd.f32 %v1574_v42, %v1573_v41 }
 0x2c6   :  { %v1576_v45 = vpop.f32.mrf.mxu0 }
 0x2c7   :  { %v1304_v46 = vadd.f32 %v1575_v43, %v2201_v12 }
 0x2c8   :  { %v1577_v53 = vpop.f32.mrf.mxu0 }
 0x2c9   :  { %1418 = vst [vmem:[#allocation10 + $0x20] sm:$0xff] %v1304_v46  ;;  %v1578_v13 = vadd.f32 %v1577_v53, %v1576_v45 }
 0x2ca   :  { %v1579_v50 = vpop.f32.mrf.mxu0 }
 0x2cb   :  { %v1307_v59 = vadd.f32 %v1578_v13, %v2201_v12 }
 0x2cc   :  { %v1580_v51 = vpop.f32.mrf.mxu0 }
 0x2cd   :  { %1419 = vst [vmem:[#allocation10 + $0x28] sm:$0xff] %v1307_v59  ;;  %v1581_v24 = vadd.f32 %v1580_v51, %v1579_v50 }
 0x2ce   :  { %v1582_v3 = vpop.f32.mrf.mxu0 }
 0x2cf   :  { %v1312_v4 = vadd.f32 %v1581_v24, %v2201_v12 }
 0x2d0   :  { %v1583_v52 = vpop.f32.mrf.mxu0 }
 0x2d1   :  { %1420 = vst [vmem:[#allocation10 + $0x30] sm:$0xff] %v1312_v4  ;;  %v1584_v54 = vadd.f32 %v1583_v52, %v1582_v3 }
 0x2d2   :  { %v1585_v55 = vpop.f32.mrf.mxu0 }
 0x2d3   :  { %v1315_v56 = vadd.f32 %v1584_v54, %v2201_v12 }
 0x2d4   :  { %v1586_v14 = vpop.f32.mrf.mxu0 }
 0x2d5   :  { %1421 = vst [vmem:[#allocation10 + $0x38] sm:$0xff] %v1315_v56  ;;  %v1587_v57 = vadd.f32 %v1586_v14, %v1585_v55 }
 0x2d6   :  { %v1588_v21 = vpop.f32.mrf.mxu0 }
 0x2d7   :  { %v1320_v60 = vadd.f32 %v1587_v57, %v2201_v12 }
 0x2d8   :  { %v1589_v36 = vpop.f32.mrf.mxu0 }
 0x2d9   :  { %1422 = vst [vmem:[#allocation10 + $0x40] sm:$0xff] %v1320_v60  ;;  %v1590_v58 = vadd.f32 %v1589_v36, %v1588_v21 }
 0x2da   :  { %v1591_v61 = vpop.f32.mrf.mxu0 }
 0x2db   :  { %v1323_v44 = vadd.f32 %v1590_v58, %v2201_v12 }
 0x2dc   :  { %v1592_v62 = vpop.f32.mrf.mxu0 }
 0x2dd   :  { %1423 = vst [vmem:[#allocation10 + $0x48] sm:$0xff] %v1323_v44  ;;  %v1593_v63 = vadd.f32 %v1592_v62, %v1591_v61 }
 0x2de   :  { %v1594_v1 = vpop.f32.mrf.mxu0 }
 0x2df   :  { %v1328_v2 = vadd.f32 %v1593_v63, %v2201_v12 }
 0x2e0   :  { %v1595_v0 = vpop.f32.mrf.mxu0 }
 0x2e1   :  { %1424 = vst [vmem:[#allocation10 + $0x50] sm:$0xff] %v1328_v2  ;;  %v1596_v5 = vadd.f32 %v1595_v0, %v1594_v1 }
 0x2e2   :  { %v1597_v7 = vpop.f32.mrf.mxu0 }
 0x2e3   :  { %v1331_v9 = vadd.f32 %v1596_v5, %v2201_v12 }
 0x2e4   :  { %v1598_v17 = vpop.f32.mrf.mxu0 }
 0x2e5   :  { %1425 = vst [vmem:[#allocation10 + $0x58] sm:$0xff] %v1331_v9  ;;  %v1599_v18 = vadd.f32 %v1598_v17, %v1597_v7 }
 0x2e6   :  { %v1600_v19 = vpop.f32.mrf.mxu0 }
 0x2e7   :  { %v1336_v25 = vadd.f32 %v1599_v18, %v2201_v12 }
 0x2e8   :  { %v1601_v20 = vpop.f32.mrf.mxu0 }
 0x2e9   :  { %1426 = vst [vmem:[#allocation10 + $0x60] sm:$0xff] %v1336_v25  ;;  %v1602_v48 = vadd.f32 %v1601_v20, %v1600_v19 }
 0x2ea   :  { %v1603_v34 = vpop.f32.mrf.mxu0 }
 0x2eb   :  { %v1339_v22 = vadd.f32 %v1602_v48, %v2201_v12 }
 0x2ec   :  { %v1604_v49 = vpop.f32.mrf.mxu0 }
 0x2ed   :  { %1427 = vst [vmem:[#allocation10 + $0x68] sm:$0xff] %v1339_v22  ;;  %v1605_v10 = vadd.f32 %v1604_v49, %v1603_v34 }
 0x2ee   :  { %v1606_v23 = vpop.f32.mrf.mxu0 }
 0x2ef   :  { %v1344_v16 = vadd.f32 %v1605_v10, %v2201_v12 }
 0x2f0   :  { %v1607_v26 = vpop.f32.mrf.mxu0 }
 0x2f1   :  { %1428 = vst [vmem:[#allocation10 + $0x70] sm:$0xff] %v1344_v16  ;;  %v1608_v29 = vadd.f32 %v1607_v26, %v1606_v23 }
 0x2f2   :  { %v1609_v30 = vpop.f32.mrf.mxu0 }
 0x2f3   :  { %v1347_v31 = vadd.f32 %v1608_v29, %v2201_v12 }
 0x2f4   :  { %v1610_v15 = vpop.f32.mrf.mxu0 }
 0x2f5   :  { %1429 = vst [vmem:[#allocation10 + $0x78] sm:$0xff] %v1347_v31  ;;  %v1611_v47 = vadd.f32 %v1610_v15, %v1609_v30 }
 0x2f6   :  { %v1612_v27 = vpop.f32.mrf.mxu0 }
 0x2f7   :  { %v1352_v32 = vadd.f32 %v1611_v47, %v2201_v12 }
 0x2f8   :  { %v1613_v33 = vpop.f32.mrf.mxu0 }
 0x2f9   :  { %1430 = vst [vmem:[#allocation10 + $0x80] sm:$0xff] %v1352_v32  ;;  %v1614_v37 = vadd.f32 %v1613_v33, %v1612_v27 }
 0x2fa   :  { %v1615_v8 = vpop.f32.mrf.mxu0 }
 0x2fb   :  { %v1355_v35 = vadd.f32 %v1614_v37, %v2201_v12 }
 0x2fc   :  { %v1616_v38 = vpop.f32.mrf.mxu0 }
 0x2fd   :  { %1431 = vst [vmem:[#allocation10 + $0x88] sm:$0xff] %v1355_v35  ;;  %v1617_v28 = vadd.f32 %v1616_v38, %v1615_v8 }
 0x2fe   :  { %v1618_v11 = vpop.f32.mrf.mxu0 }
 0x2ff   :  { %v1360_v39 = vadd.f32 %v1617_v28, %v2201_v12 }
 0x300   :  { %v1619_v6 = vpop.f32.mrf.mxu0 }
 0x301   :  { %1432 = vst [vmem:[#allocation10 + $0x90] sm:$0xff] %v1360_v39  ;;  %v1620_v41 = vadd.f32 %v1619_v6, %v1618_v11 }
 0x302   :  { %v1621_v40 = vpop.f32.mrf.mxu0 }
 0x303   :  { %v1363_v42 = vadd.f32 %v1620_v41, %v2201_v12 }
 0x304   :  { %v1622_v43 = vpop.f32.mrf.mxu0 }
 0x305   :  { %1433 = vst [vmem:[#allocation10 + $0x98] sm:$0xff] %v1363_v42  ;;  %v1623_v45 = vadd.f32 %v1622_v43, %v1621_v40 }
 0x306   :  { %v1624_v46 = vpop.f32.mrf.mxu0 }
 0x307   :  { %v1368_v53 = vadd.f32 %v1623_v45, %v2201_v12 }
 0x308   :  { %v1625_v13 = vpop.f32.mrf.mxu0 }
 0x309   :  { %1434 = vst [vmem:[#allocation10 + $0xa0] sm:$0xff] %v1368_v53  ;;  %v1626_v50 = vadd.f32 %v1625_v13, %v1624_v46 }
 0x30a   :  { %v1627_v59 = vpop.f32.mrf.mxu0 }
 0x30b   :  { %v1371_v51 = vadd.f32 %v1626_v50, %v2201_v12 }
 0x30c   :  { %v1628_v24 = vpop.f32.mrf.mxu0 }
 0x30d   :  { %1435 = vst [vmem:[#allocation10 + $0xa8] sm:$0xff] %v1371_v51  ;;  %v1629_v3 = vadd.f32 %v1628_v24, %v1627_v59 }
 0x30e   :  { %v1630_v4 = vpop.f32.mrf.mxu0 }
 0x30f   :  { %v1376_v52 = vadd.f32 %v1629_v3, %v2201_v12 }
 0x310   :  { %v1631_v54 = vpop.f32.mrf.mxu0 }
 0x311   :  { %1436 = vst [vmem:[#allocation10 + $0xb0] sm:$0xff] %v1376_v52  ;;  %v1632_v55 = vadd.f32 %v1631_v54, %v1630_v4 }
 0x312   :  { %v1633_v56 = vpop.f32.mrf.mxu0 }
 0x313   :  { %v1379_v14 = vadd.f32 %v1632_v55, %v2201_v12 }
 0x314   :  { %v1634_v57 = vpop.f32.mrf.mxu0 }
 0x315   :  { %1437 = vst [vmem:[#allocation10 + $0xb8] sm:$0xff] %v1379_v14  ;;  %v1635_v21 = vadd.f32 %v1634_v57, %v1633_v56 }
 0x316   :  { %v1636_v60 = vpop.f32.mrf.mxu0 }
 0x317   :  { %v1384_v36 = vadd.f32 %v1635_v21, %v2201_v12 }
 0x318   :  { %v1637_v58 = vpop.f32.mrf.mxu0 }
 0x319   :  { %1438 = vst [vmem:[#allocation10 + $0xc0] sm:$0xff] %v1384_v36  ;;  %v1638_v61 = vadd.f32 %v1637_v58, %v1636_v60 }
 0x31a   :  { %v1639_v44 = vpop.f32.mrf.mxu0 }
 0x31b   :  { %v1387_v62 = vadd.f32 %v1638_v61, %v2201_v12 }
 0x31c   :  { %v1640_v63 = vpop.f32.mrf.mxu0 }
 0x31d   :  { %1439 = vst [vmem:[#allocation10 + $0xc8] sm:$0xff] %v1387_v62  ;;  %v1641_v1 = vadd.f32 %v1640_v63, %v1639_v44 }
 0x31e   :  { %v1642_v2 = vpop.f32.mrf.mxu0 }
 0x31f   :  { %v1392_v0 = vadd.f32 %v1641_v1, %v2201_v12 }
 0x320   :  { %v1643_v5 = vpop.f32.mrf.mxu0 }
 0x321   :  { %1440 = vst [vmem:[#allocation10 + $0xd0] sm:$0xff] %v1392_v0  ;;  %v1644_v7 = vadd.f32 %v1643_v5, %v1642_v2 }
 0x322   :  { %v1645_v9 = vpop.f32.mrf.mxu0 }
 0x323   :  { %v1395_v17 = vadd.f32 %v1644_v7, %v2201_v12 }
 0x324   :  { %v1646_v18 = vpop.f32.mrf.mxu0 }
 0x325   :  { %1441 = vst [vmem:[#allocation10 + $0xd8] sm:$0xff] %v1395_v17  ;;  %v1647_v19 = vadd.f32 %v1646_v18, %v1645_v9 }
 0x326   :  { %v1648_v25 = vpop.f32.mrf.mxu0 }
 0x327   :  { %v1400_v20 = vadd.f32 %v1647_v19, %v2201_v12 }
 0x328   :  { %v1649_v48 = vpop.f32.mrf.mxu0 }
 0x329   :  { %1442 = vst [vmem:[#allocation10 + $0xe0] sm:$0xff] %v1400_v20  ;;  %v1650_v34 = vadd.f32 %v1649_v48, %v1648_v25 }
 0x32a   :  { %v1651_v22 = vpop.f32.mrf.mxu0 }
 0x32b   :  { %v1403_v49 = vadd.f32 %v1650_v34, %v2201_v12 }
 0x32c   :  { %v1652_v10 = vpop.f32.mrf.mxu0 }
 0x32d   :  { %1443 = vst [vmem:[#allocation10 + $0xe8] sm:$0xff] %v1403_v49  ;;  %v1653_v23 = vadd.f32 %v1652_v10, %v1651_v22 }
 0x32e   :  { %v1654_v16 = vpop.f32.mrf.mxu0 }
 0x32f   :  { %v1408_v26 = vadd.f32 %v1653_v23, %v2201_v12 }
 0x330   :  { %v1655_v29 = vpop.f32.mrf.mxu0 }
 0x331   :  { %1444 = vst [vmem:[#allocation10 + $0xf0] sm:$0xff] %v1408_v26  ;;  %v1656_v30 = vadd.f32 %v1655_v29, %v1654_v16 }
 0x333   :  { %v1411_v31 = vadd.f32 %v1656_v30, %v2201_v12 }
 0x335   :  { %1445 = vst [vmem:[#allocation10 + $0xf8] sm:$0xff] %v1411_v31 }
 0x336   :  { %1878 = shalt.err (!%p1875_p10)
}
 0x337   :  { %1457 = dma.vmem_to_hbm [thread:$0]  %s1452_s25, 4096, %s2248_s7, [#allocation4], %s1896_s27, %s1896_s27, %s1897_s28  }
 0x338   :  { %1893 = dma.done.wait [#allocation4], 4096  }
 0x339   :  { %1894 = vsyncadd [#allocation4], 4294963200 }
 0x33a   :  { %1461 = vsyncpa [#allocation3], 1 }
 0x33b   :  { %1462 = vsyncpa [#allocation6], 1 }
 0x33c   :  { %1463 = vsyncpa [#allocation9], 1 }
 0x33d   :  { %1464 = vsyncpa [#allocation4], 1 }

</bundles_post_ra>
